<compile_context>
chip_gen: v7x
topology: tpu7x:2x2x1
jax: 0.10.0
libtpu: 0.0.40
codegen_flags: <defaults>
</compile_context>

<pallas_src>
import jax
import jax.numpy as jnp
from jax.experimental import pallas as pl
from jax.experimental.pallas import tpu as pltpu


# ----------------------------- Pallas kernels ------------------------------

def _conv_relu_pool_kernel(x_ref, w_ref, b_ref, o_ref, pool_ref):
    """Fused conv3x3(pad=1) + bias + ReLU + maxpool2x2 for a block of B images.

    x_ref:    (16, B*Ho, Wo*Cin)  pre-shifted phase buffers, index
                                  rh*8 + rw*4 + qh*2 + qw; every tap read is a
                                  full aligned block.
    w_ref:    (9, Wo*Cin, Wo*Cout) per-tap block-diagonal weights (bf16)
    b_ref:    (1, Wo*Cout)         per-channel bias tiled across Wo (f32)
    o_ref:    (B*Ho, Wo*Cout)      pooled output (bf16, NHWC lane order)
    pool_ref: (B*Ho, Wo*Cout)      f32 VMEM scratch: running max over phases
    """
    for a in range(2):                      # pooling row phase
        for b in range(2):                  # pooling col phase
            acc = None
            for dh in range(3):
                for dw in range(3):
                    vh, vw = a + dh, b + dw
                    idx = (vh % 2) * 8 + (vw % 2) * 4 + (vh // 2) * 2 + (vw // 2)
                    t = jnp.dot(x_ref[idx], w_ref[dh * 3 + dw],
                                preferred_element_type=jnp.float32)
                    acc = t if acc is None else acc + t
            if a == 0 and b == 0:
                pool_ref[...] = acc
            else:
                pool_ref[...] = jnp.maximum(pool_ref[...], acc)
    # maxpool over phases commutes with per-channel bias + monotone ReLU
    o_ref[...] = jnp.maximum(pool_ref[...] + b_ref[...], 0.0).astype(o_ref.dtype)


def _mlp_kernel(x_ref, w1_ref, b1_ref, w2_ref, b2_ref, o_ref):
    h = jnp.dot(x_ref[...], w1_ref[...], preferred_element_type=jnp.float32)
    h = jnp.maximum(h + b1_ref[...], 0.0)
    o = jnp.dot(h.astype(w2_ref.dtype), w2_ref[...],
                preferred_element_type=jnp.float32) + b2_ref[...]
    o_ref[...] = o.astype(o_ref.dtype)


# ------------------------------ layer wrappers ------------------------------

def conv_relu_pool(x_nhwc, w_blockdiag, bias_tiled, *, Cout, m_target=128):
    """conv3x3(pad=1) + ReLU + maxpool2x2 via the fused Pallas kernel."""
    N, H, W, Cin = x_nhwc.shape
    assert H % 2 == 0 and W % 2 == 0
    Ho, Wo = H // 2, W // 2
    Hp2, Wp2 = Ho + 1, Wo + 1
    kw = Wo * Cin

    x = x_nhwc.astype(jnp.bfloat16)
    # pad by 1 and split into the 4 (row, col) parities; merge (w, c) into lanes
    xp = jnp.pad(x, ((0, 0), (1, 1), (1, 1), (0, 0)))
    xph = xp.reshape(N, Hp2, 2, Wp2, 2, Cin).transpose(0, 2, 4, 1, 3, 5)
    xph = xph.reshape(N, 2, 2, Hp2, Wp2 * Cin)

    # pre-shift: 4 (qh, qw) copies of each parity buffer so in-kernel tap reads
    # are (0,0)-aligned full blocks (no sublane/lane rotations in the kernel)
    parts = [xph[:, :, :, qh:qh + Ho, qw * Cin:qw * Cin + kw]
             for qh in range(2) for qw in range(2)]
    x16 = jnp.stack(parts, axis=3).reshape(N, 16, Ho, kw)

    # batch-block: pack B images into the matmul M (sublane) dimension
    B = max(1, min(N, m_target // Ho))
    Npad = pl.cdiv(N, B) * B
    if Npad != N:
        x16 = jnp.pad(x16, ((0, Npad - N), (0, 0), (0, 0), (0, 0)))
    NB = Npad // B
    x16 = (x16.reshape(NB, B, 16, Ho, kw)
               .transpose(0, 2, 1, 3, 4)
               .reshape(NB, 16, B * Ho, kw))

    out = pl.pallas_call(
        _conv_relu_pool_kernel,
        out_shape=jax.ShapeDtypeStruct((NB, B * Ho, Wo * Cout), jnp.bfloat16),
        grid=(NB,),
        in_specs=[
            pl.BlockSpec((None, 16, B * Ho, kw), lambda n: (n, 0, 0, 0)),
            pl.BlockSpec((9, kw, Wo * Cout), lambda n: (0, 0, 0)),
            pl.BlockSpec((1, Wo * Cout), lambda n: (0, 0)),
        ],
        out_specs=pl.BlockSpec((None, B * Ho, Wo * Cout), lambda n: (n, 0, 0)),
        scratch_shapes=[pltpu.VMEM((B * Ho, Wo * Cout), jnp.float32)],
        compiler_params=pltpu.CompilerParams(
            dimension_semantics=("parallel",)),
    )(x16, w_blockdiag, bias_tiled)

    # undo the batch-blocking; (N, Ho, Wo*Cout) == NHWC (N, Ho, Wo, Cout)
    return out.reshape(Npad, Ho, Wo * Cout)[:N]


def mlp(x, w1, b1, w2, b2, *, out_dim, m_target=128):
    """fc1 (+ReLU) and fc2 fused; bf16 operands, f32 accumulation.

    Gridded over batch tiles with the weights pinned in VMEM (constant
    index_maps); fc2 output is padded to 128 lanes for unmasked stores.
    """
    N, K = x.shape
    Nout = w2.shape[1]                      # padded output width (128)
    tm = min(N, m_target)
    Npad = pl.cdiv(N, tm) * tm
    xb = x.astype(w1.dtype)
    if Npad != N:
        xb = jnp.pad(xb, ((0, Npad - N), (0, 0)))

    out = pl.pallas_call(
        _mlp_kernel,
        out_shape=jax.ShapeDtypeStruct((Npad, Nout), jnp.float32),
        grid=(Npad // tm,),
        in_specs=[
            pl.BlockSpec((tm, K), lambda i: (i, 0)),
            pl.BlockSpec(w1.shape, lambda i: (0, 0)),
            pl.BlockSpec(b1.shape, lambda i: (0, 0)),
            pl.BlockSpec(w2.shape, lambda i: (0, 0)),
            pl.BlockSpec(b2.shape, lambda i: (0, 0)),
        ],
        out_specs=pl.BlockSpec((tm, Nout), lambda i: (i, 0)),
        compiler_params=pltpu.CompilerParams(
            dimension_semantics=("parallel",)),
    )(xb, w1, b1, w2, b2)
    return out[:N, :out_dim]


# --------------------------- one-time param prep ----------------------------

def prepare_params(params):
    """Host-side, one-time transform of PyTorch-layout params to kernel layout."""
    def conv_blockdiag(w_oihw, wo):
        eye = jnp.eye(wo, dtype=jnp.float32)
        taps = [jnp.kron(eye, w_oihw[:, :, dh, dw].T.astype(jnp.float32))
                for dh in range(3) for dw in range(3)]     # (wo*Cin, wo*Cout)
        return jnp.stack(taps, axis=0).astype(jnp.bfloat16)  # (9, ...)

    # fc1 rows permuted from PyTorch NCHW-flatten (c,h,w) to NHWC-flatten (h,w,c)
    w_fc1_nhwc = (params["w_fc1"].reshape(32, 8, 8, 256)
                  .transpose(1, 2, 0, 3).reshape(32 * 8 * 8, 256))
    # fc2 output padded 10 -> 128 lanes (unmasked vst); extra columns are zero
    w_fc2_pad = jnp.pad(params["w_fc2"], ((0, 0), (0, 118)))
    b_fc2_pad = jnp.pad(params["b_fc2"], ((0, 118),))
    return {
        "conv1_w": conv_blockdiag(params["w_conv1"], 16),     # 32x32 -> Wo=16
        "conv1_b": jnp.tile(params["b_conv1"], 16).reshape(1, -1),
        "conv2_w": conv_blockdiag(params["w_conv2"], 8),      # 16x16 -> Wo=8
        "conv2_b": jnp.tile(params["b_conv2"], 8).reshape(1, -1),
        "fc1_w": w_fc1_nhwc.astype(jnp.bfloat16),
        "fc1_b": params["b_fc1"].reshape(1, -1),
        "fc2_w": w_fc2_pad.astype(jnp.bfloat16),
        "fc2_b": b_fc2_pad.reshape(1, -1),
    }


# ------------------------------- full forward -------------------------------

def simple_cnn_forward(x_nchw, prepared):
    N = x_nchw.shape[0]
    x = jnp.transpose(x_nchw, (0, 2, 3, 1))                   # NCHW -> NHWC
    x = conv_relu_pool(x, prepared["conv1_w"], prepared["conv1_b"],
                       Cout=16)                               # (N, 16, 16*16)
    x = x.reshape(N, 16, 16, 16)                              # NHWC
    x = conv_relu_pool(x, prepared["conv2_w"], prepared["conv2_b"],
                       Cout=32)                               # (N, 8, 8*32)
    x = x.reshape(N, 8 * 8 * 32)                              # NHWC flatten (h,w,c)
    return mlp(x, prepared["fc1_w"], prepared["fc1_b"],
               prepared["fc2_w"], prepared["fc2_b"], out_dim=10)


# --------------------------- deterministic params ---------------------------

def init_params(key):
    ks = jax.random.split(key, 8)
    def nrm(k, shape, fan_in):
        return (jax.random.normal(k, shape, jnp.float32)
                * jnp.sqrt(2.0 / fan_in).astype(jnp.float32))
    return {
        "w_conv1": nrm(ks[0], (16, 3, 3, 3), 3 * 9),          # OIHW, like PyTorch
        "b_conv1": 0.01 * jax.random.normal(ks[1], (16,), jnp.float32),
        "w_conv2": nrm(ks[2], (32, 16, 3, 3), 16 * 9),
        "b_conv2": 0.01 * jax.random.normal(ks[3], (32,), jnp.float32),
        "w_fc1":   nrm(ks[4], (32 * 8 * 8, 256), 32 * 8 * 8), # (in, out), NCHW order
        "b_fc1":   0.01 * jax.random.normal(ks[5], (256,), jnp.float32),
        "w_fc2":   nrm(ks[6], (256, 10), 256),
        "b_fc2":   0.01 * jax.random.normal(ks[7], (10,), jnp.float32),
    }


# ------------------------------ reference (JAX) ------------------------------

def reference_forward(x_nchw, params):
    def conv(x, w, b):
        y = jax.lax.conv_general_dilated(
            x, w, (1, 1), ((1, 1), (1, 1)),
            dimension_numbers=("NCHW", "OIHW", "NCHW"))
        return jax.nn.relu(y + b.reshape(1, -1, 1, 1))

    def pool(x):
        return jax.lax.reduce_window(x, -jnp.inf, jax.lax.max,
                                     (1, 1, 2, 2), (1, 1, 2, 2), "VALID")

    x = pool(conv(x_nchw, params["w_conv1"], params["b_conv1"]))
    x = pool(conv(x, params["w_conv2"], params["b_conv2"]))
    x = x.reshape(x.shape[0], -1)
    x = jax.nn.relu(x @ params["w_fc1"] + params["b_fc1"])
    return x @ params["w_fc2"] + params["b_fc2"]


# ----------------------------------- main -----------------------------------

if __name__ == "__main__":
    key = jax.random.PRNGKey(0)
    # fc1 = Linear(32*8*8, 256) forces 32x32 spatial input (two 2x2 pools: 32->16->8)
    x = jax.random.normal(key, (2, 3, 32, 32), jnp.float32)
    params = init_params(jax.random.PRNGKey(42))
    prepared = prepare_params(params)          # host-side, one-time weight prep

    out = jax.block_until_ready(jax.jit(simple_cnn_forward)(x, prepared))

    ref = jax.block_until_ready(reference_forward(x, params))
    assert out.shape == (2, 10), out.shape
    # tolerance accounts for the fully-bf16 (f32-accumulated) conv + MLP path
    assert jnp.allclose(out, ref, atol=3e-2, rtol=3e-2), (
        "mismatch", float(jnp.max(jnp.abs(out - ref))))

    print("KERNEL_OK")
</pallas_src>

<mosaic_0001>
module attributes {stable_mosaic.version = 11 : i64} {
  func.func @_conv_relu_pool_kernel(%arg0: i32, %arg1: memref<1x16x32x48xbf16, #tpu.memory_space<vmem>>, %arg2: memref<9x48x256xbf16, #tpu.memory_space<vmem>>, %arg3: memref<1x256xf32, #tpu.memory_space<vmem>>, %arg4: memref<1x32x256xbf16, #tpu.memory_space<vmem>>, %arg5: memref<32x256xf32, #tpu.memory_space<vmem>>) attributes {dimension_semantics = [#tpu.dimension_semantics<parallel>], iteration_bounds = array<i64: 1>, scalar_prefetch = 0 : i64, scratch_operands = 1 : i64, tpu.core_type = #tpu.core_type<tc>, window_params = [{transform_indices = @transform_0, window_bounds = array<i64: 1, 16, 32, 48>}, {pipeline_mode = #tpu.pipeline_mode<synchronous>, transform_indices = @transform_1, window_bounds = array<i64: 9, 48, 256>}, {pipeline_mode = #tpu.pipeline_mode<synchronous>, transform_indices = @transform_2, window_bounds = array<i64: 1, 256>}, {transform_indices = @transform_3, window_bounds = array<i64: 1, 32, 256>}]} {
    %c0 = arith.constant 0 : index
    %c0_0 = arith.constant 0 : index
    %c0_1 = arith.constant 0 : index
    %c0_2 = arith.constant 0 : index
    %0 = vector.load %arg1[%c0, %c0_0, %c0_1, %c0_2] : memref<1x16x32x48xbf16, #tpu.memory_space<vmem>>, vector<1x1x32x48xbf16>
    %1 = vector.shape_cast %0 : vector<1x1x32x48xbf16> to vector<32x48xbf16>
    %c0_3 = arith.constant 0 : index
    %c0_4 = arith.constant 0 : index
    %c0_5 = arith.constant 0 : index
    %2 = vector.load %arg2[%c0_3, %c0_4, %c0_5] : memref<9x48x256xbf16, #tpu.memory_space<vmem>>, vector<1x48x256xbf16>
    %3 = vector.shape_cast %2 : vector<1x48x256xbf16> to vector<48x256xbf16>
    %cst = arith.constant dense<0.000000e+00> : vector<32x256xf32>
    %4 = tpu.matmul %1, %3, %cst {dimension_numbers = #tpu.dot_dimension_numbers<[1], [0], [0], [1], [0, 0, 1, 1], [], []>} : vector<32x48xbf16>, vector<48x256xbf16>, vector<32x256xf32> -> vector<32x256xf32>
    %c0_6 = arith.constant 0 : index
    %c4 = arith.constant 4 : index
    %c0_7 = arith.constant 0 : index
    %c0_8 = arith.constant 0 : index
    %5 = vector.load %arg1[%c0_6, %c4, %c0_7, %c0_8] : memref<1x16x32x48xbf16, #tpu.memory_space<vmem>>, vector<1x1x32x48xbf16>
    %6 = vector.shape_cast %5 : vector<1x1x32x48xbf16> to vector<32x48xbf16>
    %c1 = arith.constant 1 : index
    %c0_9 = arith.constant 0 : index
    %c0_10 = arith.constant 0 : index
    %7 = vector.load %arg2[%c1, %c0_9, %c0_10] : memref<9x48x256xbf16, #tpu.memory_space<vmem>>, vector<1x48x256xbf16>
    %8 = vector.shape_cast %7 : vector<1x48x256xbf16> to vector<48x256xbf16>
    %cst_11 = arith.constant dense<0.000000e+00> : vector<32x256xf32>
    %9 = tpu.matmul %6, %8, %cst_11 {dimension_numbers = #tpu.dot_dimension_numbers<[1], [0], [0], [1], [0, 0, 1, 1], [], []>} : vector<32x48xbf16>, vector<48x256xbf16>, vector<32x256xf32> -> vector<32x256xf32>
    %10 = arith.addf %4, %9 : vector<32x256xf32>
    %c0_12 = arith.constant 0 : index
    %c1_13 = arith.constant 1 : index
    %c0_14 = arith.constant 0 : index
    %c0_15 = arith.constant 0 : index
    %11 = vector.load %arg1[%c0_12, %c1_13, %c0_14, %c0_15] : memref<1x16x32x48xbf16, #tpu.memory_space<vmem>>, vector<1x1x32x48xbf16>
    %12 = vector.shape_cast %11 : vector<1x1x32x48xbf16> to vector<32x48xbf16>
    %c2 = arith.constant 2 : index
    %c0_16 = arith.constant 0 : index
    %c0_17 = arith.constant 0 : index
    %13 = vector.load %arg2[%c2, %c0_16, %c0_17] : memref<9x48x256xbf16, #tpu.memory_space<vmem>>, vector<1x48x256xbf16>
    %14 = vector.shape_cast %13 : vector<1x48x256xbf16> to vector<48x256xbf16>
    %cst_18 = arith.constant dense<0.000000e+00> : vector<32x256xf32>
    %15 = tpu.matmul %12, %14, %cst_18 {dimension_numbers = #tpu.dot_dimension_numbers<[1], [0], [0], [1], [0, 0, 1, 1], [], []>} : vector<32x48xbf16>, vector<48x256xbf16>, vector<32x256xf32> -> vector<32x256xf32>
    %16 = arith.addf %10, %15 : vector<32x256xf32>
    %c0_19 = arith.constant 0 : index
    %c8 = arith.constant 8 : index
    %c0_20 = arith.constant 0 : index
    %c0_21 = arith.constant 0 : index
    %17 = vector.load %arg1[%c0_19, %c8, %c0_20, %c0_21] : memref<1x16x32x48xbf16, #tpu.memory_space<vmem>>, vector<1x1x32x48xbf16>
    %18 = vector.shape_cast %17 : vector<1x1x32x48xbf16> to vector<32x48xbf16>
    %c3 = arith.constant 3 : index
    %c0_22 = arith.constant 0 : index
    %c0_23 = arith.constant 0 : index
    %19 = vector.load %arg2[%c3, %c0_22, %c0_23] : memref<9x48x256xbf16, #tpu.memory_space<vmem>>, vector<1x48x256xbf16>
    %20 = vector.shape_cast %19 : vector<1x48x256xbf16> to vector<48x256xbf16>
    %cst_24 = arith.constant dense<0.000000e+00> : vector<32x256xf32>
    %21 = tpu.matmul %18, %20, %cst_24 {dimension_numbers = #tpu.dot_dimension_numbers<[1], [0], [0], [1], [0, 0, 1, 1], [], []>} : vector<32x48xbf16>, vector<48x256xbf16>, vector<32x256xf32> -> vector<32x256xf32>
    %22 = arith.addf %16, %21 : vector<32x256xf32>
    %c0_25 = arith.constant 0 : index
    %c12 = arith.constant 12 : index
    %c0_26 = arith.constant 0 : index
    %c0_27 = arith.constant 0 : index
    %23 = vector.load %arg1[%c0_25, %c12, %c0_26, %c0_27] : memref<1x16x32x48xbf16, #tpu.memory_space<vmem>>, vector<1x1x32x48xbf16>
    %24 = vector.shape_cast %23 : vector<1x1x32x48xbf16> to vector<32x48xbf16>
    %c4_28 = arith.constant 4 : index
    %c0_29 = arith.constant 0 : index
    %c0_30 = arith.constant 0 : index
    %25 = vector.load %arg2[%c4_28, %c0_29, %c0_30] : memref<9x48x256xbf16, #tpu.memory_space<vmem>>, vector<1x48x256xbf16>
    %26 = vector.shape_cast %25 : vector<1x48x256xbf16> to vector<48x256xbf16>
    %cst_31 = arith.constant dense<0.000000e+00> : vector<32x256xf32>
    %27 = tpu.matmul %24, %26, %cst_31 {dimension_numbers = #tpu.dot_dimension_numbers<[1], [0], [0], [1], [0, 0, 1, 1], [], []>} : vector<32x48xbf16>, vector<48x256xbf16>, vector<32x256xf32> -> vector<32x256xf32>
    %28 = arith.addf %22, %27 : vector<32x256xf32>
    %c0_32 = arith.constant 0 : index
    %c9 = arith.constant 9 : index
    %c0_33 = arith.constant 0 : index
    %c0_34 = arith.constant 0 : index
    %29 = vector.load %arg1[%c0_32, %c9, %c0_33, %c0_34] : memref<1x16x32x48xbf16, #tpu.memory_space<vmem>>, vector<1x1x32x48xbf16>
    %30 = vector.shape_cast %29 : vector<1x1x32x48xbf16> to vector<32x48xbf16>
    %c5 = arith.constant 5 : index
    %c0_35 = arith.constant 0 : index
    %c0_36 = arith.constant 0 : index
    %31 = vector.load %arg2[%c5, %c0_35, %c0_36] : memref<9x48x256xbf16, #tpu.memory_space<vmem>>, vector<1x48x256xbf16>
    %32 = vector.shape_cast %31 : vector<1x48x256xbf16> to vector<48x256xbf16>
    %cst_37 = arith.constant dense<0.000000e+00> : vector<32x256xf32>
    %33 = tpu.matmul %30, %32, %cst_37 {dimension_numbers = #tpu.dot_dimension_numbers<[1], [0], [0], [1], [0, 0, 1, 1], [], []>} : vector<32x48xbf16>, vector<48x256xbf16>, vector<32x256xf32> -> vector<32x256xf32>
    %34 = arith.addf %28, %33 : vector<32x256xf32>
    %c0_38 = arith.constant 0 : index
    %c2_39 = arith.constant 2 : index
    %c0_40 = arith.constant 0 : index
    %c0_41 = arith.constant 0 : index
    %35 = vector.load %arg1[%c0_38, %c2_39, %c0_40, %c0_41] : memref<1x16x32x48xbf16, #tpu.memory_space<vmem>>, vector<1x1x32x48xbf16>
    %36 = vector.shape_cast %35 : vector<1x1x32x48xbf16> to vector<32x48xbf16>
    %c6 = arith.constant 6 : index
    %c0_42 = arith.constant 0 : index
    %c0_43 = arith.constant 0 : index
    %37 = vector.load %arg2[%c6, %c0_42, %c0_43] : memref<9x48x256xbf16, #tpu.memory_space<vmem>>, vector<1x48x256xbf16>
    %38 = vector.shape_cast %37 : vector<1x48x256xbf16> to vector<48x256xbf16>
    %cst_44 = arith.constant dense<0.000000e+00> : vector<32x256xf32>
    %39 = tpu.matmul %36, %38, %cst_44 {dimension_numbers = #tpu.dot_dimension_numbers<[1], [0], [0], [1], [0, 0, 1, 1], [], []>} : vector<32x48xbf16>, vector<48x256xbf16>, vector<32x256xf32> -> vector<32x256xf32>
    %40 = arith.addf %34, %39 : vector<32x256xf32>
    %c0_45 = arith.constant 0 : index
    %c6_46 = arith.constant 6 : index
    %c0_47 = arith.constant 0 : index
    %c0_48 = arith.constant 0 : index
    %41 = vector.load %arg1[%c0_45, %c6_46, %c0_47, %c0_48] : memref<1x16x32x48xbf16, #tpu.memory_space<vmem>>, vector<1x1x32x48xbf16>
    %42 = vector.shape_cast %41 : vector<1x1x32x48xbf16> to vector<32x48xbf16>
    %c7 = arith.constant 7 : index
    %c0_49 = arith.constant 0 : index
    %c0_50 = arith.constant 0 : index
    %43 = vector.load %arg2[%c7, %c0_49, %c0_50] : memref<9x48x256xbf16, #tpu.memory_space<vmem>>, vector<1x48x256xbf16>
    %44 = vector.shape_cast %43 : vector<1x48x256xbf16> to vector<48x256xbf16>
    %cst_51 = arith.constant dense<0.000000e+00> : vector<32x256xf32>
    %45 = tpu.matmul %42, %44, %cst_51 {dimension_numbers = #tpu.dot_dimension_numbers<[1], [0], [0], [1], [0, 0, 1, 1], [], []>} : vector<32x48xbf16>, vector<48x256xbf16>, vector<32x256xf32> -> vector<32x256xf32>
    %46 = arith.addf %40, %45 : vector<32x256xf32>
    %c0_52 = arith.constant 0 : index
    %c3_53 = arith.constant 3 : index
    %c0_54 = arith.constant 0 : index
    %c0_55 = arith.constant 0 : index
    %47 = vector.load %arg1[%c0_52, %c3_53, %c0_54, %c0_55] : memref<1x16x32x48xbf16, #tpu.memory_space<vmem>>, vector<1x1x32x48xbf16>
    %48 = vector.shape_cast %47 : vector<1x1x32x48xbf16> to vector<32x48xbf16>
    %c8_56 = arith.constant 8 : index
    %c0_57 = arith.constant 0 : index
    %c0_58 = arith.constant 0 : index
    %49 = vector.load %arg2[%c8_56, %c0_57, %c0_58] : memref<9x48x256xbf16, #tpu.memory_space<vmem>>, vector<1x48x256xbf16>
    %50 = vector.shape_cast %49 : vector<1x48x256xbf16> to vector<48x256xbf16>
    %cst_59 = arith.constant dense<0.000000e+00> : vector<32x256xf32>
    %51 = tpu.matmul %48, %50, %cst_59 {dimension_numbers = #tpu.dot_dimension_numbers<[1], [0], [0], [1], [0, 0, 1, 1], [], []>} : vector<32x48xbf16>, vector<48x256xbf16>, vector<32x256xf32> -> vector<32x256xf32>
    %52 = arith.addf %46, %51 : vector<32x256xf32>
    %c0_60 = arith.constant 0 : index
    %c0_61 = arith.constant 0 : index
    %53 = vector.load %arg5[%c0_60, %c0_61] : memref<32x256xf32, #tpu.memory_space<vmem>>, vector<32x256xf32>
    tpu.vector_store %arg5[%c0_60, %c0_61], %52 {strides = array<i32>} : memref<32x256xf32, #tpu.memory_space<vmem>>, vector<32x256xf32>,
    %c0_62 = arith.constant 0 : index
    %c4_63 = arith.constant 4 : index
    %c0_64 = arith.constant 0 : index
    %c0_65 = arith.constant 0 : index
    %54 = vector.load %arg1[%c0_62, %c4_63, %c0_64, %c0_65] : memref<1x16x32x48xbf16, #tpu.memory_space<vmem>>, vector<1x1x32x48xbf16>
    %55 = vector.shape_cast %54 : vector<1x1x32x48xbf16> to vector<32x48xbf16>
    %c0_66 = arith.constant 0 : index
    %c0_67 = arith.constant 0 : index
    %c0_68 = arith.constant 0 : index
    %56 = vector.load %arg2[%c0_66, %c0_67, %c0_68] : memref<9x48x256xbf16, #tpu.memory_space<vmem>>, vector<1x48x256xbf16>
    %57 = vector.shape_cast %56 : vector<1x48x256xbf16> to vector<48x256xbf16>
    %cst_69 = arith.constant dense<0.000000e+00> : vector<32x256xf32>
    %58 = tpu.matmul %55, %57, %cst_69 {dimension_numbers = #tpu.dot_dimension_numbers<[1], [0], [0], [1], [0, 0, 1, 1], [], []>} : vector<32x48xbf16>, vector<48x256xbf16>, vector<32x256xf32> -> vector<32x256xf32>
    %c0_70 = arith.constant 0 : index
    %c1_71 = arith.constant 1 : index
    %c0_72 = arith.constant 0 : index
    %c0_73 = arith.constant 0 : index
    %59 = vector.load %arg1[%c0_70, %c1_71, %c0_72, %c0_73] : memref<1x16x32x48xbf16, #tpu.memory_space<vmem>>, vector<1x1x32x48xbf16>
    %60 = vector.shape_cast %59 : vector<1x1x32x48xbf16> to vector<32x48xbf16>
    %c1_74 = arith.constant 1 : index
    %c0_75 = arith.constant 0 : index
    %c0_76 = arith.constant 0 : index
    %61 = vector.load %arg2[%c1_74, %c0_75, %c0_76] : memref<9x48x256xbf16, #tpu.memory_space<vmem>>, vector<1x48x256xbf16>
    %62 = vector.shape_cast %61 : vector<1x48x256xbf16> to vector<48x256xbf16>
    %cst_77 = arith.constant dense<0.000000e+00> : vector<32x256xf32>
    %63 = tpu.matmul %60, %62, %cst_77 {dimension_numbers = #tpu.dot_dimension_numbers<[1], [0], [0], [1], [0, 0, 1, 1], [], []>} : vector<32x48xbf16>, vector<48x256xbf16>, vector<32x256xf32> -> vector<32x256xf32>
    %64 = arith.addf %58, %63 : vector<32x256xf32>
    %c0_78 = arith.constant 0 : index
    %c5_79 = arith.constant 5 : index
    %c0_80 = arith.constant 0 : index
    %c0_81 = arith.constant 0 : index
    %65 = vector.load %arg1[%c0_78, %c5_79, %c0_80, %c0_81] : memref<1x16x32x48xbf16, #tpu.memory_space<vmem>>, vector<1x1x32x48xbf16>
    %66 = vector.shape_cast %65 : vector<1x1x32x48xbf16> to vector<32x48xbf16>
    %c2_82 = arith.constant 2 : index
    %c0_83 = arith.constant 0 : index
    %c0_84 = arith.constant 0 : index
    %67 = vector.load %arg2[%c2_82, %c0_83, %c0_84] : memref<9x48x256xbf16, #tpu.memory_space<vmem>>, vector<1x48x256xbf16>
    %68 = vector.shape_cast %67 : vector<1x48x256xbf16> to vector<48x256xbf16>
    %cst_85 = arith.constant dense<0.000000e+00> : vector<32x256xf32>
    %69 = tpu.matmul %66, %68, %cst_85 {dimension_numbers = #tpu.dot_dimension_numbers<[1], [0], [0], [1], [0, 0, 1, 1], [], []>} : vector<32x48xbf16>, vector<48x256xbf16>, vector<32x256xf32> -> vector<32x256xf32>
    %70 = arith.addf %64, %69 : vector<32x256xf32>
    %c0_86 = arith.constant 0 : index
    %c12_87 = arith.constant 12 : index
    %c0_88 = arith.constant 0 : index
    %c0_89 = arith.constant 0 : index
    %71 = vector.load %arg1[%c0_86, %c12_87, %c0_88, %c0_89] : memref<1x16x32x48xbf16, #tpu.memory_space<vmem>>, vector<1x1x32x48xbf16>
    %72 = vector.shape_cast %71 : vector<1x1x32x48xbf16> to vector<32x48xbf16>
    %c3_90 = arith.constant 3 : index
    %c0_91 = arith.constant 0 : index
    %c0_92 = arith.constant 0 : index
    %73 = vector.load %arg2[%c3_90, %c0_91, %c0_92] : memref<9x48x256xbf16, #tpu.memory_space<vmem>>, vector<1x48x256xbf16>
    %74 = vector.shape_cast %73 : vector<1x48x256xbf16> to vector<48x256xbf16>
    %cst_93 = arith.constant dense<0.000000e+00> : vector<32x256xf32>
    %75 = tpu.matmul %72, %74, %cst_93 {dimension_numbers = #tpu.dot_dimension_numbers<[1], [0], [0], [1], [0, 0, 1, 1], [], []>} : vector<32x48xbf16>, vector<48x256xbf16>, vector<32x256xf32> -> vector<32x256xf32>
    %76 = arith.addf %70, %75 : vector<32x256xf32>
    %c0_94 = arith.constant 0 : index
    %c9_95 = arith.constant 9 : index
    %c0_96 = arith.constant 0 : index
    %c0_97 = arith.constant 0 : index
    %77 = vector.load %arg1[%c0_94, %c9_95, %c0_96, %c0_97] : memref<1x16x32x48xbf16, #tpu.memory_space<vmem>>, vector<1x1x32x48xbf16>
    %78 = vector.shape_cast %77 : vector<1x1x32x48xbf16> to vector<32x48xbf16>
    %c4_98 = arith.constant 4 : index
    %c0_99 = arith.constant 0 : index
    %c0_100 = arith.constant 0 : index
    %79 = vector.load %arg2[%c4_98, %c0_99, %c0_100] : memref<9x48x256xbf16, #tpu.memory_space<vmem>>, vector<1x48x256xbf16>
    %80 = vector.shape_cast %79 : vector<1x48x256xbf16> to vector<48x256xbf16>
    %cst_101 = arith.constant dense<0.000000e+00> : vector<32x256xf32>
    %81 = tpu.matmul %78, %80, %cst_101 {dimension_numbers = #tpu.dot_dimension_numbers<[1], [0], [0], [1], [0, 0, 1, 1], [], []>} : vector<32x48xbf16>, vector<48x256xbf16>, vector<32x256xf32> -> vector<32x256xf32>
    %82 = arith.addf %76, %81 : vector<32x256xf32>
    %c0_102 = arith.constant 0 : index
    %c13 = arith.constant 13 : index
    %c0_103 = arith.constant 0 : index
    %c0_104 = arith.constant 0 : index
    %83 = vector.load %arg1[%c0_102, %c13, %c0_103, %c0_104] : memref<1x16x32x48xbf16, #tpu.memory_space<vmem>>, vector<1x1x32x48xbf16>
    %84 = vector.shape_cast %83 : vector<1x1x32x48xbf16> to vector<32x48xbf16>
    %c5_105 = arith.constant 5 : index
    %c0_106 = arith.constant 0 : index
    %c0_107 = arith.constant 0 : index
    %85 = vector.load %arg2[%c5_105, %c0_106, %c0_107] : memref<9x48x256xbf16, #tpu.memory_space<vmem>>, vector<1x48x256xbf16>
    %86 = vector.shape_cast %85 : vector<1x48x256xbf16> to vector<48x256xbf16>
    %cst_108 = arith.constant dense<0.000000e+00> : vector<32x256xf32>
    %87 = tpu.matmul %84, %86, %cst_108 {dimension_numbers = #tpu.dot_dimension_numbers<[1], [0], [0], [1], [0, 0, 1, 1], [], []>} : vector<32x48xbf16>, vector<48x256xbf16>, vector<32x256xf32> -> vector<32x256xf32>
    %88 = arith.addf %82, %87 : vector<32x256xf32>
    %c0_109 = arith.constant 0 : index
    %c6_110 = arith.constant 6 : index
    %c0_111 = arith.constant 0 : index
    %c0_112 = arith.constant 0 : index
    %89 = vector.load %arg1[%c0_109, %c6_110, %c0_111, %c0_112] : memref<1x16x32x48xbf16, #tpu.memory_space<vmem>>, vector<1x1x32x48xbf16>
    %90 = vector.shape_cast %89 : vector<1x1x32x48xbf16> to vector<32x48xbf16>
    %c6_113 = arith.constant 6 : index
    %c0_114 = arith.constant 0 : index
    %c0_115 = arith.constant 0 : index
    %91 = vector.load %arg2[%c6_113, %c0_114, %c0_115] : memref<9x48x256xbf16, #tpu.memory_space<vmem>>, vector<1x48x256xbf16>
    %92 = vector.shape_cast %91 : vector<1x48x256xbf16> to vector<48x256xbf16>
    %cst_116 = arith.constant dense<0.000000e+00> : vector<32x256xf32>
    %93 = tpu.matmul %90, %92, %cst_116 {dimension_numbers = #tpu.dot_dimension_numbers<[1], [0], [0], [1], [0, 0, 1, 1], [], []>} : vector<32x48xbf16>, vector<48x256xbf16>, vector<32x256xf32> -> vector<32x256xf32>
    %94 = arith.addf %88, %93 : vector<32x256xf32>
    %c0_117 = arith.constant 0 : index
    %c3_118 = arith.constant 3 : index
    %c0_119 = arith.constant 0 : index
    %c0_120 = arith.constant 0 : index
    %95 = vector.load %arg1[%c0_117, %c3_118, %c0_119, %c0_120] : memref<1x16x32x48xbf16, #tpu.memory_space<vmem>>, vector<1x1x32x48xbf16>
    %96 = vector.shape_cast %95 : vector<1x1x32x48xbf16> to vector<32x48xbf16>
    %c7_121 = arith.constant 7 : index
    %c0_122 = arith.constant 0 : index
    %c0_123 = arith.constant 0 : index
    %97 = vector.load %arg2[%c7_121, %c0_122, %c0_123] : memref<9x48x256xbf16, #tpu.memory_space<vmem>>, vector<1x48x256xbf16>
    %98 = vector.shape_cast %97 : vector<1x48x256xbf16> to vector<48x256xbf16>
    %cst_124 = arith.constant dense<0.000000e+00> : vector<32x256xf32>
    %99 = tpu.matmul %96, %98, %cst_124 {dimension_numbers = #tpu.dot_dimension_numbers<[1], [0], [0], [1], [0, 0, 1, 1], [], []>} : vector<32x48xbf16>, vector<48x256xbf16>, vector<32x256xf32> -> vector<32x256xf32>
    %100 = arith.addf %94, %99 : vector<32x256xf32>
    %c0_125 = arith.constant 0 : index
    %c7_126 = arith.constant 7 : index
    %c0_127 = arith.constant 0 : index
    %c0_128 = arith.constant 0 : index
    %101 = vector.load %arg1[%c0_125, %c7_126, %c0_127, %c0_128] : memref<1x16x32x48xbf16, #tpu.memory_space<vmem>>, vector<1x1x32x48xbf16>
    %102 = vector.shape_cast %101 : vector<1x1x32x48xbf16> to vector<32x48xbf16>
    %c8_129 = arith.constant 8 : index
    %c0_130 = arith.constant 0 : index
    %c0_131 = arith.constant 0 : index
    %103 = vector.load %arg2[%c8_129, %c0_130, %c0_131] : memref<9x48x256xbf16, #tpu.memory_space<vmem>>, vector<1x48x256xbf16>
    %104 = vector.shape_cast %103 : vector<1x48x256xbf16> to vector<48x256xbf16>
    %cst_132 = arith.constant dense<0.000000e+00> : vector<32x256xf32>
    %105 = tpu.matmul %102, %104, %cst_132 {dimension_numbers = #tpu.dot_dimension_numbers<[1], [0], [0], [1], [0, 0, 1, 1], [], []>} : vector<32x48xbf16>, vector<48x256xbf16>, vector<32x256xf32> -> vector<32x256xf32>
    %106 = arith.addf %100, %105 : vector<32x256xf32>
    %c0_133 = arith.constant 0 : index
    %c0_134 = arith.constant 0 : index
    %107 = vector.load %arg5[%c0_133, %c0_134] : memref<32x256xf32, #tpu.memory_space<vmem>>, vector<32x256xf32>
    %108 = arith.maximumf %107, %106 : vector<32x256xf32>
    %c0_135 = arith.constant 0 : index
    %c0_136 = arith.constant 0 : index
    %109 = vector.load %arg5[%c0_135, %c0_136] : memref<32x256xf32, #tpu.memory_space<vmem>>, vector<32x256xf32>
    tpu.vector_store %arg5[%c0_135, %c0_136], %108 {strides = array<i32>} : memref<32x256xf32, #tpu.memory_space<vmem>>, vector<32x256xf32>,
    %c0_137 = arith.constant 0 : index
    %c8_138 = arith.constant 8 : index
    %c0_139 = arith.constant 0 : index
    %c0_140 = arith.constant 0 : index
    %110 = vector.load %arg1[%c0_137, %c8_138, %c0_139, %c0_140] : memref<1x16x32x48xbf16, #tpu.memory_space<vmem>>, vector<1x1x32x48xbf16>
    %111 = vector.shape_cast %110 : vector<1x1x32x48xbf16> to vector<32x48xbf16>
    %c0_141 = arith.constant 0 : index
    %c0_142 = arith.constant 0 : index
    %c0_143 = arith.constant 0 : index
    %112 = vector.load %arg2[%c0_141, %c0_142, %c0_143] : memref<9x48x256xbf16, #tpu.memory_space<vmem>>, vector<1x48x256xbf16>
    %113 = vector.shape_cast %112 : vector<1x48x256xbf16> to vector<48x256xbf16>
    %cst_144 = arith.constant dense<0.000000e+00> : vector<32x256xf32>
    %114 = tpu.matmul %111, %113, %cst_144 {dimension_numbers = #tpu.dot_dimension_numbers<[1], [0], [0], [1], [0, 0, 1, 1], [], []>} : vector<32x48xbf16>, vector<48x256xbf16>, vector<32x256xf32> -> vector<32x256xf32>
    %c0_145 = arith.constant 0 : index
    %c12_146 = arith.constant 12 : index
    %c0_147 = arith.constant 0 : index
    %c0_148 = arith.constant 0 : index
    %115 = vector.load %arg1[%c0_145, %c12_146, %c0_147, %c0_148] : memref<1x16x32x48xbf16, #tpu.memory_space<vmem>>, vector<1x1x32x48xbf16>
    %116 = vector.shape_cast %115 : vector<1x1x32x48xbf16> to vector<32x48xbf16>
    %c1_149 = arith.constant 1 : index
    %c0_150 = arith.constant 0 : index
    %c0_151 = arith.constant 0 : index
    %117 = vector.load %arg2[%c1_149, %c0_150, %c0_151] : memref<9x48x256xbf16, #tpu.memory_space<vmem>>, vector<1x48x256xbf16>
    %118 = vector.shape_cast %117 : vector<1x48x256xbf16> to vector<48x256xbf16>
    %cst_152 = arith.constant dense<0.000000e+00> : vector<32x256xf32>
    %119 = tpu.matmul %116, %118, %cst_152 {dimension_numbers = #tpu.dot_dimension_numbers<[1], [0], [0], [1], [0, 0, 1, 1], [], []>} : vector<32x48xbf16>, vector<48x256xbf16>, vector<32x256xf32> -> vector<32x256xf32>
    %120 = arith.addf %114, %119 : vector<32x256xf32>
    %c0_153 = arith.constant 0 : index
    %c9_154 = arith.constant 9 : index
    %c0_155 = arith.constant 0 : index
    %c0_156 = arith.constant 0 : index
    %121 = vector.load %arg1[%c0_153, %c9_154, %c0_155, %c0_156] : memref<1x16x32x48xbf16, #tpu.memory_space<vmem>>, vector<1x1x32x48xbf16>
    %122 = vector.shape_cast %121 : vector<1x1x32x48xbf16> to vector<32x48xbf16>
    %c2_157 = arith.constant 2 : index
    %c0_158 = arith.constant 0 : index
    %c0_159 = arith.constant 0 : index
    %123 = vector.load %arg2[%c2_157, %c0_158, %c0_159] : memref<9x48x256xbf16, #tpu.memory_space<vmem>>, vector<1x48x256xbf16>
    %124 = vector.shape_cast %123 : vector<1x48x256xbf16> to vector<48x256xbf16>
    %cst_160 = arith.constant dense<0.000000e+00> : vector<32x256xf32>
    %125 = tpu.matmul %122, %124, %cst_160 {dimension_numbers = #tpu.dot_dimension_numbers<[1], [0], [0], [1], [0, 0, 1, 1], [], []>} : vector<32x48xbf16>, vector<48x256xbf16>, vector<32x256xf32> -> vector<32x256xf32>
    %126 = arith.addf %120, %125 : vector<32x256xf32>
    %c0_161 = arith.constant 0 : index
    %c2_162 = arith.constant 2 : index
    %c0_163 = arith.constant 0 : index
    %c0_164 = arith.constant 0 : index
    %127 = vector.load %arg1[%c0_161, %c2_162, %c0_163, %c0_164] : memref<1x16x32x48xbf16, #tpu.memory_space<vmem>>, vector<1x1x32x48xbf16>
    %128 = vector.shape_cast %127 : vector<1x1x32x48xbf16> to vector<32x48xbf16>
    %c3_165 = arith.constant 3 : index
    %c0_166 = arith.constant 0 : index
    %c0_167 = arith.constant 0 : index
    %129 = vector.load %arg2[%c3_165, %c0_166, %c0_167] : memref<9x48x256xbf16, #tpu.memory_space<vmem>>, vector<1x48x256xbf16>
    %130 = vector.shape_cast %129 : vector<1x48x256xbf16> to vector<48x256xbf16>
    %cst_168 = arith.constant dense<0.000000e+00> : vector<32x256xf32>
    %131 = tpu.matmul %128, %130, %cst_168 {dimension_numbers = #tpu.dot_dimension_numbers<[1], [0], [0], [1], [0, 0, 1, 1], [], []>} : vector<32x48xbf16>, vector<48x256xbf16>, vector<32x256xf32> -> vector<32x256xf32>
    %132 = arith.addf %126, %131 : vector<32x256xf32>
    %c0_169 = arith.constant 0 : index
    %c6_170 = arith.constant 6 : index
    %c0_171 = arith.constant 0 : index
    %c0_172 = arith.constant 0 : index
    %133 = vector.load %arg1[%c0_169, %c6_170, %c0_171, %c0_172] : memref<1x16x32x48xbf16, #tpu.memory_space<vmem>>, vector<1x1x32x48xbf16>
    %134 = vector.shape_cast %133 : vector<1x1x32x48xbf16> to vector<32x48xbf16>
    %c4_173 = arith.constant 4 : index
    %c0_174 = arith.constant 0 : index
    %c0_175 = arith.constant 0 : index
    %135 = vector.load %arg2[%c4_173, %c0_174, %c0_175] : memref<9x48x256xbf16, #tpu.memory_space<vmem>>, vector<1x48x256xbf16>
    %136 = vector.shape_cast %135 : vector<1x48x256xbf16> to vector<48x256xbf16>
    %cst_176 = arith.constant dense<0.000000e+00> : vector<32x256xf32>
    %137 = tpu.matmul %134, %136, %cst_176 {dimension_numbers = #tpu.dot_dimension_numbers<[1], [0], [0], [1], [0, 0, 1, 1], [], []>} : vector<32x48xbf16>, vector<48x256xbf16>, vector<32x256xf32> -> vector<32x256xf32>
    %138 = arith.addf %132, %137 : vector<32x256xf32>
    %c0_177 = arith.constant 0 : index
    %c3_178 = arith.constant 3 : index
    %c0_179 = arith.constant 0 : index
    %c0_180 = arith.constant 0 : index
    %139 = vector.load %arg1[%c0_177, %c3_178, %c0_179, %c0_180] : memref<1x16x32x48xbf16, #tpu.memory_space<vmem>>, vector<1x1x32x48xbf16>
    %140 = vector.shape_cast %139 : vector<1x1x32x48xbf16> to vector<32x48xbf16>
    %c5_181 = arith.constant 5 : index
    %c0_182 = arith.constant 0 : index
    %c0_183 = arith.constant 0 : index
    %141 = vector.load %arg2[%c5_181, %c0_182, %c0_183] : memref<9x48x256xbf16, #tpu.memory_space<vmem>>, vector<1x48x256xbf16>
    %142 = vector.shape_cast %141 : vector<1x48x256xbf16> to vector<48x256xbf16>
    %cst_184 = arith.constant dense<0.000000e+00> : vector<32x256xf32>
    %143 = tpu.matmul %140, %142, %cst_184 {dimension_numbers = #tpu.dot_dimension_numbers<[1], [0], [0], [1], [0, 0, 1, 1], [], []>} : vector<32x48xbf16>, vector<48x256xbf16>, vector<32x256xf32> -> vector<32x256xf32>
    %144 = arith.addf %138, %143 : vector<32x256xf32>
    %c0_185 = arith.constant 0 : index
    %c10 = arith.constant 10 : index
    %c0_186 = arith.constant 0 : index
    %c0_187 = arith.constant 0 : index
    %145 = vector.load %arg1[%c0_185, %c10, %c0_186, %c0_187] : memref<1x16x32x48xbf16, #tpu.memory_space<vmem>>, vector<1x1x32x48xbf16>
    %146 = vector.shape_cast %145 : vector<1x1x32x48xbf16> to vector<32x48xbf16>
    %c6_188 = arith.constant 6 : index
    %c0_189 = arith.constant 0 : index
    %c0_190 = arith.constant 0 : index
    %147 = vector.load %arg2[%c6_188, %c0_189, %c0_190] : memref<9x48x256xbf16, #tpu.memory_space<vmem>>, vector<1x48x256xbf16>
    %148 = vector.shape_cast %147 : vector<1x48x256xbf16> to vector<48x256xbf16>
    %cst_191 = arith.constant dense<0.000000e+00> : vector<32x256xf32>
    %149 = tpu.matmul %146, %148, %cst_191 {dimension_numbers = #tpu.dot_dimension_numbers<[1], [0], [0], [1], [0, 0, 1, 1], [], []>} : vector<32x48xbf16>, vector<48x256xbf16>, vector<32x256xf32> -> vector<32x256xf32>
    %150 = arith.addf %144, %149 : vector<32x256xf32>
    %c0_192 = arith.constant 0 : index
    %c14 = arith.constant 14 : index
    %c0_193 = arith.constant 0 : index
    %c0_194 = arith.constant 0 : index
    %151 = vector.load %arg1[%c0_192, %c14, %c0_193, %c0_194] : memref<1x16x32x48xbf16, #tpu.memory_space<vmem>>, vector<1x1x32x48xbf16>
    %152 = vector.shape_cast %151 : vector<1x1x32x48xbf16> to vector<32x48xbf16>
    %c7_195 = arith.constant 7 : index
    %c0_196 = arith.constant 0 : index
    %c0_197 = arith.constant 0 : index
    %153 = vector.load %arg2[%c7_195, %c0_196, %c0_197] : memref<9x48x256xbf16, #tpu.memory_space<vmem>>, vector<1x48x256xbf16>
    %154 = vector.shape_cast %153 : vector<1x48x256xbf16> to vector<48x256xbf16>
    %cst_198 = arith.constant dense<0.000000e+00> : vector<32x256xf32>
    %155 = tpu.matmul %152, %154, %cst_198 {dimension_numbers = #tpu.dot_dimension_numbers<[1], [0], [0], [1], [0, 0, 1, 1], [], []>} : vector<32x48xbf16>, vector<48x256xbf16>, vector<32x256xf32> -> vector<32x256xf32>
    %156 = arith.addf %150, %155 : vector<32x256xf32>
    %c0_199 = arith.constant 0 : index
    %c11 = arith.constant 11 : index
    %c0_200 = arith.constant 0 : index
    %c0_201 = arith.constant 0 : index
    %157 = vector.load %arg1[%c0_199, %c11, %c0_200, %c0_201] : memref<1x16x32x48xbf16, #tpu.memory_space<vmem>>, vector<1x1x32x48xbf16>
    %158 = vector.shape_cast %157 : vector<1x1x32x48xbf16> to vector<32x48xbf16>
    %c8_202 = arith.constant 8 : index
    %c0_203 = arith.constant 0 : index
    %c0_204 = arith.constant 0 : index
    %159 = vector.load %arg2[%c8_202, %c0_203, %c0_204] : memref<9x48x256xbf16, #tpu.memory_space<vmem>>, vector<1x48x256xbf16>
    %160 = vector.shape_cast %159 : vector<1x48x256xbf16> to vector<48x256xbf16>
    %cst_205 = arith.constant dense<0.000000e+00> : vector<32x256xf32>
    %161 = tpu.matmul %158, %160, %cst_205 {dimension_numbers = #tpu.dot_dimension_numbers<[1], [0], [0], [1], [0, 0, 1, 1], [], []>} : vector<32x48xbf16>, vector<48x256xbf16>, vector<32x256xf32> -> vector<32x256xf32>
    %162 = arith.addf %156, %161 : vector<32x256xf32>
    %c0_206 = arith.constant 0 : index
    %c0_207 = arith.constant 0 : index
    %163 = vector.load %arg5[%c0_206, %c0_207] : memref<32x256xf32, #tpu.memory_space<vmem>>, vector<32x256xf32>
    %164 = arith.maximumf %163, %162 : vector<32x256xf32>
    %c0_208 = arith.constant 0 : index
    %c0_209 = arith.constant 0 : index
    %165 = vector.load %arg5[%c0_208, %c0_209] : memref<32x256xf32, #tpu.memory_space<vmem>>, vector<32x256xf32>
    tpu.vector_store %arg5[%c0_208, %c0_209], %164 {strides = array<i32>} : memref<32x256xf32, #tpu.memory_space<vmem>>, vector<32x256xf32>,
    %c0_210 = arith.constant 0 : index
    %c12_211 = arith.constant 12 : index
    %c0_212 = arith.constant 0 : index
    %c0_213 = arith.constant 0 : index
    %166 = vector.load %arg1[%c0_210, %c12_211, %c0_212, %c0_213] : memref<1x16x32x48xbf16, #tpu.memory_space<vmem>>, vector<1x1x32x48xbf16>
    %167 = vector.shape_cast %166 : vector<1x1x32x48xbf16> to vector<32x48xbf16>
    %c0_214 = arith.constant 0 : index
    %c0_215 = arith.constant 0 : index
    %c0_216 = arith.constant 0 : index
    %168 = vector.load %arg2[%c0_214, %c0_215, %c0_216] : memref<9x48x256xbf16, #tpu.memory_space<vmem>>, vector<1x48x256xbf16>
    %169 = vector.shape_cast %168 : vector<1x48x256xbf16> to vector<48x256xbf16>
    %cst_217 = arith.constant dense<0.000000e+00> : vector<32x256xf32>
    %170 = tpu.matmul %167, %169, %cst_217 {dimension_numbers = #tpu.dot_dimension_numbers<[1], [0], [0], [1], [0, 0, 1, 1], [], []>} : vector<32x48xbf16>, vector<48x256xbf16>, vector<32x256xf32> -> vector<32x256xf32>
    %c0_218 = arith.constant 0 : index
    %c9_219 = arith.constant 9 : index
    %c0_220 = arith.constant 0 : index
    %c0_221 = arith.constant 0 : index
    %171 = vector.load %arg1[%c0_218, %c9_219, %c0_220, %c0_221] : memref<1x16x32x48xbf16, #tpu.memory_space<vmem>>, vector<1x1x32x48xbf16>
    %172 = vector.shape_cast %171 : vector<1x1x32x48xbf16> to vector<32x48xbf16>
    %c1_222 = arith.constant 1 : index
    %c0_223 = arith.constant 0 : index
    %c0_224 = arith.constant 0 : index
    %173 = vector.load %arg2[%c1_222, %c0_223, %c0_224] : memref<9x48x256xbf16, #tpu.memory_space<vmem>>, vector<1x48x256xbf16>
    %174 = vector.shape_cast %173 : vector<1x48x256xbf16> to vector<48x256xbf16>
    %cst_225 = arith.constant dense<0.000000e+00> : vector<32x256xf32>
    %175 = tpu.matmul %172, %174, %cst_225 {dimension_numbers = #tpu.dot_dimension_numbers<[1], [0], [0], [1], [0, 0, 1, 1], [], []>} : vector<32x48xbf16>, vector<48x256xbf16>, vector<32x256xf32> -> vector<32x256xf32>
    %176 = arith.addf %170, %175 : vector<32x256xf32>
    %c0_226 = arith.constant 0 : index
    %c13_227 = arith.constant 13 : index
    %c0_228 = arith.constant 0 : index
    %c0_229 = arith.constant 0 : index
    %177 = vector.load %arg1[%c0_226, %c13_227, %c0_228, %c0_229] : memref<1x16x32x48xbf16, #tpu.memory_space<vmem>>, vector<1x1x32x48xbf16>
    %178 = vector.shape_cast %177 : vector<1x1x32x48xbf16> to vector<32x48xbf16>
    %c2_230 = arith.constant 2 : index
    %c0_231 = arith.constant 0 : index
    %c0_232 = arith.constant 0 : index
    %179 = vector.load %arg2[%c2_230, %c0_231, %c0_232] : memref<9x48x256xbf16, #tpu.memory_space<vmem>>, vector<1x48x256xbf16>
    %180 = vector.shape_cast %179 : vector<1x48x256xbf16> to vector<48x256xbf16>
    %cst_233 = arith.constant dense<0.000000e+00> : vector<32x256xf32>
    %181 = tpu.matmul %178, %180, %cst_233 {dimension_numbers = #tpu.dot_dimension_numbers<[1], [0], [0], [1], [0, 0, 1, 1], [], []>} : vector<32x48xbf16>, vector<48x256xbf16>, vector<32x256xf32> -> vector<32x256xf32>
    %182 = arith.addf %176, %181 : vector<32x256xf32>
    %c0_234 = arith.constant 0 : index
    %c6_235 = arith.constant 6 : index
    %c0_236 = arith.constant 0 : index
    %c0_237 = arith.constant 0 : index
    %183 = vector.load %arg1[%c0_234, %c6_235, %c0_236, %c0_237] : memref<1x16x32x48xbf16, #tpu.memory_space<vmem>>, vector<1x1x32x48xbf16>
    %184 = vector.shape_cast %183 : vector<1x1x32x48xbf16> to vector<32x48xbf16>
    %c3_238 = arith.constant 3 : index
    %c0_239 = arith.constant 0 : index
    %c0_240 = arith.constant 0 : index
    %185 = vector.load %arg2[%c3_238, %c0_239, %c0_240] : memref<9x48x256xbf16, #tpu.memory_space<vmem>>, vector<1x48x256xbf16>
    %186 = vector.shape_cast %185 : vector<1x48x256xbf16> to vector<48x256xbf16>
    %cst_241 = arith.constant dense<0.000000e+00> : vector<32x256xf32>
    %187 = tpu.matmul %184, %186, %cst_241 {dimension_numbers = #tpu.dot_dimension_numbers<[1], [0], [0], [1], [0, 0, 1, 1], [], []>} : vector<32x48xbf16>, vector<48x256xbf16>, vector<32x256xf32> -> vector<32x256xf32>
    %188 = arith.addf %182, %187 : vector<32x256xf32>
    %c0_242 = arith.constant 0 : index
    %c3_243 = arith.constant 3 : index
    %c0_244 = arith.constant 0 : index
    %c0_245 = arith.constant 0 : index
    %189 = vector.load %arg1[%c0_242, %c3_243, %c0_244, %c0_245] : memref<1x16x32x48xbf16, #tpu.memory_space<vmem>>, vector<1x1x32x48xbf16>
    %190 = vector.shape_cast %189 : vector<1x1x32x48xbf16> to vector<32x48xbf16>
    %c4_246 = arith.constant 4 : index
    %c0_247 = arith.constant 0 : index
    %c0_248 = arith.constant 0 : index
    %191 = vector.load %arg2[%c4_246, %c0_247, %c0_248] : memref<9x48x256xbf16, #tpu.memory_space<vmem>>, vector<1x48x256xbf16>
    %192 = vector.shape_cast %191 : vector<1x48x256xbf16> to vector<48x256xbf16>
    %cst_249 = arith.constant dense<0.000000e+00> : vector<32x256xf32>
    %193 = tpu.matmul %190, %192, %cst_249 {dimension_numbers = #tpu.dot_dimension_numbers<[1], [0], [0], [1], [0, 0, 1, 1], [], []>} : vector<32x48xbf16>, vector<48x256xbf16>, vector<32x256xf32> -> vector<32x256xf32>
    %194 = arith.addf %188, %193 : vector<32x256xf32>
    %c0_250 = arith.constant 0 : index
    %c7_251 = arith.constant 7 : index
    %c0_252 = arith.constant 0 : index
    %c0_253 = arith.constant 0 : index
    %195 = vector.load %arg1[%c0_250, %c7_251, %c0_252, %c0_253] : memref<1x16x32x48xbf16, #tpu.memory_space<vmem>>, vector<1x1x32x48xbf16>
    %196 = vector.shape_cast %195 : vector<1x1x32x48xbf16> to vector<32x48xbf16>
    %c5_254 = arith.constant 5 : index
    %c0_255 = arith.constant 0 : index
    %c0_256 = arith.constant 0 : index
    %197 = vector.load %arg2[%c5_254, %c0_255, %c0_256] : memref<9x48x256xbf16, #tpu.memory_space<vmem>>, vector<1x48x256xbf16>
    %198 = vector.shape_cast %197 : vector<1x48x256xbf16> to vector<48x256xbf16>
    %cst_257 = arith.constant dense<0.000000e+00> : vector<32x256xf32>
    %199 = tpu.matmul %196, %198, %cst_257 {dimension_numbers = #tpu.dot_dimension_numbers<[1], [0], [0], [1], [0, 0, 1, 1], [], []>} : vector<32x48xbf16>, vector<48x256xbf16>, vector<32x256xf32> -> vector<32x256xf32>
    %200 = arith.addf %194, %199 : vector<32x256xf32>
    %c0_258 = arith.constant 0 : index
    %c14_259 = arith.constant 14 : index
    %c0_260 = arith.constant 0 : index
    %c0_261 = arith.constant 0 : index
    %201 = vector.load %arg1[%c0_258, %c14_259, %c0_260, %c0_261] : memref<1x16x32x48xbf16, #tpu.memory_space<vmem>>, vector<1x1x32x48xbf16>
    %202 = vector.shape_cast %201 : vector<1x1x32x48xbf16> to vector<32x48xbf16>
    %c6_262 = arith.constant 6 : index
    %c0_263 = arith.constant 0 : index
    %c0_264 = arith.constant 0 : index
    %203 = vector.load %arg2[%c6_262, %c0_263, %c0_264] : memref<9x48x256xbf16, #tpu.memory_space<vmem>>, vector<1x48x256xbf16>
    %204 = vector.shape_cast %203 : vector<1x48x256xbf16> to vector<48x256xbf16>
    %cst_265 = arith.constant dense<0.000000e+00> : vector<32x256xf32>
    %205 = tpu.matmul %202, %204, %cst_265 {dimension_numbers = #tpu.dot_dimension_numbers<[1], [0], [0], [1], [0, 0, 1, 1], [], []>} : vector<32x48xbf16>, vector<48x256xbf16>, vector<32x256xf32> -> vector<32x256xf32>
    %206 = arith.addf %200, %205 : vector<32x256xf32>
    %c0_266 = arith.constant 0 : index
    %c11_267 = arith.constant 11 : index
    %c0_268 = arith.constant 0 : index
    %c0_269 = arith.constant 0 : index
    %207 = vector.load %arg1[%c0_266, %c11_267, %c0_268, %c0_269] : memref<1x16x32x48xbf16, #tpu.memory_space<vmem>>, vector<1x1x32x48xbf16>
    %208 = vector.shape_cast %207 : vector<1x1x32x48xbf16> to vector<32x48xbf16>
    %c7_270 = arith.constant 7 : index
    %c0_271 = arith.constant 0 : index
    %c0_272 = arith.constant 0 : index
    %209 = vector.load %arg2[%c7_270, %c0_271, %c0_272] : memref<9x48x256xbf16, #tpu.memory_space<vmem>>, vector<1x48x256xbf16>
    %210 = vector.shape_cast %209 : vector<1x48x256xbf16> to vector<48x256xbf16>
    %cst_273 = arith.constant dense<0.000000e+00> : vector<32x256xf32>
    %211 = tpu.matmul %208, %210, %cst_273 {dimension_numbers = #tpu.dot_dimension_numbers<[1], [0], [0], [1], [0, 0, 1, 1], [], []>} : vector<32x48xbf16>, vector<48x256xbf16>, vector<32x256xf32> -> vector<32x256xf32>
    %212 = arith.addf %206, %211 : vector<32x256xf32>
    %c0_274 = arith.constant 0 : index
    %c15 = arith.constant 15 : index
    %c0_275 = arith.constant 0 : index
    %c0_276 = arith.constant 0 : index
    %213 = vector.load %arg1[%c0_274, %c15, %c0_275, %c0_276] : memref<1x16x32x48xbf16, #tpu.memory_space<vmem>>, vector<1x1x32x48xbf16>
    %214 = vector.shape_cast %213 : vector<1x1x32x48xbf16> to vector<32x48xbf16>
    %c8_277 = arith.constant 8 : index
    %c0_278 = arith.constant 0 : index
    %c0_279 = arith.constant 0 : index
    %215 = vector.load %arg2[%c8_277, %c0_278, %c0_279] : memref<9x48x256xbf16, #tpu.memory_space<vmem>>, vector<1x48x256xbf16>
    %216 = vector.shape_cast %215 : vector<1x48x256xbf16> to vector<48x256xbf16>
    %cst_280 = arith.constant dense<0.000000e+00> : vector<32x256xf32>
    %217 = tpu.matmul %214, %216, %cst_280 {dimension_numbers = #tpu.dot_dimension_numbers<[1], [0], [0], [1], [0, 0, 1, 1], [], []>} : vector<32x48xbf16>, vector<48x256xbf16>, vector<32x256xf32> -> vector<32x256xf32>
    %218 = arith.addf %212, %217 : vector<32x256xf32>
    %c0_281 = arith.constant 0 : index
    %c0_282 = arith.constant 0 : index
    %219 = vector.load %arg5[%c0_281, %c0_282] : memref<32x256xf32, #tpu.memory_space<vmem>>, vector<32x256xf32>
    %220 = arith.maximumf %219, %218 : vector<32x256xf32>
    %c0_283 = arith.constant 0 : index
    %c0_284 = arith.constant 0 : index
    %221 = vector.load %arg5[%c0_283, %c0_284] : memref<32x256xf32, #tpu.memory_space<vmem>>, vector<32x256xf32>
    tpu.vector_store %arg5[%c0_283, %c0_284], %220 {strides = array<i32>} : memref<32x256xf32, #tpu.memory_space<vmem>>, vector<32x256xf32>,
    %c0_285 = arith.constant 0 : index
    %c0_286 = arith.constant 0 : index
    %222 = vector.load %arg5[%c0_285, %c0_286] : memref<32x256xf32, #tpu.memory_space<vmem>>, vector<32x256xf32>
    %c0_287 = arith.constant 0 : index
    %c0_288 = arith.constant 0 : index
    %223 = vector.load %arg3[%c0_287, %c0_288] : memref<1x256xf32, #tpu.memory_space<vmem>>, vector<1x256xf32>
    %224 = vector.broadcast %223 : vector<1x256xf32> to vector<32x256xf32>
    %225 = arith.addf %222, %224 : vector<32x256xf32>
    %cst_289 = arith.constant 0.000000e+00 : f32
    %226 = vector.broadcast %cst_289 : f32 to vector<32x256xf32>
    %227 = arith.maximumf %225, %226 : vector<32x256xf32>
    %228 = arith.truncf %227 : vector<32x256xf32> to vector<32x256xbf16>
    %c0_290 = arith.constant 0 : index
    %c0_291 = arith.constant 0 : index
    %c0_292 = arith.constant 0 : index
    %229 = vector.load %arg4[%c0_290, %c0_291, %c0_292] : memref<1x32x256xbf16, #tpu.memory_space<vmem>>, vector<1x32x256xbf16>
    %230 = vector.shape_cast %229 : vector<1x32x256xbf16> to vector<32x256xbf16>
    %231 = vector.shape_cast %228 : vector<32x256xbf16> to vector<1x32x256xbf16>
    tpu.vector_store %arg4[%c0_290, %c0_291, %c0_292], %231 {strides = array<i32>} : memref<1x32x256xbf16, #tpu.memory_space<vmem>>, vector<1x32x256xbf16>,
    return
  }
  func.func @transform_0(%arg0: i32) -> (i32, i32, i32, i32) {
    %c0_i32 = arith.constant 0 : i32
    %c0_i32_0 = arith.constant 0 : i32
    %c0_i32_1 = arith.constant 0 : i32
    %c0_i32_2 = arith.constant 0 : i32
    return %arg0, %c0_i32, %c0_i32_0, %c0_i32_1 : i32, i32, i32, i32
  }
  func.func @transform_1(%arg0: i32) -> (i32, i32, i32) {
    %c0_i32 = arith.constant 0 : i32
    %c0_i32_0 = arith.constant 0 : i32
    %c0_i32_1 = arith.constant 0 : i32
    %c0_i32_2 = arith.constant 0 : i32
    return %c0_i32, %c0_i32_0, %c0_i32_1 : i32, i32, i32
  }
  func.func @transform_2(%arg0: i32) -> (i32, i32) {
    %c0_i32 = arith.constant 0 : i32
    %c0_i32_0 = arith.constant 0 : i32
    %c0_i32_1 = arith.constant 0 : i32
    return %c0_i32, %c0_i32_0 : i32, i32
  }
  func.func @transform_3(%arg0: i32) -> (i32, i32, i32) {
    %c0_i32 = arith.constant 0 : i32
    %c0_i32_0 = arith.constant 0 : i32
    %c0_i32_1 = arith.constant 0 : i32
    return %arg0, %c0_i32, %c0_i32_0 : i32, i32, i32
  }
}

module attributes {stable_mosaic.version = 11 : i64} {
  func.func @_conv_relu_pool_kernel(%arg0: i32, %arg1: memref<1x16x16x128xbf16, #tpu.memory_space<vmem>>, %arg2: memref<9x128x256xbf16, #tpu.memory_space<vmem>>, %arg3: memref<1x256xf32, #tpu.memory_space<vmem>>, %arg4: memref<1x16x256xbf16, #tpu.memory_space<vmem>>, %arg5: memref<16x256xf32, #tpu.memory_space<vmem>>) attributes {dimension_semantics = [#tpu.dimension_semantics<parallel>], iteration_bounds = array<i64: 1>, scalar_prefetch = 0 : i64, scratch_operands = 1 : i64, tpu.core_type = #tpu.core_type<tc>, window_params = [{transform_indices = @transform_0, window_bounds = array<i64: 1, 16, 16, 128>}, {pipeline_mode = #tpu.pipeline_mode<synchronous>, transform_indices = @transform_1, window_bounds = array<i64: 9, 128, 256>}, {pipeline_mode = #tpu.pipeline_mode<synchronous>, transform_indices = @transform_2, window_bounds = array<i64: 1, 256>}, {transform_indices = @transform_3, window_bounds = array<i64: 1, 16, 256>}]} {
    %c0 = arith.constant 0 : index
    %c0_0 = arith.constant 0 : index
    %c0_1 = arith.constant 0 : index
    %c0_2 = arith.constant 0 : index
    %0 = vector.load %arg1[%c0, %c0_0, %c0_1, %c0_2] : memref<1x16x16x128xbf16, #tpu.memory_space<vmem>>, vector<1x1x16x128xbf16>
    %1 = vector.shape_cast %0 : vector<1x1x16x128xbf16> to vector<16x128xbf16>
    %c0_3 = arith.constant 0 : index
    %c0_4 = arith.constant 0 : index
    %c0_5 = arith.constant 0 : index
    %2 = vector.load %arg2[%c0_3, %c0_4, %c0_5] : memref<9x128x256xbf16, #tpu.memory_space<vmem>>, vector<1x128x256xbf16>
    %3 = vector.shape_cast %2 : vector<1x128x256xbf16> to vector<128x256xbf16>
    %cst = arith.constant dense<0.000000e+00> : vector<16x256xf32>
    %4 = tpu.matmul %1, %3, %cst {dimension_numbers = #tpu.dot_dimension_numbers<[1], [0], [0], [1], [0, 0, 1, 1], [], []>} : vector<16x128xbf16>, vector<128x256xbf16>, vector<16x256xf32> -> vector<16x256xf32>
    %c0_6 = arith.constant 0 : index
    %c4 = arith.constant 4 : index
    %c0_7 = arith.constant 0 : index
    %c0_8 = arith.constant 0 : index
    %5 = vector.load %arg1[%c0_6, %c4, %c0_7, %c0_8] : memref<1x16x16x128xbf16, #tpu.memory_space<vmem>>, vector<1x1x16x128xbf16>
    %6 = vector.shape_cast %5 : vector<1x1x16x128xbf16> to vector<16x128xbf16>
    %c1 = arith.constant 1 : index
    %c0_9 = arith.constant 0 : index
    %c0_10 = arith.constant 0 : index
    %7 = vector.load %arg2[%c1, %c0_9, %c0_10] : memref<9x128x256xbf16, #tpu.memory_space<vmem>>, vector<1x128x256xbf16>
    %8 = vector.shape_cast %7 : vector<1x128x256xbf16> to vector<128x256xbf16>
    %cst_11 = arith.constant dense<0.000000e+00> : vector<16x256xf32>
    %9 = tpu.matmul %6, %8, %cst_11 {dimension_numbers = #tpu.dot_dimension_numbers<[1], [0], [0], [1], [0, 0, 1, 1], [], []>} : vector<16x128xbf16>, vector<128x256xbf16>, vector<16x256xf32> -> vector<16x256xf32>
    %10 = arith.addf %4, %9 : vector<16x256xf32>
    %c0_12 = arith.constant 0 : index
    %c1_13 = arith.constant 1 : index
    %c0_14 = arith.constant 0 : index
    %c0_15 = arith.constant 0 : index
    %11 = vector.load %arg1[%c0_12, %c1_13, %c0_14, %c0_15] : memref<1x16x16x128xbf16, #tpu.memory_space<vmem>>, vector<1x1x16x128xbf16>
    %12 = vector.shape_cast %11 : vector<1x1x16x128xbf16> to vector<16x128xbf16>
    %c2 = arith.constant 2 : index
    %c0_16 = arith.constant 0 : index
    %c0_17 = arith.constant 0 : index
    %13 = vector.load %arg2[%c2, %c0_16, %c0_17] : memref<9x128x256xbf16, #tpu.memory_space<vmem>>, vector<1x128x256xbf16>
    %14 = vector.shape_cast %13 : vector<1x128x256xbf16> to vector<128x256xbf16>
    %cst_18 = arith.constant dense<0.000000e+00> : vector<16x256xf32>
    %15 = tpu.matmul %12, %14, %cst_18 {dimension_numbers = #tpu.dot_dimension_numbers<[1], [0], [0], [1], [0, 0, 1, 1], [], []>} : vector<16x128xbf16>, vector<128x256xbf16>, vector<16x256xf32> -> vector<16x256xf32>
    %16 = arith.addf %10, %15 : vector<16x256xf32>
    %c0_19 = arith.constant 0 : index
    %c8 = arith.constant 8 : index
    %c0_20 = arith.constant 0 : index
    %c0_21 = arith.constant 0 : index
    %17 = vector.load %arg1[%c0_19, %c8, %c0_20, %c0_21] : memref<1x16x16x128xbf16, #tpu.memory_space<vmem>>, vector<1x1x16x128xbf16>
    %18 = vector.shape_cast %17 : vector<1x1x16x128xbf16> to vector<16x128xbf16>
    %c3 = arith.constant 3 : index
    %c0_22 = arith.constant 0 : index
    %c0_23 = arith.constant 0 : index
    %19 = vector.load %arg2[%c3, %c0_22, %c0_23] : memref<9x128x256xbf16, #tpu.memory_space<vmem>>, vector<1x128x256xbf16>
    %20 = vector.shape_cast %19 : vector<1x128x256xbf16> to vector<128x256xbf16>
    %cst_24 = arith.constant dense<0.000000e+00> : vector<16x256xf32>
    %21 = tpu.matmul %18, %20, %cst_24 {dimension_numbers = #tpu.dot_dimension_numbers<[1], [0], [0], [1], [0, 0, 1, 1], [], []>} : vector<16x128xbf16>, vector<128x256xbf16>, vector<16x256xf32> -> vector<16x256xf32>
    %22 = arith.addf %16, %21 : vector<16x256xf32>
    %c0_25 = arith.constant 0 : index
    %c12 = arith.constant 12 : index
    %c0_26 = arith.constant 0 : index
    %c0_27 = arith.constant 0 : index
    %23 = vector.load %arg1[%c0_25, %c12, %c0_26, %c0_27] : memref<1x16x16x128xbf16, #tpu.memory_space<vmem>>, vector<1x1x16x128xbf16>
    %24 = vector.shape_cast %23 : vector<1x1x16x128xbf16> to vector<16x128xbf16>
    %c4_28 = arith.constant 4 : index
    %c0_29 = arith.constant 0 : index
    %c0_30 = arith.constant 0 : index
    %25 = vector.load %arg2[%c4_28, %c0_29, %c0_30] : memref<9x128x256xbf16, #tpu.memory_space<vmem>>, vector<1x128x256xbf16>
    %26 = vector.shape_cast %25 : vector<1x128x256xbf16> to vector<128x256xbf16>
    %cst_31 = arith.constant dense<0.000000e+00> : vector<16x256xf32>
    %27 = tpu.matmul %24, %26, %cst_31 {dimension_numbers = #tpu.dot_dimension_numbers<[1], [0], [0], [1], [0, 0, 1, 1], [], []>} : vector<16x128xbf16>, vector<128x256xbf16>, vector<16x256xf32> -> vector<16x256xf32>
    %28 = arith.addf %22, %27 : vector<16x256xf32>
    %c0_32 = arith.constant 0 : index
    %c9 = arith.constant 9 : index
    %c0_33 = arith.constant 0 : index
    %c0_34 = arith.constant 0 : index
    %29 = vector.load %arg1[%c0_32, %c9, %c0_33, %c0_34] : memref<1x16x16x128xbf16, #tpu.memory_space<vmem>>, vector<1x1x16x128xbf16>
    %30 = vector.shape_cast %29 : vector<1x1x16x128xbf16> to vector<16x128xbf16>
    %c5 = arith.constant 5 : index
    %c0_35 = arith.constant 0 : index
    %c0_36 = arith.constant 0 : index
    %31 = vector.load %arg2[%c5, %c0_35, %c0_36] : memref<9x128x256xbf16, #tpu.memory_space<vmem>>, vector<1x128x256xbf16>
    %32 = vector.shape_cast %31 : vector<1x128x256xbf16> to vector<128x256xbf16>
    %cst_37 = arith.constant dense<0.000000e+00> : vector<16x256xf32>
    %33 = tpu.matmul %30, %32, %cst_37 {dimension_numbers = #tpu.dot_dimension_numbers<[1], [0], [0], [1], [0, 0, 1, 1], [], []>} : vector<16x128xbf16>, vector<128x256xbf16>, vector<16x256xf32> -> vector<16x256xf32>
    %34 = arith.addf %28, %33 : vector<16x256xf32>
    %c0_38 = arith.constant 0 : index
    %c2_39 = arith.constant 2 : index
    %c0_40 = arith.constant 0 : index
    %c0_41 = arith.constant 0 : index
    %35 = vector.load %arg1[%c0_38, %c2_39, %c0_40, %c0_41] : memref<1x16x16x128xbf16, #tpu.memory_space<vmem>>, vector<1x1x16x128xbf16>
    %36 = vector.shape_cast %35 : vector<1x1x16x128xbf16> to vector<16x128xbf16>
    %c6 = arith.constant 6 : index
    %c0_42 = arith.constant 0 : index
    %c0_43 = arith.constant 0 : index
    %37 = vector.load %arg2[%c6, %c0_42, %c0_43] : memref<9x128x256xbf16, #tpu.memory_space<vmem>>, vector<1x128x256xbf16>
    %38 = vector.shape_cast %37 : vector<1x128x256xbf16> to vector<128x256xbf16>
    %cst_44 = arith.constant dense<0.000000e+00> : vector<16x256xf32>
    %39 = tpu.matmul %36, %38, %cst_44 {dimension_numbers = #tpu.dot_dimension_numbers<[1], [0], [0], [1], [0, 0, 1, 1], [], []>} : vector<16x128xbf16>, vector<128x256xbf16>, vector<16x256xf32> -> vector<16x256xf32>
    %40 = arith.addf %34, %39 : vector<16x256xf32>
    %c0_45 = arith.constant 0 : index
    %c6_46 = arith.constant 6 : index
    %c0_47 = arith.constant 0 : index
    %c0_48 = arith.constant 0 : index
    %41 = vector.load %arg1[%c0_45, %c6_46, %c0_47, %c0_48] : memref<1x16x16x128xbf16, #tpu.memory_space<vmem>>, vector<1x1x16x128xbf16>
    %42 = vector.shape_cast %41 : vector<1x1x16x128xbf16> to vector<16x128xbf16>
    %c7 = arith.constant 7 : index
    %c0_49 = arith.constant 0 : index
    %c0_50 = arith.constant 0 : index
    %43 = vector.load %arg2[%c7, %c0_49, %c0_50] : memref<9x128x256xbf16, #tpu.memory_space<vmem>>, vector<1x128x256xbf16>
    %44 = vector.shape_cast %43 : vector<1x128x256xbf16> to vector<128x256xbf16>
    %cst_51 = arith.constant dense<0.000000e+00> : vector<16x256xf32>
    %45 = tpu.matmul %42, %44, %cst_51 {dimension_numbers = #tpu.dot_dimension_numbers<[1], [0], [0], [1], [0, 0, 1, 1], [], []>} : vector<16x128xbf16>, vector<128x256xbf16>, vector<16x256xf32> -> vector<16x256xf32>
    %46 = arith.addf %40, %45 : vector<16x256xf32>
    %c0_52 = arith.constant 0 : index
    %c3_53 = arith.constant 3 : index
    %c0_54 = arith.constant 0 : index
    %c0_55 = arith.constant 0 : index
    %47 = vector.load %arg1[%c0_52, %c3_53, %c0_54, %c0_55] : memref<1x16x16x128xbf16, #tpu.memory_space<vmem>>, vector<1x1x16x128xbf16>
    %48 = vector.shape_cast %47 : vector<1x1x16x128xbf16> to vector<16x128xbf16>
    %c8_56 = arith.constant 8 : index
    %c0_57 = arith.constant 0 : index
    %c0_58 = arith.constant 0 : index
    %49 = vector.load %arg2[%c8_56, %c0_57, %c0_58] : memref<9x128x256xbf16, #tpu.memory_space<vmem>>, vector<1x128x256xbf16>
    %50 = vector.shape_cast %49 : vector<1x128x256xbf16> to vector<128x256xbf16>
    %cst_59 = arith.constant dense<0.000000e+00> : vector<16x256xf32>
    %51 = tpu.matmul %48, %50, %cst_59 {dimension_numbers = #tpu.dot_dimension_numbers<[1], [0], [0], [1], [0, 0, 1, 1], [], []>} : vector<16x128xbf16>, vector<128x256xbf16>, vector<16x256xf32> -> vector<16x256xf32>
    %52 = arith.addf %46, %51 : vector<16x256xf32>
    %c0_60 = arith.constant 0 : index
    %c0_61 = arith.constant 0 : index
    %53 = vector.load %arg5[%c0_60, %c0_61] : memref<16x256xf32, #tpu.memory_space<vmem>>, vector<16x256xf32>
    tpu.vector_store %arg5[%c0_60, %c0_61], %52 {strides = array<i32>} : memref<16x256xf32, #tpu.memory_space<vmem>>, vector<16x256xf32>,
    %c0_62 = arith.constant 0 : index
    %c4_63 = arith.constant 4 : index
    %c0_64 = arith.constant 0 : index
    %c0_65 = arith.constant 0 : index
    %54 = vector.load %arg1[%c0_62, %c4_63, %c0_64, %c0_65] : memref<1x16x16x128xbf16, #tpu.memory_space<vmem>>, vector<1x1x16x128xbf16>
    %55 = vector.shape_cast %54 : vector<1x1x16x128xbf16> to vector<16x128xbf16>
    %c0_66 = arith.constant 0 : index
    %c0_67 = arith.constant 0 : index
    %c0_68 = arith.constant 0 : index
    %56 = vector.load %arg2[%c0_66, %c0_67, %c0_68] : memref<9x128x256xbf16, #tpu.memory_space<vmem>>, vector<1x128x256xbf16>
    %57 = vector.shape_cast %56 : vector<1x128x256xbf16> to vector<128x256xbf16>
    %cst_69 = arith.constant dense<0.000000e+00> : vector<16x256xf32>
    %58 = tpu.matmul %55, %57, %cst_69 {dimension_numbers = #tpu.dot_dimension_numbers<[1], [0], [0], [1], [0, 0, 1, 1], [], []>} : vector<16x128xbf16>, vector<128x256xbf16>, vector<16x256xf32> -> vector<16x256xf32>
    %c0_70 = arith.constant 0 : index
    %c1_71 = arith.constant 1 : index
    %c0_72 = arith.constant 0 : index
    %c0_73 = arith.constant 0 : index
    %59 = vector.load %arg1[%c0_70, %c1_71, %c0_72, %c0_73] : memref<1x16x16x128xbf16, #tpu.memory_space<vmem>>, vector<1x1x16x128xbf16>
    %60 = vector.shape_cast %59 : vector<1x1x16x128xbf16> to vector<16x128xbf16>
    %c1_74 = arith.constant 1 : index
    %c0_75 = arith.constant 0 : index
    %c0_76 = arith.constant 0 : index
    %61 = vector.load %arg2[%c1_74, %c0_75, %c0_76] : memref<9x128x256xbf16, #tpu.memory_space<vmem>>, vector<1x128x256xbf16>
    %62 = vector.shape_cast %61 : vector<1x128x256xbf16> to vector<128x256xbf16>
    %cst_77 = arith.constant dense<0.000000e+00> : vector<16x256xf32>
    %63 = tpu.matmul %60, %62, %cst_77 {dimension_numbers = #tpu.dot_dimension_numbers<[1], [0], [0], [1], [0, 0, 1, 1], [], []>} : vector<16x128xbf16>, vector<128x256xbf16>, vector<16x256xf32> -> vector<16x256xf32>
    %64 = arith.addf %58, %63 : vector<16x256xf32>
    %c0_78 = arith.constant 0 : index
    %c5_79 = arith.constant 5 : index
    %c0_80 = arith.constant 0 : index
    %c0_81 = arith.constant 0 : index
    %65 = vector.load %arg1[%c0_78, %c5_79, %c0_80, %c0_81] : memref<1x16x16x128xbf16, #tpu.memory_space<vmem>>, vector<1x1x16x128xbf16>
    %66 = vector.shape_cast %65 : vector<1x1x16x128xbf16> to vector<16x128xbf16>
    %c2_82 = arith.constant 2 : index
    %c0_83 = arith.constant 0 : index
    %c0_84 = arith.constant 0 : index
    %67 = vector.load %arg2[%c2_82, %c0_83, %c0_84] : memref<9x128x256xbf16, #tpu.memory_space<vmem>>, vector<1x128x256xbf16>
    %68 = vector.shape_cast %67 : vector<1x128x256xbf16> to vector<128x256xbf16>
    %cst_85 = arith.constant dense<0.000000e+00> : vector<16x256xf32>
    %69 = tpu.matmul %66, %68, %cst_85 {dimension_numbers = #tpu.dot_dimension_numbers<[1], [0], [0], [1], [0, 0, 1, 1], [], []>} : vector<16x128xbf16>, vector<128x256xbf16>, vector<16x256xf32> -> vector<16x256xf32>
    %70 = arith.addf %64, %69 : vector<16x256xf32>
    %c0_86 = arith.constant 0 : index
    %c12_87 = arith.constant 12 : index
    %c0_88 = arith.constant 0 : index
    %c0_89 = arith.constant 0 : index
    %71 = vector.load %arg1[%c0_86, %c12_87, %c0_88, %c0_89] : memref<1x16x16x128xbf16, #tpu.memory_space<vmem>>, vector<1x1x16x128xbf16>
    %72 = vector.shape_cast %71 : vector<1x1x16x128xbf16> to vector<16x128xbf16>
    %c3_90 = arith.constant 3 : index
    %c0_91 = arith.constant 0 : index
    %c0_92 = arith.constant 0 : index
    %73 = vector.load %arg2[%c3_90, %c0_91, %c0_92] : memref<9x128x256xbf16, #tpu.memory_space<vmem>>, vector<1x128x256xbf16>
    %74 = vector.shape_cast %73 : vector<1x128x256xbf16> to vector<128x256xbf16>
    %cst_93 = arith.constant dense<0.000000e+00> : vector<16x256xf32>
    %75 = tpu.matmul %72, %74, %cst_93 {dimension_numbers = #tpu.dot_dimension_numbers<[1], [0], [0], [1], [0, 0, 1, 1], [], []>} : vector<16x128xbf16>, vector<128x256xbf16>, vector<16x256xf32> -> vector<16x256xf32>
    %76 = arith.addf %70, %75 : vector<16x256xf32>
    %c0_94 = arith.constant 0 : index
    %c9_95 = arith.constant 9 : index
    %c0_96 = arith.constant 0 : index
    %c0_97 = arith.constant 0 : index
    %77 = vector.load %arg1[%c0_94, %c9_95, %c0_96, %c0_97] : memref<1x16x16x128xbf16, #tpu.memory_space<vmem>>, vector<1x1x16x128xbf16>
    %78 = vector.shape_cast %77 : vector<1x1x16x128xbf16> to vector<16x128xbf16>
    %c4_98 = arith.constant 4 : index
    %c0_99 = arith.constant 0 : index
    %c0_100 = arith.constant 0 : index
    %79 = vector.load %arg2[%c4_98, %c0_99, %c0_100] : memref<9x128x256xbf16, #tpu.memory_space<vmem>>, vector<1x128x256xbf16>
    %80 = vector.shape_cast %79 : vector<1x128x256xbf16> to vector<128x256xbf16>
    %cst_101 = arith.constant dense<0.000000e+00> : vector<16x256xf32>
    %81 = tpu.matmul %78, %80, %cst_101 {dimension_numbers = #tpu.dot_dimension_numbers<[1], [0], [0], [1], [0, 0, 1, 1], [], []>} : vector<16x128xbf16>, vector<128x256xbf16>, vector<16x256xf32> -> vector<16x256xf32>
    %82 = arith.addf %76, %81 : vector<16x256xf32>
    %c0_102 = arith.constant 0 : index
    %c13 = arith.constant 13 : index
    %c0_103 = arith.constant 0 : index
    %c0_104 = arith.constant 0 : index
    %83 = vector.load %arg1[%c0_102, %c13, %c0_103, %c0_104] : memref<1x16x16x128xbf16, #tpu.memory_space<vmem>>, vector<1x1x16x128xbf16>
    %84 = vector.shape_cast %83 : vector<1x1x16x128xbf16> to vector<16x128xbf16>
    %c5_105 = arith.constant 5 : index
    %c0_106 = arith.constant 0 : index
    %c0_107 = arith.constant 0 : index
    %85 = vector.load %arg2[%c5_105, %c0_106, %c0_107] : memref<9x128x256xbf16, #tpu.memory_space<vmem>>, vector<1x128x256xbf16>
    %86 = vector.shape_cast %85 : vector<1x128x256xbf16> to vector<128x256xbf16>
    %cst_108 = arith.constant dense<0.000000e+00> : vector<16x256xf32>
    %87 = tpu.matmul %84, %86, %cst_108 {dimension_numbers = #tpu.dot_dimension_numbers<[1], [0], [0], [1], [0, 0, 1, 1], [], []>} : vector<16x128xbf16>, vector<128x256xbf16>, vector<16x256xf32> -> vector<16x256xf32>
    %88 = arith.addf %82, %87 : vector<16x256xf32>
    %c0_109 = arith.constant 0 : index
    %c6_110 = arith.constant 6 : index
    %c0_111 = arith.constant 0 : index
    %c0_112 = arith.constant 0 : index
    %89 = vector.load %arg1[%c0_109, %c6_110, %c0_111, %c0_112] : memref<1x16x16x128xbf16, #tpu.memory_space<vmem>>, vector<1x1x16x128xbf16>
    %90 = vector.shape_cast %89 : vector<1x1x16x128xbf16> to vector<16x128xbf16>
    %c6_113 = arith.constant 6 : index
    %c0_114 = arith.constant 0 : index
    %c0_115 = arith.constant 0 : index
    %91 = vector.load %arg2[%c6_113, %c0_114, %c0_115] : memref<9x128x256xbf16, #tpu.memory_space<vmem>>, vector<1x128x256xbf16>
    %92 = vector.shape_cast %91 : vector<1x128x256xbf16> to vector<128x256xbf16>
    %cst_116 = arith.constant dense<0.000000e+00> : vector<16x256xf32>
    %93 = tpu.matmul %90, %92, %cst_116 {dimension_numbers = #tpu.dot_dimension_numbers<[1], [0], [0], [1], [0, 0, 1, 1], [], []>} : vector<16x128xbf16>, vector<128x256xbf16>, vector<16x256xf32> -> vector<16x256xf32>
    %94 = arith.addf %88, %93 : vector<16x256xf32>
    %c0_117 = arith.constant 0 : index
    %c3_118 = arith.constant 3 : index
    %c0_119 = arith.constant 0 : index
    %c0_120 = arith.constant 0 : index
    %95 = vector.load %arg1[%c0_117, %c3_118, %c0_119, %c0_120] : memref<1x16x16x128xbf16, #tpu.memory_space<vmem>>, vector<1x1x16x128xbf16>
    %96 = vector.shape_cast %95 : vector<1x1x16x128xbf16> to vector<16x128xbf16>
    %c7_121 = arith.constant 7 : index
    %c0_122 = arith.constant 0 : index
    %c0_123 = arith.constant 0 : index
    %97 = vector.load %arg2[%c7_121, %c0_122, %c0_123] : memref<9x128x256xbf16, #tpu.memory_space<vmem>>, vector<1x128x256xbf16>
    %98 = vector.shape_cast %97 : vector<1x128x256xbf16> to vector<128x256xbf16>
    %cst_124 = arith.constant dense<0.000000e+00> : vector<16x256xf32>
    %99 = tpu.matmul %96, %98, %cst_124 {dimension_numbers = #tpu.dot_dimension_numbers<[1], [0], [0], [1], [0, 0, 1, 1], [], []>} : vector<16x128xbf16>, vector<128x256xbf16>, vector<16x256xf32> -> vector<16x256xf32>
    %100 = arith.addf %94, %99 : vector<16x256xf32>
    %c0_125 = arith.constant 0 : index
    %c7_126 = arith.constant 7 : index
    %c0_127 = arith.constant 0 : index
    %c0_128 = arith.constant 0 : index
    %101 = vector.load %arg1[%c0_125, %c7_126, %c0_127, %c0_128] : memref<1x16x16x128xbf16, #tpu.memory_space<vmem>>, vector<1x1x16x128xbf16>
    %102 = vector.shape_cast %101 : vector<1x1x16x128xbf16> to vector<16x128xbf16>
    %c8_129 = arith.constant 8 : index
    %c0_130 = arith.constant 0 : index
    %c0_131 = arith.constant 0 : index
    %103 = vector.load %arg2[%c8_129, %c0_130, %c0_131] : memref<9x128x256xbf16, #tpu.memory_space<vmem>>, vector<1x128x256xbf16>
    %104 = vector.shape_cast %103 : vector<1x128x256xbf16> to vector<128x256xbf16>
    %cst_132 = arith.constant dense<0.000000e+00> : vector<16x256xf32>
    %105 = tpu.matmul %102, %104, %cst_132 {dimension_numbers = #tpu.dot_dimension_numbers<[1], [0], [0], [1], [0, 0, 1, 1], [], []>} : vector<16x128xbf16>, vector<128x256xbf16>, vector<16x256xf32> -> vector<16x256xf32>
    %106 = arith.addf %100, %105 : vector<16x256xf32>
    %c0_133 = arith.constant 0 : index
    %c0_134 = arith.constant 0 : index
    %107 = vector.load %arg5[%c0_133, %c0_134] : memref<16x256xf32, #tpu.memory_space<vmem>>, vector<16x256xf32>
    %108 = arith.maximumf %107, %106 : vector<16x256xf32>
    %c0_135 = arith.constant 0 : index
    %c0_136 = arith.constant 0 : index
    %109 = vector.load %arg5[%c0_135, %c0_136] : memref<16x256xf32, #tpu.memory_space<vmem>>, vector<16x256xf32>
    tpu.vector_store %arg5[%c0_135, %c0_136], %108 {strides = array<i32>} : memref<16x256xf32, #tpu.memory_space<vmem>>, vector<16x256xf32>,
    %c0_137 = arith.constant 0 : index
    %c8_138 = arith.constant 8 : index
    %c0_139 = arith.constant 0 : index
    %c0_140 = arith.constant 0 : index
    %110 = vector.load %arg1[%c0_137, %c8_138, %c0_139, %c0_140] : memref<1x16x16x128xbf16, #tpu.memory_space<vmem>>, vector<1x1x16x128xbf16>
    %111 = vector.shape_cast %110 : vector<1x1x16x128xbf16> to vector<16x128xbf16>
    %c0_141 = arith.constant 0 : index
    %c0_142 = arith.constant 0 : index
    %c0_143 = arith.constant 0 : index
    %112 = vector.load %arg2[%c0_141, %c0_142, %c0_143] : memref<9x128x256xbf16, #tpu.memory_space<vmem>>, vector<1x128x256xbf16>
    %113 = vector.shape_cast %112 : vector<1x128x256xbf16> to vector<128x256xbf16>
    %cst_144 = arith.constant dense<0.000000e+00> : vector<16x256xf32>
    %114 = tpu.matmul %111, %113, %cst_144 {dimension_numbers = #tpu.dot_dimension_numbers<[1], [0], [0], [1], [0, 0, 1, 1], [], []>} : vector<16x128xbf16>, vector<128x256xbf16>, vector<16x256xf32> -> vector<16x256xf32>
    %c0_145 = arith.constant 0 : index
    %c12_146 = arith.constant 12 : index
    %c0_147 = arith.constant 0 : index
    %c0_148 = arith.constant 0 : index
    %115 = vector.load %arg1[%c0_145, %c12_146, %c0_147, %c0_148] : memref<1x16x16x128xbf16, #tpu.memory_space<vmem>>, vector<1x1x16x128xbf16>
    %116 = vector.shape_cast %115 : vector<1x1x16x128xbf16> to vector<16x128xbf16>
    %c1_149 = arith.constant 1 : index
    %c0_150 = arith.constant 0 : index
    %c0_151 = arith.constant 0 : index
    %117 = vector.load %arg2[%c1_149, %c0_150, %c0_151] : memref<9x128x256xbf16, #tpu.memory_space<vmem>>, vector<1x128x256xbf16>
    %118 = vector.shape_cast %117 : vector<1x128x256xbf16> to vector<128x256xbf16>
    %cst_152 = arith.constant dense<0.000000e+00> : vector<16x256xf32>
    %119 = tpu.matmul %116, %118, %cst_152 {dimension_numbers = #tpu.dot_dimension_numbers<[1], [0], [0], [1], [0, 0, 1, 1], [], []>} : vector<16x128xbf16>, vector<128x256xbf16>, vector<16x256xf32> -> vector<16x256xf32>
    %120 = arith.addf %114, %119 : vector<16x256xf32>
    %c0_153 = arith.constant 0 : index
    %c9_154 = arith.constant 9 : index
    %c0_155 = arith.constant 0 : index
    %c0_156 = arith.constant 0 : index
    %121 = vector.load %arg1[%c0_153, %c9_154, %c0_155, %c0_156] : memref<1x16x16x128xbf16, #tpu.memory_space<vmem>>, vector<1x1x16x128xbf16>
    %122 = vector.shape_cast %121 : vector<1x1x16x128xbf16> to vector<16x128xbf16>
    %c2_157 = arith.constant 2 : index
    %c0_158 = arith.constant 0 : index
    %c0_159 = arith.constant 0 : index
    %123 = vector.load %arg2[%c2_157, %c0_158, %c0_159] : memref<9x128x256xbf16, #tpu.memory_space<vmem>>, vector<1x128x256xbf16>
    %124 = vector.shape_cast %123 : vector<1x128x256xbf16> to vector<128x256xbf16>
    %cst_160 = arith.constant dense<0.000000e+00> : vector<16x256xf32>
    %125 = tpu.matmul %122, %124, %cst_160 {dimension_numbers = #tpu.dot_dimension_numbers<[1], [0], [0], [1], [0, 0, 1, 1], [], []>} : vector<16x128xbf16>, vector<128x256xbf16>, vector<16x256xf32> -> vector<16x256xf32>
    %126 = arith.addf %120, %125 : vector<16x256xf32>
    %c0_161 = arith.constant 0 : index
    %c2_162 = arith.constant 2 : index
    %c0_163 = arith.constant 0 : index
    %c0_164 = arith.constant 0 : index
    %127 = vector.load %arg1[%c0_161, %c2_162, %c0_163, %c0_164] : memref<1x16x16x128xbf16, #tpu.memory_space<vmem>>, vector<1x1x16x128xbf16>
    %128 = vector.shape_cast %127 : vector<1x1x16x128xbf16> to vector<16x128xbf16>
    %c3_165 = arith.constant 3 : index
    %c0_166 = arith.constant 0 : index
    %c0_167 = arith.constant 0 : index
    %129 = vector.load %arg2[%c3_165, %c0_166, %c0_167] : memref<9x128x256xbf16, #tpu.memory_space<vmem>>, vector<1x128x256xbf16>
    %130 = vector.shape_cast %129 : vector<1x128x256xbf16> to vector<128x256xbf16>
    %cst_168 = arith.constant dense<0.000000e+00> : vector<16x256xf32>
    %131 = tpu.matmul %128, %130, %cst_168 {dimension_numbers = #tpu.dot_dimension_numbers<[1], [0], [0], [1], [0, 0, 1, 1], [], []>} : vector<16x128xbf16>, vector<128x256xbf16>, vector<16x256xf32> -> vector<16x256xf32>
    %132 = arith.addf %126, %131 : vector<16x256xf32>
    %c0_169 = arith.constant 0 : index
    %c6_170 = arith.constant 6 : index
    %c0_171 = arith.constant 0 : index
    %c0_172 = arith.constant 0 : index
    %133 = vector.load %arg1[%c0_169, %c6_170, %c0_171, %c0_172] : memref<1x16x16x128xbf16, #tpu.memory_space<vmem>>, vector<1x1x16x128xbf16>
    %134 = vector.shape_cast %133 : vector<1x1x16x128xbf16> to vector<16x128xbf16>
    %c4_173 = arith.constant 4 : index
    %c0_174 = arith.constant 0 : index
    %c0_175 = arith.constant 0 : index
    %135 = vector.load %arg2[%c4_173, %c0_174, %c0_175] : memref<9x128x256xbf16, #tpu.memory_space<vmem>>, vector<1x128x256xbf16>
    %136 = vector.shape_cast %135 : vector<1x128x256xbf16> to vector<128x256xbf16>
    %cst_176 = arith.constant dense<0.000000e+00> : vector<16x256xf32>
    %137 = tpu.matmul %134, %136, %cst_176 {dimension_numbers = #tpu.dot_dimension_numbers<[1], [0], [0], [1], [0, 0, 1, 1], [], []>} : vector<16x128xbf16>, vector<128x256xbf16>, vector<16x256xf32> -> vector<16x256xf32>
    %138 = arith.addf %132, %137 : vector<16x256xf32>
    %c0_177 = arith.constant 0 : index
    %c3_178 = arith.constant 3 : index
    %c0_179 = arith.constant 0 : index
    %c0_180 = arith.constant 0 : index
    %139 = vector.load %arg1[%c0_177, %c3_178, %c0_179, %c0_180] : memref<1x16x16x128xbf16, #tpu.memory_space<vmem>>, vector<1x1x16x128xbf16>
    %140 = vector.shape_cast %139 : vector<1x1x16x128xbf16> to vector<16x128xbf16>
    %c5_181 = arith.constant 5 : index
    %c0_182 = arith.constant 0 : index
    %c0_183 = arith.constant 0 : index
    %141 = vector.load %arg2[%c5_181, %c0_182, %c0_183] : memref<9x128x256xbf16, #tpu.memory_space<vmem>>, vector<1x128x256xbf16>
    %142 = vector.shape_cast %141 : vector<1x128x256xbf16> to vector<128x256xbf16>
    %cst_184 = arith.constant dense<0.000000e+00> : vector<16x256xf32>
    %143 = tpu.matmul %140, %142, %cst_184 {dimension_numbers = #tpu.dot_dimension_numbers<[1], [0], [0], [1], [0, 0, 1, 1], [], []>} : vector<16x128xbf16>, vector<128x256xbf16>, vector<16x256xf32> -> vector<16x256xf32>
    %144 = arith.addf %138, %143 : vector<16x256xf32>
    %c0_185 = arith.constant 0 : index
    %c10 = arith.constant 10 : index
    %c0_186 = arith.constant 0 : index
    %c0_187 = arith.constant 0 : index
    %145 = vector.load %arg1[%c0_185, %c10, %c0_186, %c0_187] : memref<1x16x16x128xbf16, #tpu.memory_space<vmem>>, vector<1x1x16x128xbf16>
    %146 = vector.shape_cast %145 : vector<1x1x16x128xbf16> to vector<16x128xbf16>
    %c6_188 = arith.constant 6 : index
    %c0_189 = arith.constant 0 : index
    %c0_190 = arith.constant 0 : index
    %147 = vector.load %arg2[%c6_188, %c0_189, %c0_190] : memref<9x128x256xbf16, #tpu.memory_space<vmem>>, vector<1x128x256xbf16>
    %148 = vector.shape_cast %147 : vector<1x128x256xbf16> to vector<128x256xbf16>
    %cst_191 = arith.constant dense<0.000000e+00> : vector<16x256xf32>
    %149 = tpu.matmul %146, %148, %cst_191 {dimension_numbers = #tpu.dot_dimension_numbers<[1], [0], [0], [1], [0, 0, 1, 1], [], []>} : vector<16x128xbf16>, vector<128x256xbf16>, vector<16x256xf32> -> vector<16x256xf32>
    %150 = arith.addf %144, %149 : vector<16x256xf32>
    %c0_192 = arith.constant 0 : index
    %c14 = arith.constant 14 : index
    %c0_193 = arith.constant 0 : index
    %c0_194 = arith.constant 0 : index
    %151 = vector.load %arg1[%c0_192, %c14, %c0_193, %c0_194] : memref<1x16x16x128xbf16, #tpu.memory_space<vmem>>, vector<1x1x16x128xbf16>
    %152 = vector.shape_cast %151 : vector<1x1x16x128xbf16> to vector<16x128xbf16>
    %c7_195 = arith.constant 7 : index
    %c0_196 = arith.constant 0 : index
    %c0_197 = arith.constant 0 : index
    %153 = vector.load %arg2[%c7_195, %c0_196, %c0_197] : memref<9x128x256xbf16, #tpu.memory_space<vmem>>, vector<1x128x256xbf16>
    %154 = vector.shape_cast %153 : vector<1x128x256xbf16> to vector<128x256xbf16>
    %cst_198 = arith.constant dense<0.000000e+00> : vector<16x256xf32>
    %155 = tpu.matmul %152, %154, %cst_198 {dimension_numbers = #tpu.dot_dimension_numbers<[1], [0], [0], [1], [0, 0, 1, 1], [], []>} : vector<16x128xbf16>, vector<128x256xbf16>, vector<16x256xf32> -> vector<16x256xf32>
    %156 = arith.addf %150, %155 : vector<16x256xf32>
    %c0_199 = arith.constant 0 : index
    %c11 = arith.constant 11 : index
    %c0_200 = arith.constant 0 : index
    %c0_201 = arith.constant 0 : index
    %157 = vector.load %arg1[%c0_199, %c11, %c0_200, %c0_201] : memref<1x16x16x128xbf16, #tpu.memory_space<vmem>>, vector<1x1x16x128xbf16>
    %158 = vector.shape_cast %157 : vector<1x1x16x128xbf16> to vector<16x128xbf16>
    %c8_202 = arith.constant 8 : index
    %c0_203 = arith.constant 0 : index
    %c0_204 = arith.constant 0 : index
    %159 = vector.load %arg2[%c8_202, %c0_203, %c0_204] : memref<9x128x256xbf16, #tpu.memory_space<vmem>>, vector<1x128x256xbf16>
    %160 = vector.shape_cast %159 : vector<1x128x256xbf16> to vector<128x256xbf16>
    %cst_205 = arith.constant dense<0.000000e+00> : vector<16x256xf32>
    %161 = tpu.matmul %158, %160, %cst_205 {dimension_numbers = #tpu.dot_dimension_numbers<[1], [0], [0], [1], [0, 0, 1, 1], [], []>} : vector<16x128xbf16>, vector<128x256xbf16>, vector<16x256xf32> -> vector<16x256xf32>
    %162 = arith.addf %156, %161 : vector<16x256xf32>
    %c0_206 = arith.constant 0 : index
    %c0_207 = arith.constant 0 : index
    %163 = vector.load %arg5[%c0_206, %c0_207] : memref<16x256xf32, #tpu.memory_space<vmem>>, vector<16x256xf32>
    %164 = arith.maximumf %163, %162 : vector<16x256xf32>
    %c0_208 = arith.constant 0 : index
    %c0_209 = arith.constant 0 : index
    %165 = vector.load %arg5[%c0_208, %c0_209] : memref<16x256xf32, #tpu.memory_space<vmem>>, vector<16x256xf32>
    tpu.vector_store %arg5[%c0_208, %c0_209], %164 {strides = array<i32>} : memref<16x256xf32, #tpu.memory_space<vmem>>, vector<16x256xf32>,
    %c0_210 = arith.constant 0 : index
    %c12_211 = arith.constant 12 : index
    %c0_212 = arith.constant 0 : index
    %c0_213 = arith.constant 0 : index
    %166 = vector.load %arg1[%c0_210, %c12_211, %c0_212, %c0_213] : memref<1x16x16x128xbf16, #tpu.memory_space<vmem>>, vector<1x1x16x128xbf16>
    %167 = vector.shape_cast %166 : vector<1x1x16x128xbf16> to vector<16x128xbf16>
    %c0_214 = arith.constant 0 : index
    %c0_215 = arith.constant 0 : index
    %c0_216 = arith.constant 0 : index
    %168 = vector.load %arg2[%c0_214, %c0_215, %c0_216] : memref<9x128x256xbf16, #tpu.memory_space<vmem>>, vector<1x128x256xbf16>
    %169 = vector.shape_cast %168 : vector<1x128x256xbf16> to vector<128x256xbf16>
    %cst_217 = arith.constant dense<0.000000e+00> : vector<16x256xf32>
    %170 = tpu.matmul %167, %169, %cst_217 {dimension_numbers = #tpu.dot_dimension_numbers<[1], [0], [0], [1], [0, 0, 1, 1], [], []>} : vector<16x128xbf16>, vector<128x256xbf16>, vector<16x256xf32> -> vector<16x256xf32>
    %c0_218 = arith.constant 0 : index
    %c9_219 = arith.constant 9 : index
    %c0_220 = arith.constant 0 : index
    %c0_221 = arith.constant 0 : index
    %171 = vector.load %arg1[%c0_218, %c9_219, %c0_220, %c0_221] : memref<1x16x16x128xbf16, #tpu.memory_space<vmem>>, vector<1x1x16x128xbf16>
    %172 = vector.shape_cast %171 : vector<1x1x16x128xbf16> to vector<16x128xbf16>
    %c1_222 = arith.constant 1 : index
    %c0_223 = arith.constant 0 : index
    %c0_224 = arith.constant 0 : index
    %173 = vector.load %arg2[%c1_222, %c0_223, %c0_224] : memref<9x128x256xbf16, #tpu.memory_space<vmem>>, vector<1x128x256xbf16>
    %174 = vector.shape_cast %173 : vector<1x128x256xbf16> to vector<128x256xbf16>
    %cst_225 = arith.constant dense<0.000000e+00> : vector<16x256xf32>
    %175 = tpu.matmul %172, %174, %cst_225 {dimension_numbers = #tpu.dot_dimension_numbers<[1], [0], [0], [1], [0, 0, 1, 1], [], []>} : vector<16x128xbf16>, vector<128x256xbf16>, vector<16x256xf32> -> vector<16x256xf32>
    %176 = arith.addf %170, %175 : vector<16x256xf32>
    %c0_226 = arith.constant 0 : index
    %c13_227 = arith.constant 13 : index
    %c0_228 = arith.constant 0 : index
    %c0_229 = arith.constant 0 : index
    %177 = vector.load %arg1[%c0_226, %c13_227, %c0_228, %c0_229] : memref<1x16x16x128xbf16, #tpu.memory_space<vmem>>, vector<1x1x16x128xbf16>
    %178 = vector.shape_cast %177 : vector<1x1x16x128xbf16> to vector<16x128xbf16>
    %c2_230 = arith.constant 2 : index
    %c0_231 = arith.constant 0 : index
    %c0_232 = arith.constant 0 : index
    %179 = vector.load %arg2[%c2_230, %c0_231, %c0_232] : memref<9x128x256xbf16, #tpu.memory_space<vmem>>, vector<1x128x256xbf16>
    %180 = vector.shape_cast %179 : vector<1x128x256xbf16> to vector<128x256xbf16>
    %cst_233 = arith.constant dense<0.000000e+00> : vector<16x256xf32>
    %181 = tpu.matmul %178, %180, %cst_233 {dimension_numbers = #tpu.dot_dimension_numbers<[1], [0], [0], [1], [0, 0, 1, 1], [], []>} : vector<16x128xbf16>, vector<128x256xbf16>, vector<16x256xf32> -> vector<16x256xf32>
    %182 = arith.addf %176, %181 : vector<16x256xf32>
    %c0_234 = arith.constant 0 : index
    %c6_235 = arith.constant 6 : index
    %c0_236 = arith.constant 0 : index
    %c0_237 = arith.constant 0 : index
    %183 = vector.load %arg1[%c0_234, %c6_235, %c0_236, %c0_237] : memref<1x16x16x128xbf16, #tpu.memory_space<vmem>>, vector<1x1x16x128xbf16>
    %184 = vector.shape_cast %183 : vector<1x1x16x128xbf16> to vector<16x128xbf16>
    %c3_238 = arith.constant 3 : index
    %c0_239 = arith.constant 0 : index
    %c0_240 = arith.constant 0 : index
    %185 = vector.load %arg2[%c3_238, %c0_239, %c0_240] : memref<9x128x256xbf16, #tpu.memory_space<vmem>>, vector<1x128x256xbf16>
    %186 = vector.shape_cast %185 : vector<1x128x256xbf16> to vector<128x256xbf16>
    %cst_241 = arith.constant dense<0.000000e+00> : vector<16x256xf32>
    %187 = tpu.matmul %184, %186, %cst_241 {dimension_numbers = #tpu.dot_dimension_numbers<[1], [0], [0], [1], [0, 0, 1, 1], [], []>} : vector<16x128xbf16>, vector<128x256xbf16>, vector<16x256xf32> -> vector<16x256xf32>
    %188 = arith.addf %182, %187 : vector<16x256xf32>
    %c0_242 = arith.constant 0 : index
    %c3_243 = arith.constant 3 : index
    %c0_244 = arith.constant 0 : index
    %c0_245 = arith.constant 0 : index
    %189 = vector.load %arg1[%c0_242, %c3_243, %c0_244, %c0_245] : memref<1x16x16x128xbf16, #tpu.memory_space<vmem>>, vector<1x1x16x128xbf16>
    %190 = vector.shape_cast %189 : vector<1x1x16x128xbf16> to vector<16x128xbf16>
    %c4_246 = arith.constant 4 : index
    %c0_247 = arith.constant 0 : index
    %c0_248 = arith.constant 0 : index
    %191 = vector.load %arg2[%c4_246, %c0_247, %c0_248] : memref<9x128x256xbf16, #tpu.memory_space<vmem>>, vector<1x128x256xbf16>
    %192 = vector.shape_cast %191 : vector<1x128x256xbf16> to vector<128x256xbf16>
    %cst_249 = arith.constant dense<0.000000e+00> : vector<16x256xf32>
    %193 = tpu.matmul %190, %192, %cst_249 {dimension_numbers = #tpu.dot_dimension_numbers<[1], [0], [0], [1], [0, 0, 1, 1], [], []>} : vector<16x128xbf16>, vector<128x256xbf16>, vector<16x256xf32> -> vector<16x256xf32>
    %194 = arith.addf %188, %193 : vector<16x256xf32>
    %c0_250 = arith.constant 0 : index
    %c7_251 = arith.constant 7 : index
    %c0_252 = arith.constant 0 : index
    %c0_253 = arith.constant 0 : index
    %195 = vector.load %arg1[%c0_250, %c7_251, %c0_252, %c0_253] : memref<1x16x16x128xbf16, #tpu.memory_space<vmem>>, vector<1x1x16x128xbf16>
    %196 = vector.shape_cast %195 : vector<1x1x16x128xbf16> to vector<16x128xbf16>
    %c5_254 = arith.constant 5 : index
    %c0_255 = arith.constant 0 : index
    %c0_256 = arith.constant 0 : index
    %197 = vector.load %arg2[%c5_254, %c0_255, %c0_256] : memref<9x128x256xbf16, #tpu.memory_space<vmem>>, vector<1x128x256xbf16>
    %198 = vector.shape_cast %197 : vector<1x128x256xbf16> to vector<128x256xbf16>
    %cst_257 = arith.constant dense<0.000000e+00> : vector<16x256xf32>
    %199 = tpu.matmul %196, %198, %cst_257 {dimension_numbers = #tpu.dot_dimension_numbers<[1], [0], [0], [1], [0, 0, 1, 1], [], []>} : vector<16x128xbf16>, vector<128x256xbf16>, vector<16x256xf32> -> vector<16x256xf32>
    %200 = arith.addf %194, %199 : vector<16x256xf32>
    %c0_258 = arith.constant 0 : index
    %c14_259 = arith.constant 14 : index
    %c0_260 = arith.constant 0 : index
    %c0_261 = arith.constant 0 : index
    %201 = vector.load %arg1[%c0_258, %c14_259, %c0_260, %c0_261] : memref<1x16x16x128xbf16, #tpu.memory_space<vmem>>, vector<1x1x16x128xbf16>
    %202 = vector.shape_cast %201 : vector<1x1x16x128xbf16> to vector<16x128xbf16>
    %c6_262 = arith.constant 6 : index
    %c0_263 = arith.constant 0 : index
    %c0_264 = arith.constant 0 : index
    %203 = vector.load %arg2[%c6_262, %c0_263, %c0_264] : memref<9x128x256xbf16, #tpu.memory_space<vmem>>, vector<1x128x256xbf16>
    %204 = vector.shape_cast %203 : vector<1x128x256xbf16> to vector<128x256xbf16>
    %cst_265 = arith.constant dense<0.000000e+00> : vector<16x256xf32>
    %205 = tpu.matmul %202, %204, %cst_265 {dimension_numbers = #tpu.dot_dimension_numbers<[1], [0], [0], [1], [0, 0, 1, 1], [], []>} : vector<16x128xbf16>, vector<128x256xbf16>, vector<16x256xf32> -> vector<16x256xf32>
    %206 = arith.addf %200, %205 : vector<16x256xf32>
    %c0_266 = arith.constant 0 : index
    %c11_267 = arith.constant 11 : index
    %c0_268 = arith.constant 0 : index
    %c0_269 = arith.constant 0 : index
    %207 = vector.load %arg1[%c0_266, %c11_267, %c0_268, %c0_269] : memref<1x16x16x128xbf16, #tpu.memory_space<vmem>>, vector<1x1x16x128xbf16>
    %208 = vector.shape_cast %207 : vector<1x1x16x128xbf16> to vector<16x128xbf16>
    %c7_270 = arith.constant 7 : index
    %c0_271 = arith.constant 0 : index
    %c0_272 = arith.constant 0 : index
    %209 = vector.load %arg2[%c7_270, %c0_271, %c0_272] : memref<9x128x256xbf16, #tpu.memory_space<vmem>>, vector<1x128x256xbf16>
    %210 = vector.shape_cast %209 : vector<1x128x256xbf16> to vector<128x256xbf16>
    %cst_273 = arith.constant dense<0.000000e+00> : vector<16x256xf32>
    %211 = tpu.matmul %208, %210, %cst_273 {dimension_numbers = #tpu.dot_dimension_numbers<[1], [0], [0], [1], [0, 0, 1, 1], [], []>} : vector<16x128xbf16>, vector<128x256xbf16>, vector<16x256xf32> -> vector<16x256xf32>
    %212 = arith.addf %206, %211 : vector<16x256xf32>
    %c0_274 = arith.constant 0 : index
    %c15 = arith.constant 15 : index
    %c0_275 = arith.constant 0 : index
    %c0_276 = arith.constant 0 : index
    %213 = vector.load %arg1[%c0_274, %c15, %c0_275, %c0_276] : memref<1x16x16x128xbf16, #tpu.memory_space<vmem>>, vector<1x1x16x128xbf16>
    %214 = vector.shape_cast %213 : vector<1x1x16x128xbf16> to vector<16x128xbf16>
    %c8_277 = arith.constant 8 : index
    %c0_278 = arith.constant 0 : index
    %c0_279 = arith.constant 0 : index
    %215 = vector.load %arg2[%c8_277, %c0_278, %c0_279] : memref<9x128x256xbf16, #tpu.memory_space<vmem>>, vector<1x128x256xbf16>
    %216 = vector.shape_cast %215 : vector<1x128x256xbf16> to vector<128x256xbf16>
    %cst_280 = arith.constant dense<0.000000e+00> : vector<16x256xf32>
    %217 = tpu.matmul %214, %216, %cst_280 {dimension_numbers = #tpu.dot_dimension_numbers<[1], [0], [0], [1], [0, 0, 1, 1], [], []>} : vector<16x128xbf16>, vector<128x256xbf16>, vector<16x256xf32> -> vector<16x256xf32>
    %218 = arith.addf %212, %217 : vector<16x256xf32>
    %c0_281 = arith.constant 0 : index
    %c0_282 = arith.constant 0 : index
    %219 = vector.load %arg5[%c0_281, %c0_282] : memref<16x256xf32, #tpu.memory_space<vmem>>, vector<16x256xf32>
    %220 = arith.maximumf %219, %218 : vector<16x256xf32>
    %c0_283 = arith.constant 0 : index
    %c0_284 = arith.constant 0 : index
    %221 = vector.load %arg5[%c0_283, %c0_284] : memref<16x256xf32, #tpu.memory_space<vmem>>, vector<16x256xf32>
    tpu.vector_store %arg5[%c0_283, %c0_284], %220 {strides = array<i32>} : memref<16x256xf32, #tpu.memory_space<vmem>>, vector<16x256xf32>,
    %c0_285 = arith.constant 0 : index
    %c0_286 = arith.constant 0 : index
    %222 = vector.load %arg5[%c0_285, %c0_286] : memref<16x256xf32, #tpu.memory_space<vmem>>, vector<16x256xf32>
    %c0_287 = arith.constant 0 : index
    %c0_288 = arith.constant 0 : index
    %223 = vector.load %arg3[%c0_287, %c0_288] : memref<1x256xf32, #tpu.memory_space<vmem>>, vector<1x256xf32>
    %224 = vector.broadcast %223 : vector<1x256xf32> to vector<16x256xf32>
    %225 = arith.addf %222, %224 : vector<16x256xf32>
    %cst_289 = arith.constant 0.000000e+00 : f32
    %226 = vector.broadcast %cst_289 : f32 to vector<16x256xf32>
    %227 = arith.maximumf %225, %226 : vector<16x256xf32>
    %228 = arith.truncf %227 : vector<16x256xf32> to vector<16x256xbf16>
    %c0_290 = arith.constant 0 : index
    %c0_291 = arith.constant 0 : index
    %c0_292 = arith.constant 0 : index
    %229 = vector.load %arg4[%c0_290, %c0_291, %c0_292] : memref<1x16x256xbf16, #tpu.memory_space<vmem>>, vector<1x16x256xbf16>
    %230 = vector.shape_cast %229 : vector<1x16x256xbf16> to vector<16x256xbf16>
    %231 = vector.shape_cast %228 : vector<16x256xbf16> to vector<1x16x256xbf16>
    tpu.vector_store %arg4[%c0_290, %c0_291, %c0_292], %231 {strides = array<i32>} : memref<1x16x256xbf16, #tpu.memory_space<vmem>>, vector<1x16x256xbf16>,
    return
  }
  func.func @transform_0(%arg0: i32) -> (i32, i32, i32, i32) {
    %c0_i32 = arith.constant 0 : i32
    %c0_i32_0 = arith.constant 0 : i32
    %c0_i32_1 = arith.constant 0 : i32
    %c0_i32_2 = arith.constant 0 : i32
    return %arg0, %c0_i32, %c0_i32_0, %c0_i32_1 : i32, i32, i32, i32
  }
  func.func @transform_1(%arg0: i32) -> (i32, i32, i32) {
    %c0_i32 = arith.constant 0 : i32
    %c0_i32_0 = arith.constant 0 : i32
    %c0_i32_1 = arith.constant 0 : i32
    %c0_i32_2 = arith.constant 0 : i32
    return %c0_i32, %c0_i32_0, %c0_i32_1 : i32, i32, i32
  }
  func.func @transform_2(%arg0: i32) -> (i32, i32) {
    %c0_i32 = arith.constant 0 : i32
    %c0_i32_0 = arith.constant 0 : i32
    %c0_i32_1 = arith.constant 0 : i32
    return %c0_i32, %c0_i32_0 : i32, i32
  }
  func.func @transform_3(%arg0: i32) -> (i32, i32, i32) {
    %c0_i32 = arith.constant 0 : i32
    %c0_i32_0 = arith.constant 0 : i32
    %c0_i32_1 = arith.constant 0 : i32
    return %arg0, %c0_i32, %c0_i32_0 : i32, i32, i32
  }
}

module attributes {stable_mosaic.version = 11 : i64} {
  func.func @_mlp_kernel(%arg0: i32, %arg1: memref<2x2048xbf16, #tpu.memory_space<vmem>>, %arg2: memref<2048x256xbf16, #tpu.memory_space<vmem>>, %arg3: memref<1x256xf32, #tpu.memory_space<vmem>>, %arg4: memref<256x128xbf16, #tpu.memory_space<vmem>>, %arg5: memref<1x128xf32, #tpu.memory_space<vmem>>, %arg6: memref<2x128xf32, #tpu.memory_space<vmem>>) attributes {dimension_semantics = [#tpu.dimension_semantics<parallel>], iteration_bounds = array<i64: 1>, scalar_prefetch = 0 : i64, scratch_operands = 0 : i64, tpu.core_type = #tpu.core_type<tc>, window_params = [{transform_indices = @transform_0, window_bounds = array<i64: 2, 2048>}, {pipeline_mode = #tpu.pipeline_mode<synchronous>, transform_indices = @transform_1, window_bounds = array<i64: 2048, 256>}, {pipeline_mode = #tpu.pipeline_mode<synchronous>, transform_indices = @transform_2, window_bounds = array<i64: 1, 256>}, {pipeline_mode = #tpu.pipeline_mode<synchronous>, transform_indices = @transform_3, window_bounds = array<i64: 256, 128>}, {pipeline_mode = #tpu.pipeline_mode<synchronous>, transform_indices = @transform_4, window_bounds = array<i64: 1, 128>}, {transform_indices = @transform_5, window_bounds = array<i64: 2, 128>}]} {
    %c0 = arith.constant 0 : index
    %c0_0 = arith.constant 0 : index
    %0 = vector.load %arg1[%c0, %c0_0] : memref<2x2048xbf16, #tpu.memory_space<vmem>>, vector<2x2048xbf16>
    %c0_1 = arith.constant 0 : index
    %c0_2 = arith.constant 0 : index
    %1 = vector.load %arg2[%c0_1, %c0_2] : memref<2048x256xbf16, #tpu.memory_space<vmem>>, vector<2048x256xbf16>
    %cst = arith.constant dense<0.000000e+00> : vector<2x256xf32>
    %2 = tpu.matmul %0, %1, %cst {dimension_numbers = #tpu.dot_dimension_numbers<[1], [0], [0], [1], [0, 0, 1, 1], [], []>} : vector<2x2048xbf16>, vector<2048x256xbf16>, vector<2x256xf32> -> vector<2x256xf32>
    %c0_3 = arith.constant 0 : index
    %c0_4 = arith.constant 0 : index
    %3 = vector.load %arg3[%c0_3, %c0_4] : memref<1x256xf32, #tpu.memory_space<vmem>>, vector<1x256xf32>
    %4 = vector.broadcast %3 : vector<1x256xf32> to vector<2x256xf32>
    %5 = arith.addf %2, %4 : vector<2x256xf32>
    %cst_5 = arith.constant 0.000000e+00 : f32
    %6 = vector.broadcast %cst_5 : f32 to vector<2x256xf32>
    %7 = arith.maximumf %5, %6 : vector<2x256xf32>
    %8 = arith.truncf %7 : vector<2x256xf32> to vector<2x256xbf16>
    %c0_6 = arith.constant 0 : index
    %c0_7 = arith.constant 0 : index
    %9 = vector.load %arg4[%c0_6, %c0_7] : memref<256x128xbf16, #tpu.memory_space<vmem>>, vector<256x128xbf16>
    %cst_8 = arith.constant dense<0.000000e+00> : vector<2x128xf32>
    %10 = tpu.matmul %8, %9, %cst_8 {dimension_numbers = #tpu.dot_dimension_numbers<[1], [0], [0], [1], [0, 0, 1, 1], [], []>} : vector<2x256xbf16>, vector<256x128xbf16>, vector<2x128xf32> -> vector<2x128xf32>
    %c0_9 = arith.constant 0 : index
    %c0_10 = arith.constant 0 : index
    %11 = vector.load %arg5[%c0_9, %c0_10] : memref<1x128xf32, #tpu.memory_space<vmem>>, vector<1x128xf32>
    %12 = vector.broadcast %11 : vector<1x128xf32> to vector<2x128xf32>
    %13 = arith.addf %10, %12 : vector<2x128xf32>
    %c0_11 = arith.constant 0 : index
    %c0_12 = arith.constant 0 : index
    %14 = vector.load %arg6[%c0_11, %c0_12] : memref<2x128xf32, #tpu.memory_space<vmem>>, vector<2x128xf32>
    tpu.vector_store %arg6[%c0_11, %c0_12], %13 {strides = array<i32>} : memref<2x128xf32, #tpu.memory_space<vmem>>, vector<2x128xf32>,
    return
  }
  func.func @transform_0(%arg0: i32) -> (i32, i32) {
    %c0_i32 = arith.constant 0 : i32
    %c0_i32_0 = arith.constant 0 : i32
    return %arg0, %c0_i32 : i32, i32
  }
  func.func @transform_1(%arg0: i32) -> (i32, i32) {
    %c0_i32 = arith.constant 0 : i32
    %c0_i32_0 = arith.constant 0 : i32
    %c0_i32_1 = arith.constant 0 : i32
    return %c0_i32, %c0_i32_0 : i32, i32
  }
  func.func @transform_2(%arg0: i32) -> (i32, i32) {
    %c0_i32 = arith.constant 0 : i32
    %c0_i32_0 = arith.constant 0 : i32
    %c0_i32_1 = arith.constant 0 : i32
    return %c0_i32, %c0_i32_0 : i32, i32
  }
  func.func @transform_3(%arg0: i32) -> (i32, i32) {
    %c0_i32 = arith.constant 0 : i32
    %c0_i32_0 = arith.constant 0 : i32
    %c0_i32_1 = arith.constant 0 : i32
    return %c0_i32, %c0_i32_0 : i32, i32
  }
  func.func @transform_4(%arg0: i32) -> (i32, i32) {
    %c0_i32 = arith.constant 0 : i32
    %c0_i32_0 = arith.constant 0 : i32
    %c0_i32_1 = arith.constant 0 : i32
    return %c0_i32, %c0_i32_0 : i32, i32
  }
  func.func @transform_5(%arg0: i32) -> (i32, i32) {
    %c0_i32 = arith.constant 0 : i32
    %c0_i32_0 = arith.constant 0 : i32
    return %arg0, %c0_i32 : i32, i32
  }
}

</mosaic_0001>

<bundles_post_ra>
// kernel: simple_cnn_forward.3
= control target key start
LH: loop header
LB: loop body
LE: loop exit
PB: predicated region body
PF: predicated region fallthrough
CT: control target
= control target key end

     0   :  { %v5499_v1 = vmov 0   ;;  %vm77_vm0 = vcmask 392192   ;;  %s6453_s1 = inlined_call_operand.vmem [shape: bf16[9,48,256], index: 1, kind: input, shape index: {}]   ;;  %s6454_s0 = inlined_call_operand.vmem [shape: bf16[1,16,32,48], index: 0, kind: input, shape index: {}]   ;;  %s6455_s2 = inlined_call_operand.vmem [shape: f32[1,256], index: 2, kind: input, shape index: {}]   ;;  %s6456_s3 = inlined_call_operand.vmem [shape: bf16[1,32,256], index: 3, kind: output, shape index: {}]  }
   0x1   :  { %v5523_v0 = vld [vmem:[%s6453_s1 + $0x34] ss:$8 sps:$4 sm:$0xff]   ;;  %116 = vmatprep.mubr.bf16.mxu0 %v5499_v1  ;;  %1175 = vmatprep.mubr.bf16.mxu1 %v5499_v1  ;;  %v5530_v2 = vld [vmem:[%s6453_s1 + $0x30] ss:$8 sps:$4 sm:$0xff]   ;;  %v5537_v3 = vld [vmem:[%s6453_s1 + $0x44] ss:$8 sps:$4 sm:$0xff]  }
   0x2   :  { %84 = vmatprep.subr.bf16.mxu0 %v5523_v0  ;;  %1143 = vmatprep.subr.bf16.mxu1 %v5523_v0  ;;  %v5544_v4 = vld [vmem:[%s6453_s1 + $0x40] ss:$8 sps:$4 sm:$0xff]   ;;  %v5551_v5 = vld [vmem:[%s6453_s1 + $0x54] ss:$8 sps:$4 sm:$0xff]   ;;  %v5558_v6 = vld [vmem:[%s6453_s1 + $0x50] ss:$8 sps:$4 sm:$0xff]  }
   0x3   :  { %85 = vmatpush1.bf16.msra.mxu0 %v5530_v2  ;;  %1144 = vmatpush1.bf16.msra.mxu1 %v5530_v2  ;;  %v5565_v7 = vld [vmem:[%s6453_s1 + $0x4] ss:$8 sps:$4 sm:$0xff]   ;;  %v5305_v9 = vld [vmem:[%s6454_s0 + $0x10] sm:$0xff]   ;;  %v5578_v10 = vld [vmem:[%s6453_s1] ss:$8 sps:$4 sm:$0xff]  }
   0x4   :  { %86 = vmatprep.subr.bf16.mxu0 %v5537_v3  ;;  %1145 = vmatprep.subr.bf16.mxu1 %v5537_v3  ;;  %v5301_v8 = vld [vmem:[%s6454_s0 + $0x40] sm:$0xff]   ;;  %v5585_v11 = vld [vmem:[%s6453_s1 + $0x14] ss:$8 sps:$4 sm:$0xff]   ;;  %v5594_v12 = vld [vmem:[%s6453_s1 + $0x10] ss:$8 sps:$4 sm:$0xff]  }
   0x5   :  { %v5601_v13 = vld [vmem:[%s6453_s1 + $0x24] ss:$8 sps:$4 sm:$0xff]   ;;  %v5310_v15 = vld [vmem:[%s6454_s0 + $0x18] sm:$0xff]   ;;  %v5616_v16 = vld [vmem:[%s6453_s1 + $0x20] ss:$8 sps:$4 sm:$0xff]  }
   0x6   :  { %v5309_v14 = vld [vmem:[%s6454_s0 + $0x48] sm:$0xff]   ;;  %v5314_v18 = vld [vmem:[%s6454_s0] sm:$0xff]   ;;  %v5647_v21 = vld [vmem:[%s6453_s1 + $0x74] ss:$8 sps:$4 sm:$0xff]  }
   0x7   :  { %87 = vmatpush1.bf16.msra.mxu0 %v5544_v4  ;;  %1146 = vmatpush1.bf16.msra.mxu1 %v5544_v4  ;;  %v5623_v17 = vld [vmem:[%s6453_s1 + $0x64] ss:$8 sps:$4 sm:$0xff]   ;;  %v5642_v20 = vld [vmem:[%s6453_s1 + $0x60] ss:$8 sps:$4 sm:$0xff]   ;;  %v5656_v22 = vld [vmem:[%s6453_s1 + $0x70] ss:$8 sps:$4 sm:$0xff]  }
   0x8   :  { %88 = vmatprep.subr.bf16.mxu0 %v5551_v5  ;;  %1147 = vmatprep.subr.bf16.mxu1 %v5551_v5  ;;  %v5318_v19 = vld [vmem:[%s6454_s0 + $0x40] sm:$0xff]   ;;  %v5322_v24 = vld [vmem:[%s6454_s0 + $0x8] sm:$0xff]   ;;  %v5685_v27 = vld [vmem:[%s6453_s1 + $0x94] ss:$8 sps:$4 sm:$0xff]  }
   0x9   :  { %v5663_v23 = vld [vmem:[%s6453_s1 + $0x84] ss:$8 sps:$4 sm:$0xff]   ;;  %v5678_v26 = vld [vmem:[%s6453_s1 + $0x80] ss:$8 sps:$4 sm:$0xff]   ;;  %v5327_v28 = vld [vmem:[%s6454_s0 + $0x10] sm:$0xff]  }
   0xa   :  { %v5323_v25 = vld [vmem:[%s6454_s0 + $0x48] sm:$0xff]   ;;  %v5331_v29 = vld [vmem:[%s6454_s0 + $0x50] sm:$0xff]   ;;  %v5335_v34 = vld [vmem:[%s6454_s0 + $0x18] sm:$0xff]  }
   0xb   :  { %89 = vmatpush1.bf16.msra.mxu0 %v5558_v6  ;;  %1148 = vmatpush1.bf16.msra.mxu1 %v5558_v6  ;;  %v5704_v30 = vld [vmem:[%s6453_s1 + $0x90] ss:$8 sps:$4 sm:$0xff]   ;;  %v5709_v31 = vld [vmem:[%s6453_s1 + $0xa4] ss:$8 sps:$4 sm:$0xff]   ;;  %v5718_v32 = vld [vmem:[%s6453_s1 + $0xa0] ss:$8 sps:$4 sm:$0xff]  }
   0xc   :  { %183 = vmatprep.subr.bf16.mxu0 %v5565_v7  ;;  %1242 = vmatprep.subr.bf16.mxu1 %v5565_v7  ;;  %v5725_v33 = vld [vmem:[%s6453_s1 + $0xb4] ss:$8 sps:$4 sm:$0xff]   ;;  %v5740_v36 = vld [vmem:[%s6453_s1 + $0xb0] ss:$8 sps:$4 sm:$0xff]   ;;  %v5747_v37 = vld [vmem:[%s6453_s1 + $0xc4] ss:$8 sps:$4 sm:$0xff]  }
   0xd   :  { %v5336_v35 = vld [vmem:[%s6454_s0 + $0x58] sm:$0xff]   ;;  %v5340_v38 = vld [vmem:[%s6454_s0 + $0x80] sm:$0xff]   ;;  %v5348_v44 = vld [vmem:[%s6454_s0 + $0x88] sm:$0xff]  }
   0xe   :  { %4353 = vmatmul.mubr.msk.bf16.vlgmr.msra.gmra.mrb[0].mxu0 %vm77_vm0, %v5301_v8  ;;  %4527 = vmatmul.mubr.msk.bf16.vlgmr.msra.gmra.mrb[0].mxu1 %vm77_vm0, %v5305_v9  ;;  %v5344_v39 = vld [vmem:[%s6454_s0 + $0xc0] sm:$0xff]   ;;  %v5771_v41 = vld [vmem:[%s6453_s1 + $0xd4] ss:$8 sps:$4 sm:$0xff]   ;;  %v5780_v42 = vld [vmem:[%s6453_s1 + $0xd0] ss:$8 sps:$4 sm:$0xff]  }
   0xf   :  { %184 = vmatpush1.bf16.msra.mxu0 %v5578_v10  ;;  %1243 = vmatpush1.bf16.msra.mxu1 %v5578_v10  ;;  %v5766_v40 = vld [vmem:[%s6453_s1 + $0xc0] ss:$8 sps:$4 sm:$0xff]   ;;  %v5787_v43 = vld [vmem:[%s6453_s1 + $0xe4] ss:$8 sps:$4 sm:$0xff]   ;;  %v5809_v47 = vld [vmem:[%s6453_s1 + $0xf4] ss:$8 sps:$4 sm:$0xff]  }
  0x10   :  { %185 = vmatprep.subr.bf16.mxu0 %v5585_v11  ;;  %126 = vmatprep.mubr.bf16.mxu0 %v5499_v1  ;;  %v5349_v45 = vld [vmem:[%s6454_s0 + $0xc8] sm:$0xff]   ;;  %v5353_v48 = vld [vmem:[%s6454_s0 + $0xc0] sm:$0xff]   ;;  %v5357_v49 = vld [vmem:[%s6454_s0 + $0x90] sm:$0xff]  }
  0x11   :  { %1185 = vmatprep.mubr.bf16.mxu1 %v5499_v1  ;;  %1244 = vmatprep.subr.bf16.mxu1 %v5585_v11  ;;  %v5802_v46 = vld [vmem:[%s6453_s1 + $0xe0] ss:$8 sps:$4 sm:$0xff]   ;;  %v5828_v50 = vld [vmem:[%s6453_s1 + $0xf0] ss:$8 sps:$4 sm:$0xff]   ;;  %v5833_v51 = vld [vmem:[%s6453_s1 + $0x104] ss:$8 sps:$4 sm:$0xff]  }
  0x12   :  { %v5842_v52 = vld [vmem:[%s6453_s1 + $0x100] ss:$8 sps:$4 sm:$0xff]   ;;  %v5849_v53 = vld [vmem:[%s6453_s1 + $0x114] ss:$8 sps:$4 sm:$0xff]   ;;  %v5864_v56 = vld [vmem:[%s6453_s1 + $0x110] ss:$8 sps:$4 sm:$0xff]  }
  0x13   :  { %186 = vmatpush1.bf16.msra.mxu0 %v5594_v12  ;;  %1245 = vmatpush1.bf16.msra.mxu1 %v5594_v12  ;;  %v5361_v54 = vld [vmem:[%s6454_s0 + $0xc8] sm:$0xff]   ;;  %v5362_v55 = vld [vmem:[%s6454_s0 + $0x98] sm:$0xff]   ;;  %v5366_v58 = vld [vmem:[%s6454_s0 + $0x90] sm:$0xff]  }
  0x14   :  { %187 = vmatprep.subr.bf16.mxu0 %v5601_v13  ;;  %1246 = vmatprep.subr.bf16.mxu1 %v5601_v13  ;;  %v5871_v57 = vld [vmem:[%s6453_s1 + $0x124] ss:$8 sps:$4 sm:$0xff]   ;;  %v5370_v59 = vld [vmem:[%s6454_s0 + $0xd0] sm:$0xff]   ;;  %v5890_v60 = vld [vmem:[%s6453_s1 + $0x120] ss:$8 sps:$4 sm:$0xff]  }
  0x15   :  { %v5895_v61 = vld [vmem:[%s6453_s1 + $0x134] ss:$8 sps:$4 sm:$0xff]   ;;  %v5904_v62 = vld [vmem:[%s6453_s1 + $0x130] ss:$8 sps:$4 sm:$0xff]   ;;  %v5911_v63 = vld [vmem:[%s6453_s1 + $0x144] ss:$8 sps:$4 sm:$0xff]  }
  0x16   :  { %4354 = vmatmul.mubr.msk.bf16.gmra.mrb[4].mxu0 %vm77_vm0, %v5309_v14  ;;  %4528 = vmatmul.mubr.msk.bf16.gmra.mrb[4].mxu1 %vm77_vm0, %v5310_v15  ;;  %v5374_v8 = vld [vmem:[%s6454_s0 + $0x98] sm:$0xff]   ;;  %v5926_v14 = vld [vmem:[%s6453_s1 + $0x140] ss:$8 sps:$4 sm:$0xff]  }
  0x17   :  { %188 = vmatpush1.bf16.msra.mxu0 %v5616_v16  ;;  %1247 = vmatpush1.bf16.msra.mxu1 %v5616_v16  ;;  %v5375_v9 = vld [vmem:[%s6454_s0 + $0xd8] sm:$0xff]  }
  0x18   :  { %215 = vmatprep.mubr.bf16.mxu0 %v5499_v1  ;;  %1274 = vmatprep.mubr.bf16.mxu1 %v5499_v1  ;;  %v5933_v15 = vld [vmem:[%s6453_s1 + $0x154] ss:$8 sps:$4 sm:$0xff]  }
  0x19   :  { %294 = vmatprep.subr.bf16.mxu0 %v5623_v17  ;;  %1352 = vmatprep.subr.bf16.mxu1 %v5623_v17 }
  0x1e   :  { %4363 = vmatmul.mubr.msk.bf16.vlgmr.msra.gmra.mrb[0].mxu0 %vm77_vm0, %v5314_v18  ;;  %4537 = vmatmul.mubr.msk.bf16.vlgmr.msra.gmra.mrb[0].mxu1 %vm77_vm0, %v5318_v19  ;;  %v5379_v18 = vld [vmem:[%s6454_s0 + $0x20] sm:$0xff]  }
  0x1f   :  { %295 = vmatpush1.bf16.msra.mxu0 %v5642_v20  ;;  %1353 = vmatpush1.bf16.msra.mxu1 %v5642_v20  ;;  %v5383_v19 = vld [vmem:[%s6454_s0 + $0x60] sm:$0xff]  }
  0x20   :  { %296 = vmatprep.subr.bf16.mxu0 %v5647_v21  ;;  %225 = vmatprep.mubr.bf16.mxu0 %v5499_v1 }
  0x21   :  { %1284 = vmatprep.mubr.bf16.mxu1 %v5499_v1  ;;  %1354 = vmatprep.subr.bf16.mxu1 %v5647_v21 }
  0x23   :  { %297 = vmatpush1.bf16.msra.mxu0 %v5656_v22  ;;  %1355 = vmatpush1.bf16.msra.mxu1 %v5656_v22 }
  0x24   :  { %298 = vmatprep.subr.bf16.mxu0 %v5663_v23  ;;  %1356 = vmatprep.subr.bf16.mxu1 %v5663_v23 }
  0x26   :  { %4364 = vmatmul.mubr.msk.bf16.gmra.mrb[4].mxu0 %vm77_vm0, %v5322_v24  ;;  %4538 = vmatmul.mubr.msk.bf16.gmra.mrb[4].mxu1 %vm77_vm0, %v5323_v25  ;;  %v5952_v24 = vld [vmem:[%s6453_s1 + $0x150] ss:$8 sps:$4 sm:$0xff]   ;;  %v5957_v25 = vld [vmem:[%s6453_s1 + $0x164] ss:$8 sps:$4 sm:$0xff]  }
  0x27   :  { %299 = vmatpush1.bf16.msra.mxu0 %v5678_v26  ;;  %1357 = vmatpush1.bf16.msra.mxu1 %v5678_v26 }
  0x28   :  { %326 = vmatprep.mubr.bf16.mxu0 %v5499_v1  ;;  %1384 = vmatprep.mubr.bf16.mxu1 %v5499_v1 }
  0x29   :  { %413 = vmatprep.subr.bf16.mxu0 %v5685_v27  ;;  %1469 = vmatprep.subr.bf16.mxu1 %v5685_v27 }
  0x2e   :  { %4383 = vmatmul.mubr.msk.bf16.vlgmr.msra.gmra.mrb[0].mxu0 %vm77_vm0, %v5327_v28  ;;  %4557 = vmatmul.mubr.msk.bf16.vlgmr.msra.gmra.mrb[0].mxu1 %vm77_vm0, %v5331_v29  ;;  %v5966_v28 = vld [vmem:[%s6453_s1 + $0x160] ss:$8 sps:$4 sm:$0xff]   ;;  %v5971_v29 = vld [vmem:[%s6453_s1 + $0x174] ss:$8 sps:$4 sm:$0xff]  }
  0x2f   :  { %414 = vmatpush1.bf16.msra.mxu0 %v5704_v30  ;;  %1470 = vmatpush1.bf16.msra.mxu1 %v5704_v30 }
  0x30   :  { %415 = vmatprep.subr.bf16.mxu0 %v5709_v31  ;;  %336 = vmatprep.mubr.bf16.mxu0 %v5499_v1 }
  0x31   :  { %1394 = vmatprep.mubr.bf16.mxu1 %v5499_v1  ;;  %1471 = vmatprep.subr.bf16.mxu1 %v5709_v31 }
  0x33   :  { %416 = vmatpush1.bf16.msra.mxu0 %v5718_v32  ;;  %1472 = vmatpush1.bf16.msra.mxu1 %v5718_v32 }
  0x34   :  { %417 = vmatprep.subr.bf16.mxu0 %v5725_v33  ;;  %1473 = vmatprep.subr.bf16.mxu1 %v5725_v33 }
  0x36   :  { %4384 = vmatmul.mubr.msk.bf16.gmra.mrb[4].mxu0 %vm77_vm0, %v5335_v34  ;;  %4558 = vmatmul.mubr.msk.bf16.gmra.mrb[4].mxu1 %vm77_vm0, %v5336_v35  ;;  %v5387_v34 = vld [vmem:[%s6454_s0 + $0x28] sm:$0xff]  }
  0x37   :  { %418 = vmatpush1.bf16.msra.mxu0 %v5740_v36  ;;  %1474 = vmatpush1.bf16.msra.mxu1 %v5740_v36  ;;  %v5388_v35 = vld [vmem:[%s6454_s0 + $0x68] sm:$0xff]  }
  0x38   :  { %445 = vmatprep.mubr.bf16.mxu0 %v5499_v1  ;;  %1501 = vmatprep.mubr.bf16.mxu1 %v5499_v1 }
  0x39   :  { %532 = vmatprep.subr.bf16.mxu0 %v5747_v37  ;;  %1586 = vmatprep.subr.bf16.mxu1 %v5747_v37 }
  0x3e   :  { %4403 = vmatmul.mubr.msk.bf16.vlgmr.msra.gmra.mrb[0].mxu0 %vm77_vm0, %v5340_v38  ;;  %4577 = vmatmul.mubr.msk.bf16.vlgmr.msra.gmra.mrb[0].mxu1 %vm77_vm0, %v5344_v39  ;;  %v5988_v38 = vld [vmem:[%s6453_s1 + $0x170] ss:$8 sps:$4 sm:$0xff]   ;;  %v5995_v39 = vld [vmem:[%s6453_s1 + $0x184] ss:$8 sps:$4 sm:$0xff]  }
  0x3f   :  { %533 = vmatpush1.bf16.msra.mxu0 %v5766_v40  ;;  %1587 = vmatpush1.bf16.msra.mxu1 %v5766_v40 }
  0x40   :  { %534 = vmatprep.subr.bf16.mxu0 %v5771_v41  ;;  %455 = vmatprep.mubr.bf16.mxu0 %v5499_v1 }
  0x41   :  { %1511 = vmatprep.mubr.bf16.mxu1 %v5499_v1  ;;  %1588 = vmatprep.subr.bf16.mxu1 %v5771_v41 }
  0x43   :  { %535 = vmatpush1.bf16.msra.mxu0 %v5780_v42  ;;  %1589 = vmatpush1.bf16.msra.mxu1 %v5780_v42 }
  0x44   :  { %536 = vmatprep.subr.bf16.mxu0 %v5787_v43  ;;  %1590 = vmatprep.subr.bf16.mxu1 %v5787_v43 }
  0x46   :  { %4404 = vmatmul.mubr.msk.bf16.gmra.mrb[4].mxu0 %vm77_vm0, %v5348_v44  ;;  %4578 = vmatmul.mubr.msk.bf16.gmra.mrb[4].mxu1 %vm77_vm0, %v5349_v45  ;;  %v5392_v44 = vld [vmem:[%s6454_s0 + $0x60] sm:$0xff]   ;;  %v5396_v45 = vld [vmem:[%s6454_s0 + $0x30] sm:$0xff]  }
  0x47   :  { %537 = vmatpush1.bf16.msra.mxu0 %v5802_v46  ;;  %1591 = vmatpush1.bf16.msra.mxu1 %v5802_v46 }
  0x48   :  { %564 = vmatprep.mubr.bf16.mxu0 %v5499_v1  ;;  %1618 = vmatprep.mubr.bf16.mxu1 %v5499_v1 }
  0x49   :  { %651 = vmatprep.subr.bf16.mxu0 %v5809_v47  ;;  %1704 = vmatprep.subr.bf16.mxu1 %v5809_v47 }
  0x4e   :  { %4423 = vmatmul.mubr.msk.bf16.vlgmr.msra.gmra.mrb[0].mxu0 %vm77_vm0, %v5353_v48  ;;  %4597 = vmatmul.mubr.msk.bf16.vlgmr.msra.gmra.mrb[0].mxu1 %vm77_vm0, %v5357_v49  ;;  %v6012_v48 = vld [vmem:[%s6453_s1 + $0x180] ss:$8 sps:$4 sm:$0xff]   ;;  %v6019_v49 = vld [vmem:[%s6453_s1 + $0x194] ss:$8 sps:$4 sm:$0xff]  }
  0x4f   :  { %652 = vmatpush1.bf16.msra.mxu0 %v5828_v50  ;;  %1705 = vmatpush1.bf16.msra.mxu1 %v5828_v50 }
  0x50   :  { %653 = vmatprep.subr.bf16.mxu0 %v5833_v51  ;;  %574 = vmatprep.mubr.bf16.mxu0 %v5499_v1 }
  0x51   :  { %1628 = vmatprep.mubr.bf16.mxu1 %v5499_v1  ;;  %1706 = vmatprep.subr.bf16.mxu1 %v5833_v51 }
  0x53   :  { %654 = vmatpush1.bf16.msra.mxu0 %v5842_v52  ;;  %1707 = vmatpush1.bf16.msra.mxu1 %v5842_v52 }
  0x54   :  { %655 = vmatprep.subr.bf16.mxu0 %v5849_v53  ;;  %1708 = vmatprep.subr.bf16.mxu1 %v5849_v53 }
  0x56   :  { %4424 = vmatmul.mubr.msk.bf16.gmra.mrb[4].mxu0 %vm77_vm0, %v5361_v54  ;;  %4598 = vmatmul.mubr.msk.bf16.gmra.mrb[4].mxu1 %vm77_vm0, %v5362_v55  ;;  %v6028_v54 = vld [vmem:[%s6453_s1 + $0x190] ss:$8 sps:$4 sm:$0xff]   ;;  %v6035_v55 = vld [vmem:[%s6453_s1 + $0x1a4] ss:$8 sps:$4 sm:$0xff]  }
  0x57   :  { %656 = vmatpush1.bf16.msra.mxu0 %v5864_v56  ;;  %1709 = vmatpush1.bf16.msra.mxu1 %v5864_v56 }
  0x58   :  { %683 = vmatprep.mubr.bf16.mxu0 %v5499_v1  ;;  %1736 = vmatprep.mubr.bf16.mxu1 %v5499_v1 }
  0x59   :  { %770 = vmatprep.subr.bf16.mxu0 %v5871_v57  ;;  %1821 = vmatprep.subr.bf16.mxu1 %v5871_v57 }
  0x5e   :  { %4443 = vmatmul.mubr.msk.bf16.vlgmr.msra.gmra.mrb[0].mxu0 %vm77_vm0, %v5366_v58  ;;  %4617 = vmatmul.mubr.msk.bf16.vlgmr.msra.gmra.mrb[0].mxu1 %vm77_vm0, %v5370_v59  ;;  %v5400_v58 = vld [vmem:[%s6454_s0 + $0x68] sm:$0xff]   ;;  %v5401_v59 = vld [vmem:[%s6454_s0 + $0x38] sm:$0xff]  }
  0x5f   :  { %771 = vmatpush1.bf16.msra.mxu0 %v5890_v60  ;;  %1822 = vmatpush1.bf16.msra.mxu1 %v5890_v60 }
  0x60   :  { %772 = vmatprep.subr.bf16.mxu0 %v5895_v61  ;;  %693 = vmatprep.mubr.bf16.mxu0 %v5499_v1 }
  0x61   :  { %1746 = vmatprep.mubr.bf16.mxu1 %v5499_v1  ;;  %1823 = vmatprep.subr.bf16.mxu1 %v5895_v61 }
  0x63   :  { %773 = vmatpush1.bf16.msra.mxu0 %v5904_v62  ;;  %1824 = vmatpush1.bf16.msra.mxu1 %v5904_v62 }
  0x64   :  { %774 = vmatprep.subr.bf16.mxu0 %v5911_v63  ;;  %1825 = vmatprep.subr.bf16.mxu1 %v5911_v63 }
  0x66   :  { %4444 = vmatmul.mubr.msk.bf16.gmra.mrb[4].mxu0 %vm77_vm0, %v5374_v8  ;;  %4618 = vmatmul.mubr.msk.bf16.gmra.mrb[4].mxu1 %vm77_vm0, %v5375_v9  ;;  %v6050_v8 = vld [vmem:[%s6453_s1 + $0x1a0] ss:$8 sps:$4 sm:$0xff]   ;;  %v5405_v9 = vld [vmem:[%s6454_s0 + $0x30] sm:$0xff]  }
  0x67   :  { %775 = vmatpush1.bf16.msra.mxu0 %v5926_v14  ;;  %1826 = vmatpush1.bf16.msra.mxu1 %v5926_v14 }
  0x68   :  { %802 = vmatprep.mubr.bf16.mxu0 %v5499_v1  ;;  %1853 = vmatprep.mubr.bf16.mxu1 %v5499_v1 }
  0x69   :  { %889 = vmatprep.subr.bf16.mxu0 %v5933_v15  ;;  %1938 = vmatprep.subr.bf16.mxu1 %v5933_v15 }
  0x6e   :  { %4463 = vmatmul.mubr.msk.bf16.vlgmr.msra.gmra.mrb[0].mxu0 %vm77_vm0, %v5379_v18  ;;  %4637 = vmatmul.mubr.msk.bf16.vlgmr.msra.gmra.mrb[0].mxu1 %vm77_vm0, %v5383_v19  ;;  %v5406_v18 = vld [vmem:[%s6454_s0 + $0x70] sm:$0xff]   ;;  %v5411_v19 = vld [vmem:[%s6453_s1 + $0x44] ss:$8 sps:$4 sm:$0xff]  }
  0x6f   :  { %890 = vmatpush1.bf16.msra.mxu0 %v5952_v24  ;;  %1939 = vmatpush1.bf16.msra.mxu1 %v5952_v24 }
  0x70   :  { %891 = vmatprep.subr.bf16.mxu0 %v5957_v25  ;;  %812 = vmatprep.mubr.bf16.mxu0 %v5499_v1 }
  0x71   :  { %1863 = vmatprep.mubr.bf16.mxu1 %v5499_v1  ;;  %1940 = vmatprep.subr.bf16.mxu1 %v5957_v25 }
  0x73   :  { %892 = vmatpush1.bf16.msra.mxu0 %v5966_v28  ;;  %1941 = vmatpush1.bf16.msra.mxu1 %v5966_v28 }
  0x74   :  { %893 = vmatprep.subr.bf16.mxu0 %v5971_v29  ;;  %1942 = vmatprep.subr.bf16.mxu1 %v5971_v29 }
  0x76   :  { %4464 = vmatmul.mubr.msk.bf16.gmra.mrb[4].mxu0 %vm77_vm0, %v5387_v34  ;;  %4638 = vmatmul.mubr.msk.bf16.gmra.mrb[4].mxu1 %vm77_vm0, %v5388_v35  ;;  %v5414_v34 = vld [vmem:[%s6453_s1 + $0x54] ss:$8 sps:$4 sm:$0xff]  }
  0x77   :  { %894 = vmatpush1.bf16.msra.mxu0 %v5988_v38  ;;  %1943 = vmatpush1.bf16.msra.mxu1 %v5988_v38  ;;  %v5407_v35 = vld [vmem:[%s6454_s0 + $0x38] sm:$0xff]  }
  0x78   :  { %921 = vmatprep.mubr.bf16.mxu0 %v5499_v1  ;;  %1970 = vmatprep.mubr.bf16.mxu1 %v5499_v1 }
  0x79   :  { %1008 = vmatprep.subr.bf16.mxu0 %v5995_v39  ;;  %2056 = vmatprep.subr.bf16.mxu1 %v5995_v39 }
  0x7e   :  { %4483 = vmatmul.mubr.msk.bf16.vlgmr.msra.gmra.mrb[0].mxu0 %vm77_vm0, %v5392_v44  ;;  %4657 = vmatmul.mubr.msk.bf16.vlgmr.msra.gmra.mrb[0].mxu1 %vm77_vm0, %v5396_v45  ;;  %v5419_v44 = vld [vmem:[%s6453_s1 + $0x4] ss:$8 sps:$4 sm:$0xff]   ;;  %v5424_v45 = vld [vmem:[%s6453_s1 + $0x14] ss:$8 sps:$4 sm:$0xff]  }
  0x7f   :  { %1009 = vmatpush1.bf16.msra.mxu0 %v6012_v48  ;;  %2057 = vmatpush1.bf16.msra.mxu1 %v6012_v48 }
  0x80   :  { %1010 = vmatprep.subr.bf16.mxu0 %v6019_v49  ;;  %931 = vmatprep.mubr.bf16.mxu0 %v5499_v1 }
  0x81   :  { %1980 = vmatprep.mubr.bf16.mxu1 %v5499_v1  ;;  %2058 = vmatprep.subr.bf16.mxu1 %v6019_v49 }
  0x83   :  { %1011 = vmatpush1.bf16.msra.mxu0 %v6028_v54  ;;  %2059 = vmatpush1.bf16.msra.mxu1 %v6028_v54 }
  0x84   :  { %1012 = vmatprep.subr.bf16.mxu0 %v6035_v55  ;;  %2060 = vmatprep.subr.bf16.mxu1 %v6035_v55 }
  0x86   :  { %4484 = vmatmul.mubr.msk.bf16.gmra.mrb[4].mxu0 %vm77_vm0, %v5400_v58  ;;  %4658 = vmatmul.mubr.msk.bf16.gmra.mrb[4].mxu1 %vm77_vm0, %v5401_v59  ;;  %v5420_v58 = vld [vmem:[%s6454_s0 + $0xc8] sm:$0xff]  }
  0x87   :  { %1013 = vmatpush1.bf16.msra.mxu0 %v6050_v8  ;;  %2061 = vmatpush1.bf16.msra.mxu1 %v6050_v8  ;;  %v5427_v59 = vld [vmem:[%s6453_s1 + $0x60] ss:$8 sps:$4 sm:$0xff]  }
  0x88   :  { %1040 = vmatprep.mubr.bf16.mxu0 %v5499_v1  ;;  %2088 = vmatprep.mubr.bf16.mxu1 %v5499_v1 }
  0x89   :  { %2207 = vmatprep.subr.bf16.mxu0 %v5523_v0  ;;  %3271 = vmatprep.subr.bf16.mxu1 %v5523_v0  ;;  %v5409_v0 = vld [vmem:[%s6453_s1 + $0x40] ss:$8 sps:$4 sm:$0xff]  }
  0x8e   :  { %4503 = vmatmul.mubr.msk.bf16.vlgmr.msra.gmra.mrb[0].mxu0 %vm77_vm0, %v5405_v9  ;;  %4677 = vmatmul.mubr.msk.bf16.vlgmr.msra.gmra.mrb[0].mxu1 %vm77_vm0, %v5406_v18  ;;  %v5430_v9 = vld [vmem:[%s6454_s0 + $0x88] sm:$0xff]   ;;  %v5437_v18 = vld [vmem:[%s6453_s1 + $0x90] ss:$8 sps:$4 sm:$0xff]  }
  0x8f   :  { %2208 = vmatpush1.bf16.msra.mxu0 %v5530_v2  ;;  %3272 = vmatpush1.bf16.msra.mxu1 %v5530_v2  ;;  %v5408_v2 = vld [vmem:[%s6454_s0 + $0x78] sm:$0xff]  }
  0x90   :  { %2209 = vmatprep.subr.bf16.mxu0 %v5537_v3  ;;  %1050 = vmatprep.mubr.bf16.mxu0 %v5499_v1  ;;  %v5412_v3 = vld [vmem:[%s6453_s1 + $0x50] ss:$8 sps:$4 sm:$0xff]  }
  0x91   :  { %2098 = vmatprep.mubr.bf16.mxu1 %v5499_v1  ;;  %3273 = vmatprep.subr.bf16.mxu1 %v5411_v19  ;;  %v5440_v19 = vld [vmem:[%s6454_s0 + $0x98] sm:$0xff]  }
  0x93   :  { %2210 = vmatpush1.bf16.msra.mxu0 %v5544_v4  ;;  %3274 = vmatpush1.bf16.msra.mxu1 %v5409_v0  ;;  %v5415_v4 = vld [vmem:[%s6454_s0 + $0xc0] sm:$0xff]  }
  0x94   :  { %2211 = vmatprep.subr.bf16.mxu0 %v5551_v5  ;;  %3275 = vmatprep.subr.bf16.mxu1 %v5414_v34  ;;  %v5416_v5 = vld [vmem:[%s6454_s0 + $0x90] sm:$0xff]   ;;  %v5447_v0 = vld [vmem:[%s6453_s1 + $0xc0] ss:$8 sps:$4 sm:$0xff]  }
  0x95   :  { %v5450_v34 = vld [vmem:[%s6454_s0 + $0x28] sm:$0xff]  }
  0x96   :  { %4504 = vmatmul.mubr.msk.bf16.gmra.mrb[4].mxu0 %vm77_vm0, %v5407_v35  ;;  %4678 = vmatmul.mubr.msk.bf16.gmra.mrb[4].mxu1 %vm77_vm0, %v5408_v2  ;;  %v5457_v35 = vld [vmem:[%s6453_s1 + $0xf0] ss:$8 sps:$4 sm:$0xff]   ;;  %v5460_v2 = vld [vmem:[%s6454_s0 + $0x68] sm:$0xff]  }
  0x97   :  { %2212 = vmatpush1.bf16.msra.mxu0 %v5558_v6  ;;  %3276 = vmatpush1.bf16.msra.mxu1 %v5412_v3  ;;  %v5417_v6 = vld [vmem:[%s6453_s1] ss:$8 sps:$4 sm:$0xff]  }
  0x98   :  { %2239 = vmatprep.mubr.bf16.mxu0 %v5499_v1  ;;  %3303 = vmatprep.mubr.bf16.mxu1 %v5499_v1  ;;  %v5467_v3 = vld [vmem:[%s6453_s1 + $0x120] ss:$8 sps:$4 sm:$0xff]  }
  0x99   :  { %2306 = vmatprep.subr.bf16.mxu0 %v5565_v7  ;;  %3370 = vmatprep.subr.bf16.mxu1 %v5419_v44  ;;  %v5422_v7 = vld [vmem:[%s6453_s1 + $0x10] ss:$8 sps:$4 sm:$0xff]  }
  0x9a   :  { %v5470_v44 = vld [vmem:[%s6454_s0 + $0x38] sm:$0xff]  }
  0x9e   :  { %4701 = vmatmul.mubr.msk.bf16.vlgmr.msra.gmra.mrb[8].mxu0 %vm77_vm0, %v5415_v4  ;;  %4875 = vmatmul.mubr.msk.bf16.vlgmr.msra.gmra.mrb[8].mxu1 %vm77_vm0, %v5416_v5  ;;  %v5477_v4 = vld [vmem:[%s6453_s1 + $0x150] ss:$8 sps:$4 sm:$0xff]   ;;  %v5480_v5 = vld [vmem:[%s6454_s0 + $0xa8] sm:$0xff]  }
  0x9f   :  { %2307 = vmatpush1.bf16.msra.mxu0 %v5578_v10  ;;  %3371 = vmatpush1.bf16.msra.mxu1 %v5417_v6  ;;  %v5421_v10 = vld [vmem:[%s6454_s0 + $0x98] sm:$0xff]   ;;  %v5487_v6 = vld [vmem:[%s6453_s1 + $0x180] ss:$8 sps:$4 sm:$0xff]  }
  0xa0   :  { %2308 = vmatprep.subr.bf16.mxu0 %v5585_v11  ;;  %2249 = vmatprep.mubr.bf16.mxu0 %v5499_v1  ;;  %v5429_v11 = vld [vmem:[%s6453_s1 + $0x64] ss:$8 sps:$4 sm:$0xff]  }
  0xa1   :  { %3313 = vmatprep.mubr.bf16.mxu1 %v5499_v1  ;;  %3372 = vmatprep.subr.bf16.mxu1 %v5424_v45  ;;  %v5490_v45 = vld [vmem:[%s6454_s0 + $0xe8] sm:$0xff]  }
  0xa3   :  { %2309 = vmatpush1.bf16.msra.mxu0 %v5594_v12  ;;  %3373 = vmatpush1.bf16.msra.mxu1 %v5422_v7  ;;  %v5425_v12 = vld [vmem:[%s6454_s0 + $0x80] sm:$0xff]  }
  0xa4   :  { %2310 = vmatprep.subr.bf16.mxu0 %v5601_v13  ;;  %3374 = vmatprep.subr.bf16.mxu1 %v5601_v13  ;;  %v5426_v13 = vld [vmem:[%s6454_s0 + $0xc0] sm:$0xff]  }
  0xa6   :  { %4702 = vmatmul.mubr.msk.bf16.gmra.mrb[12].mxu0 %vm77_vm0, %v5420_v58  ;;  %4876 = vmatmul.mubr.msk.bf16.gmra.mrb[12].mxu1 %vm77_vm0, %v5421_v10 }
  0xa7   :  { %2311 = vmatpush1.bf16.msra.mxu0 %v5616_v16  ;;  %3375 = vmatpush1.bf16.msra.mxu1 %v5616_v16  ;;  %v5434_v16 = vld [vmem:[%s6453_s1 + $0x74] ss:$8 sps:$4 sm:$0xff]  }
  0xa8   :  { %2338 = vmatprep.mubr.bf16.mxu0 %v5499_v1  ;;  %3402 = vmatprep.mubr.bf16.mxu1 %v5499_v1 }
  0xa9   :  { %2415 = vmatprep.subr.bf16.mxu0 %v5623_v17  ;;  %3479 = vmatprep.subr.bf16.mxu1 %v5429_v11  ;;  %v5432_v17 = vld [vmem:[%s6453_s1 + $0x70] ss:$8 sps:$4 sm:$0xff]  }
  0xae   :  { %4711 = vmatmul.mubr.msk.bf16.vlgmr.msra.gmra.mrb[8].mxu0 %vm77_vm0, %v5425_v12  ;;  %4885 = vmatmul.mubr.msk.bf16.vlgmr.msra.gmra.mrb[8].mxu1 %vm77_vm0, %v5426_v13 }
  0xaf   :  { %2416 = vmatpush1.bf16.msra.mxu0 %v5642_v20  ;;  %3480 = vmatpush1.bf16.msra.mxu1 %v5427_v59  ;;  %v5431_v20 = vld [vmem:[%s6454_s0 + $0xc8] sm:$0xff]  }
  0xb0   :  { %2417 = vmatprep.subr.bf16.mxu0 %v5647_v21  ;;  %2348 = vmatprep.mubr.bf16.mxu0 %v5499_v1  ;;  %v5439_v21 = vld [vmem:[%s6453_s1 + $0x94] ss:$8 sps:$4 sm:$0xff]  }
  0xb1   :  { %3412 = vmatprep.mubr.bf16.mxu1 %v5499_v1  ;;  %3481 = vmatprep.subr.bf16.mxu1 %v5434_v16 }
  0xb3   :  { %2418 = vmatpush1.bf16.msra.mxu0 %v5656_v22  ;;  %3482 = vmatpush1.bf16.msra.mxu1 %v5432_v17  ;;  %v5435_v22 = vld [vmem:[%s6454_s0 + $0x90] sm:$0xff]  }
  0xb4   :  { %2419 = vmatprep.subr.bf16.mxu0 %v5663_v23  ;;  %3483 = vmatprep.subr.bf16.mxu1 %v5663_v23  ;;  %v5436_v23 = vld [vmem:[%s6454_s0 + $0xd0] sm:$0xff]  }
  0xb6   :  { %4712 = vmatmul.mubr.msk.bf16.gmra.mrb[12].mxu0 %vm77_vm0, %v5430_v9  ;;  %4886 = vmatmul.mubr.msk.bf16.gmra.mrb[12].mxu1 %vm77_vm0, %v5431_v20 }
  0xb7   :  { %2420 = vmatpush1.bf16.msra.mxu0 %v5678_v26  ;;  %3484 = vmatpush1.bf16.msra.mxu1 %v5678_v26  ;;  %v5444_v26 = vld [vmem:[%s6453_s1 + $0xa4] ss:$8 sps:$4 sm:$0xff]  }
  0xb8   :  { %2447 = vmatprep.mubr.bf16.mxu0 %v5499_v1  ;;  %3511 = vmatprep.mubr.bf16.mxu1 %v5499_v1 }
  0xb9   :  { %2532 = vmatprep.subr.bf16.mxu0 %v5685_v27  ;;  %3596 = vmatprep.subr.bf16.mxu1 %v5439_v21  ;;  %v5442_v27 = vld [vmem:[%s6453_s1 + $0xa0] ss:$8 sps:$4 sm:$0xff]  }
  0xbe   :  { %4731 = vmatmul.mubr.msk.bf16.vlgmr.msra.gmra.mrb[8].mxu0 %vm77_vm0, %v5435_v22  ;;  %4905 = vmatmul.mubr.msk.bf16.vlgmr.msra.gmra.mrb[8].mxu1 %vm77_vm0, %v5436_v23 }
  0xbf   :  { %2533 = vmatpush1.bf16.msra.mxu0 %v5704_v30  ;;  %3597 = vmatpush1.bf16.msra.mxu1 %v5437_v18  ;;  %v5441_v30 = vld [vmem:[%s6454_s0 + $0xd8] sm:$0xff]  }
  0xc0   :  { %2534 = vmatprep.subr.bf16.mxu0 %v5709_v31  ;;  %2457 = vmatprep.mubr.bf16.mxu0 %v5499_v1  ;;  %v5449_v31 = vld [vmem:[%s6453_s1 + $0xc4] ss:$8 sps:$4 sm:$0xff]  }
  0xc1   :  { %3521 = vmatprep.mubr.bf16.mxu1 %v5499_v1  ;;  %3598 = vmatprep.subr.bf16.mxu1 %v5444_v26 }
  0xc3   :  { %2535 = vmatpush1.bf16.msra.mxu0 %v5718_v32  ;;  %3599 = vmatpush1.bf16.msra.mxu1 %v5442_v27  ;;  %v5445_v32 = vld [vmem:[%s6454_s0 + $0x20] sm:$0xff]  }
  0xc4   :  { %2536 = vmatprep.subr.bf16.mxu0 %v5725_v33  ;;  %3600 = vmatprep.subr.bf16.mxu1 %v5725_v33  ;;  %v5446_v33 = vld [vmem:[%s6454_s0 + $0x60] sm:$0xff]  }
  0xc6   :  { %4732 = vmatmul.mubr.msk.bf16.gmra.mrb[12].mxu0 %vm77_vm0, %v5440_v19  ;;  %4906 = vmatmul.mubr.msk.bf16.gmra.mrb[12].mxu1 %vm77_vm0, %v5441_v30 }
  0xc7   :  { %2537 = vmatpush1.bf16.msra.mxu0 %v5740_v36  ;;  %3601 = vmatpush1.bf16.msra.mxu1 %v5740_v36  ;;  %v5454_v36 = vld [vmem:[%s6453_s1 + $0xd4] ss:$8 sps:$4 sm:$0xff]  }
  0xc8   :  { %2564 = vmatprep.mubr.bf16.mxu0 %v5499_v1  ;;  %3628 = vmatprep.mubr.bf16.mxu1 %v5499_v1 }
  0xc9   :  { %2649 = vmatprep.subr.bf16.mxu0 %v5747_v37  ;;  %3713 = vmatprep.subr.bf16.mxu1 %v5449_v31  ;;  %v5452_v37 = vld [vmem:[%s6453_s1 + $0xd0] ss:$8 sps:$4 sm:$0xff]  }
  0xce   :  { %4751 = vmatmul.mubr.msk.bf16.vlgmr.msra.gmra.mrb[8].mxu0 %vm77_vm0, %v5445_v32  ;;  %4925 = vmatmul.mubr.msk.bf16.vlgmr.msra.gmra.mrb[8].mxu1 %vm77_vm0, %v5446_v33 }
  0xcf   :  { %2650 = vmatpush1.bf16.msra.mxu0 %v5766_v40  ;;  %3714 = vmatpush1.bf16.msra.mxu1 %v5447_v0  ;;  %v5451_v40 = vld [vmem:[%s6454_s0 + $0x68] sm:$0xff]  }
  0xd0   :  { %2651 = vmatprep.subr.bf16.mxu0 %v5771_v41  ;;  %2574 = vmatprep.mubr.bf16.mxu0 %v5499_v1  ;;  %v5459_v41 = vld [vmem:[%s6453_s1 + $0xf4] ss:$8 sps:$4 sm:$0xff]  }
  0xd1   :  { %3638 = vmatprep.mubr.bf16.mxu1 %v5499_v1  ;;  %3715 = vmatprep.subr.bf16.mxu1 %v5454_v36  ;;  %v4277_v36 = vlaneseq }
  0xd3   :  { %2652 = vmatpush1.bf16.msra.mxu0 %v5780_v42  ;;  %3716 = vmatpush1.bf16.msra.mxu1 %v5452_v37  ;;  %v5455_v42 = vld [vmem:[%s6454_s0 + $0x60] sm:$0xff]   ;;  %v4278_v37 = vshrl.u32 %v4277_v36, 7 }
  0xd4   :  { %2653 = vmatprep.subr.bf16.mxu0 %v5787_v43  ;;  %3717 = vmatprep.subr.bf16.mxu1 %v5787_v43  ;;  %v5456_v43 = vld [vmem:[%s6454_s0 + $0x30] sm:$0xff]  }
  0xd6   :  { %4752 = vmatmul.mubr.msk.bf16.gmra.mrb[12].mxu0 %vm77_vm0, %v5450_v34  ;;  %4926 = vmatmul.mubr.msk.bf16.gmra.mrb[12].mxu1 %vm77_vm0, %v5451_v40  ;;  %v4279_v34 = vsub.s32 0, %v4278_v37  ;;  %v4275_v40 = vld [vmem:[%s6455_s2] sm:$0x3] }
  0xd7   :  { %2654 = vmatpush1.bf16.msra.mxu0 %v5802_v46  ;;  %3718 = vmatpush1.bf16.msra.mxu1 %v5802_v46  ;;  %v5464_v46 = vld [vmem:[%s6453_s1 + $0x104] ss:$8 sps:$4 sm:$0xff]  }
  0xd8   :  { %2681 = vmatprep.mubr.bf16.mxu0 %v5499_v1  ;;  %3745 = vmatprep.mubr.bf16.mxu1 %v5499_v1 }
  0xd9   :  { %2766 = vmatprep.subr.bf16.mxu0 %v5809_v47  ;;  %3830 = vmatprep.subr.bf16.mxu1 %v5459_v41  ;;  %v5462_v47 = vld [vmem:[%s6453_s1 + $0x100] ss:$8 sps:$4 sm:$0xff]   ;;  %v4283_v41 = vsub.s32 1, %v4278_v37 }
  0xde   :  { %4771 = vmatmul.mubr.msk.bf16.vlgmr.msra.gmra.mrb[8].mxu0 %vm77_vm0, %v5455_v42  ;;  %4945 = vmatmul.mubr.msk.bf16.vlgmr.msra.gmra.mrb[8].mxu1 %vm77_vm0, %v5456_v43 }
  0xdf   :  { %2767 = vmatpush1.bf16.msra.mxu0 %v5828_v50  ;;  %3831 = vmatpush1.bf16.msra.mxu1 %v5457_v35  ;;  %v5461_v50 = vld [vmem:[%s6454_s0 + $0x38] sm:$0xff]  }
  0xe0   :  { %2768 = vmatprep.subr.bf16.mxu0 %v5833_v51  ;;  %2691 = vmatprep.mubr.bf16.mxu0 %v5499_v1  ;;  %v5469_v51 = vld [vmem:[%s6453_s1 + $0x124] ss:$8 sps:$4 sm:$0xff]  }
  0xe1   :  { %3755 = vmatprep.mubr.bf16.mxu1 %v5499_v1  ;;  %3832 = vmatprep.subr.bf16.mxu1 %v5464_v46  ;;  %v4280_v46 = vrot.slane %v4275_v40, %v4279_v34 }
  0xe3   :  { %2769 = vmatpush1.bf16.msra.mxu0 %v5842_v52  ;;  %3833 = vmatpush1.bf16.msra.mxu1 %v5462_v47  ;;  %v5465_v52 = vld [vmem:[%s6454_s0 + $0x30] sm:$0xff]  }
  0xe4   :  { %2770 = vmatprep.subr.bf16.mxu0 %v5849_v53  ;;  %3834 = vmatprep.subr.bf16.mxu1 %v5849_v53  ;;  %v5466_v53 = vld [vmem:[%s6454_s0 + $0x70] sm:$0xff]  }
  0xe6   :  { %4772 = vmatmul.mubr.msk.bf16.gmra.mrb[12].mxu0 %vm77_vm0, %v5460_v2  ;;  %4946 = vmatmul.mubr.msk.bf16.gmra.mrb[12].mxu1 %vm77_vm0, %v5461_v50 }
  0xe7   :  { %2771 = vmatpush1.bf16.msra.mxu0 %v5864_v56  ;;  %3835 = vmatpush1.bf16.msra.mxu1 %v5864_v56  ;;  %v5474_v56 = vld [vmem:[%s6453_s1 + $0x134] ss:$8 sps:$4 sm:$0xff]  }
  0xe8   :  { %2798 = vmatprep.mubr.bf16.mxu0 %v5499_v1  ;;  %3862 = vmatprep.mubr.bf16.mxu1 %v5499_v1 }
  0xe9   :  { %2884 = vmatprep.subr.bf16.mxu0 %v5871_v57  ;;  %3947 = vmatprep.subr.bf16.mxu1 %v5469_v51  ;;  %v5472_v57 = vld [vmem:[%s6453_s1 + $0x130] ss:$8 sps:$4 sm:$0xff]   ;;  %v4284_v51 = vrot.slane %v4275_v40, %v4283_v41 }
  0xee   :  { %4791 = vmatmul.mubr.msk.bf16.vlgmr.msra.gmra.mrb[8].mxu0 %vm77_vm0, %v5465_v52  ;;  %4965 = vmatmul.mubr.msk.bf16.vlgmr.msra.gmra.mrb[8].mxu1 %vm77_vm0, %v5466_v53 }
  0xef   :  { %2885 = vmatpush1.bf16.msra.mxu0 %v5890_v60  ;;  %3948 = vmatpush1.bf16.msra.mxu1 %v5467_v3  ;;  %v5471_v60 = vld [vmem:[%s6454_s0 + $0x78] sm:$0xff]  }
  0xf0   :  { %2886 = vmatprep.subr.bf16.mxu0 %v5895_v61  ;;  %2808 = vmatprep.mubr.bf16.mxu0 %v5499_v1  ;;  %v5479_v61 = vld [vmem:[%s6453_s1 + $0x154] ss:$8 sps:$4 sm:$0xff]  }
  0xf1   :  { %3872 = vmatprep.mubr.bf16.mxu1 %v5499_v1  ;;  %3949 = vmatprep.subr.bf16.mxu1 %v5474_v56 }
  0xf3   :  { %2887 = vmatpush1.bf16.msra.mxu0 %v5904_v62  ;;  %3950 = vmatpush1.bf16.msra.mxu1 %v5472_v57  ;;  %v5475_v62 = vld [vmem:[%s6454_s0 + $0xa0] sm:$0xff]  }
  0xf4   :  { %2888 = vmatprep.subr.bf16.mxu0 %v5911_v63  ;;  %3951 = vmatprep.subr.bf16.mxu1 %v5911_v63  ;;  %v5476_v63 = vld [vmem:[%s6454_s0 + $0xe0] sm:$0xff]  }
  0xf6   :  { %4792 = vmatmul.mubr.msk.bf16.gmra.mrb[12].mxu0 %vm77_vm0, %v5470_v44  ;;  %4966 = vmatmul.mubr.msk.bf16.gmra.mrb[12].mxu1 %vm77_vm0, %v5471_v60 }
  0xf7   :  { %2889 = vmatpush1.bf16.msra.mxu0 %v5926_v14  ;;  %3952 = vmatpush1.bf16.msra.mxu1 %v5926_v14  ;;  %v5484_v14 = vld [vmem:[%s6453_s1 + $0x164] ss:$8 sps:$4 sm:$0xff]  }
  0xf8   :  { %2916 = vmatprep.mubr.bf16.mxu0 %v5499_v1  ;;  %3979 = vmatprep.mubr.bf16.mxu1 %v5499_v1 }
  0xf9   :  { %3002 = vmatprep.subr.bf16.mxu0 %v5933_v15  ;;  %4064 = vmatprep.subr.bf16.mxu1 %v5479_v61  ;;  %v5482_v15 = vld [vmem:[%s6453_s1 + $0x160] ss:$8 sps:$4 sm:$0xff]  }
  0xfe   :  { %4811 = vmatmul.mubr.msk.bf16.vlgmr.msra.gmra.mrb[8].mxu0 %vm77_vm0, %v5475_v62  ;;  %4985 = vmatmul.mubr.msk.bf16.vlgmr.msra.gmra.mrb[8].mxu1 %vm77_vm0, %v5476_v63 }
  0xff   :  { %3003 = vmatpush1.bf16.msra.mxu0 %v5952_v24  ;;  %4065 = vmatpush1.bf16.msra.mxu1 %v5477_v4  ;;  %v5481_v24 = vld [vmem:[%s6454_s0 + $0xe8] sm:$0xff]  }
 0x100   :  { %3004 = vmatprep.subr.bf16.mxu0 %v5957_v25  ;;  %2926 = vmatprep.mubr.bf16.mxu0 %v5499_v1  ;;  %v5489_v25 = vld [vmem:[%s6453_s1 + $0x184] ss:$8 sps:$4 sm:$0xff]  }
 0x101   :  { %3989 = vmatprep.mubr.bf16.mxu1 %v5499_v1  ;;  %4066 = vmatprep.subr.bf16.mxu1 %v5484_v14 }
 0x103   :  { %3005 = vmatpush1.bf16.msra.mxu0 %v5966_v28  ;;  %4067 = vmatpush1.bf16.msra.mxu1 %v5482_v15  ;;  %v5485_v28 = vld [vmem:[%s6454_s0 + $0xe0] sm:$0xff]  }
 0x104   :  { %3006 = vmatprep.subr.bf16.mxu0 %v5971_v29  ;;  %4068 = vmatprep.subr.bf16.mxu1 %v5971_v29  ;;  %v5486_v29 = vld [vmem:[%s6454_s0 + $0xb0] sm:$0xff]  }
 0x106   :  { %4812 = vmatmul.mubr.msk.bf16.gmra.mrb[12].mxu0 %vm77_vm0, %v5480_v5  ;;  %4986 = vmatmul.mubr.msk.bf16.gmra.mrb[12].mxu1 %vm77_vm0, %v5481_v24 }
 0x107   :  { %3007 = vmatpush1.bf16.msra.mxu0 %v5988_v38  ;;  %4069 = vmatpush1.bf16.msra.mxu1 %v5988_v38  ;;  %v5494_v38 = vld [vmem:[%s6453_s1 + $0x194] ss:$8 sps:$4 sm:$0xff]  }
 0x108   :  { %3034 = vmatprep.mubr.bf16.mxu0 %v5499_v1  ;;  %4096 = vmatprep.mubr.bf16.mxu1 %v5499_v1 }
 0x109   :  { %3120 = vmatprep.subr.bf16.mxu0 %v5995_v39  ;;  %4182 = vmatprep.subr.bf16.mxu1 %v5489_v25  ;;  %v5492_v39 = vld [vmem:[%s6453_s1 + $0x190] ss:$8 sps:$4 sm:$0xff]  }
 0x10e   :  { %4831 = vmatmul.mubr.msk.bf16.vlgmr.msra.gmra.mrb[8].mxu0 %vm77_vm0, %v5485_v28  ;;  %5005 = vmatmul.mubr.msk.bf16.vlgmr.msra.gmra.mrb[8].mxu1 %vm77_vm0, %v5486_v29 }
 0x10f   :  { %3121 = vmatpush1.bf16.msra.mxu0 %v6012_v48  ;;  %4183 = vmatpush1.bf16.msra.mxu1 %v5487_v6  ;;  %v5491_v48 = vld [vmem:[%s6454_s0 + $0xb8] sm:$0xff]  }
 0x110   :  { %3122 = vmatprep.subr.bf16.mxu0 %v6019_v49  ;;  %3044 = vmatprep.mubr.bf16.mxu0 %v5499_v1  ;;  %v5495_v49 = vld [vmem:[%s6454_s0 + $0xb0] sm:$0xff]  }
 0x111   :  { %4106 = vmatprep.mubr.bf16.mxu1 %v5499_v1  ;;  %4184 = vmatprep.subr.bf16.mxu1 %v5494_v38 }
 0x113   :  { %3123 = vmatpush1.bf16.msra.mxu0 %v6028_v54  ;;  %4185 = vmatpush1.bf16.msra.mxu1 %v5492_v39  ;;  %v5496_v54 = vld [vmem:[%s6454_s0 + $0xf0] sm:$0xff]  }
 0x114   :  { %3124 = vmatprep.subr.bf16.mxu0 %v6035_v55  ;;  %4186 = vmatprep.subr.bf16.mxu1 %v6035_v55  ;;  %v5497_v55 = vld [vmem:[%s6454_s0 + $0xb8] sm:$0xff]  }
 0x116   :  { %4832 = vmatmul.mubr.msk.bf16.gmra.mrb[12].mxu0 %vm77_vm0, %v5490_v45  ;;  %5006 = vmatmul.mubr.msk.bf16.gmra.mrb[12].mxu1 %vm77_vm0, %v5491_v48 }
 0x117   :  { %3125 = vmatpush1.bf16.msra.mxu0 %v6050_v8  ;;  %4187 = vmatpush1.bf16.msra.mxu1 %v6050_v8  ;;  %v5498_v8 = vld [vmem:[%s6454_s0 + $0xf8] sm:$0xff]  }
 0x118   :  { %3152 = vmatprep.mubr.bf16.mxu0 %v5499_v1  ;;  %4214 = vmatprep.mubr.bf16.mxu1 %v5499_v1 }
 0x11e   :  { %4851 = vmatmul.mubr.msk.bf16.vlgmr.msra.gmra.mrb[8].mxu0 %vm77_vm0, %v5495_v49  ;;  %5025 = vmatmul.mubr.msk.bf16.vlgmr.msra.gmra.mrb[8].mxu1 %vm77_vm0, %v5496_v54 }
 0x11f   :  { %3162 = vmatprep.mubr.bf16.mxu0 %v5499_v1  ;;  %4224 = vmatprep.mubr.bf16.mxu1 %v5499_v1 }
 0x126   :  { %4852 = vmatmul.mubr.msk.bf16.gmra.mrb[12].mxu0 %vm77_vm0, %v5497_v55  ;;  %5026 = vmatmul.mubr.msk.bf16.gmra.mrb[12].mxu1 %vm77_vm0, %v5498_v8 }
 0x161   :  { %v1042_v7 = vpop.f32.mrb[0].mxu0  ;;  %v2090_v58 = vpop.f32.mrb[0].mxu1 }
 0x162   :  { %v2125_v10 = vmax.f32 %v1042_v7, %v2090_v58  ;;  %v1044_v11 = vpop.f32.mrb[1].mxu0  ;;  %v2092_v12 = vpop.f32.mrb[1].mxu1 }
 0x163   :  { %v2126_v13 = vmax.f32 %v1044_v11, %v2092_v12  ;;  %v1046_v59 = vpop.f32.mrb[2].mxu0  ;;  %v2094_v1 = vpop.f32.mrb[2].mxu1 }
 0x164   :  { %v2127_v16 = vmax.f32 %v1046_v59, %v2094_v1  ;;  %v1048_v17 = vpop.f32.mrb[3].mxu0  ;;  %v2096_v9 = vpop.f32.mrb[3].mxu1 }
 0x165   :  { %v2128_v20 = vmax.f32 %v1048_v17, %v2096_v9 }
 0x169   :  { %v1052_v21 = vpop.f32.mrb[4].mxu0  ;;  %v2100_v22 = vpop.f32.mrb[4].mxu1 }
 0x16a   :  { %v2129_v23 = vmax.f32 %v1052_v21, %v2100_v22  ;;  %v1054_v18 = vpop.f32.mrb[5].mxu0  ;;  %v2102_v26 = vpop.f32.mrb[5].mxu1 }
 0x16b   :  { %v2130_v27 = vmax.f32 %v1054_v18, %v2102_v26  ;;  %v1056_v19 = vpop.f32.mrb[6].mxu0  ;;  %v2104_v30 = vpop.f32.mrb[6].mxu1 }
 0x16c   :  { %v2131_v31 = vmax.f32 %v1056_v19, %v2104_v30  ;;  %v1058_v32 = vpop.f32.mrb[7].mxu0  ;;  %v2106_v33 = vpop.f32.mrb[7].mxu1 }
 0x16d   :  { %v2132_v0 = vmax.f32 %v1058_v32, %v2106_v33 }
 0x1f1   :  { %v3154_v42 = vpop.f32.mrb[8].mxu0  ;;  %v4216_v43 = vpop.f32.mrb[8].mxu1 }
 0x1f2   :  { %v3189_v35 = vmax.f32 %v2125_v10, %v3154_v42  ;;  %v3156_v47 = vpop.f32.mrb[9].mxu0  ;;  %v4218_v2 = vpop.f32.mrb[9].mxu1 }
 0x1f3   :  { %v3190_v50 = vmax.f32 %v2126_v13, %v3156_v47  ;;  %v3158_v52 = vpop.f32.mrb[10].mxu0  ;;  %v4220_v53 = vpop.f32.mrb[10].mxu1 }
 0x1f4   :  { %v4251_v3 = vmax.f32 %v3189_v35, %v4216_v43  ;;  %v3191_v56 = vmax.f32 %v2127_v16, %v3158_v52  ;;  %v3160_v57 = vpop.f32.mrb[11].mxu0  ;;  %v4222_v44 = vpop.f32.mrb[11].mxu1 }
 0x1f5   :  { %v4252_v60 = vmax.f32 %v3190_v50, %v4218_v2  ;;  %v3192_v61 = vmax.f32 %v2128_v20, %v3160_v57 }
 0x1f6   :  { %v4287_v62 = vadd.f32 %v4280_v46, %v4251_v3  ;;  %v4253_v63 = vmax.f32 %v3191_v56, %v4220_v53 }
 0x1f7   :  { %v4288_v4 = vadd.f32 %v4284_v51, %v4252_v60  ;;  %v4254_v14 = vmax.f32 %v3192_v61, %v4222_v44 }
 0x1f8   :  { %v4295_v15 = vmax.f32 %v4287_v62, 0.0  ;;  %v4289_v5 = vadd.f32 %v4280_v46, %v4253_v63 }
 0x1f9   :  { %v4296_v24 = vmax.f32 %v4288_v4, 0.0  ;;  %v4290_v25 = vadd.f32 %v4284_v51, %v4254_v14  ;;  %v3164_v28 = vpop.f32.mrb[12].mxu0  ;;  %v4226_v29 = vpop.f32.mrb[12].mxu1 }
 0x1fa   :  { %v4297_v6 = vmax.f32 %v4289_v5, 0.0  ;;  %v3193_v38 = vmax.f32 %v2129_v23, %v3164_v28  ;;  %v3166_v39 = vpop.f32.mrb[13].mxu0  ;;  %v4228_v45 = vpop.f32.mrb[13].mxu1 }
 0x1fb   :  { %v5031_v48 = vpack.c.bf16 %v4296_v24, %v4295_v15  ;;  %v4298_v49 = vmax.f32 %v4290_v25, 0.0  ;;  %v3194_v54 = vmax.f32 %v2130_v27, %v3166_v39  ;;  %v3168_v55 = vpop.f32.mrb[14].mxu0  ;;  %v4230_v8 = vpop.f32.mrb[14].mxu1 }
 0x1fc   :  { %v4255_v7 = vmax.f32 %v3193_v38, %v4226_v29  ;;  %v3195_v58 = vmax.f32 %v2131_v31, %v3168_v55  ;;  %v3170_v10 = vpop.f32.mrb[15].mxu0  ;;  %v4232_v11 = vpop.f32.mrb[15].mxu1 }
 0x1fd   :  { %4327 = vst [vmem:[%s6456_s3] sm:$0xff] %v5031_v48  ;;  %v5032_v12 = vpack.c.bf16 %v4298_v49, %v4297_v6  ;;  %v4256_v13 = vmax.f32 %v3194_v54, %v4228_v45  ;;  %v3196_v59 = vmax.f32 %v2132_v0, %v3170_v10 }
 0x1fe   :  { %v4291_v1 = vadd.f32 %v4280_v46, %v4255_v7  ;;  %v4257_v16 = vmax.f32 %v3195_v58, %v4230_v8 }
 0x1ff   :  { %4328 = vst [vmem:[%s6456_s3 + $0x8] sm:$0xff] %v5032_v12  ;;  %v4292_v17 = vadd.f32 %v4284_v51, %v4256_v13  ;;  %v4258_v9 = vmax.f32 %v3196_v59, %v4232_v11 }
 0x200   :  { %v4299_v20 = vmax.f32 %v4291_v1, 0.0  ;;  %v4293_v21 = vadd.f32 %v4280_v46, %v4257_v16 }
 0x201   :  { %v4300_v22 = vmax.f32 %v4292_v17, 0.0  ;;  %v4294_v23 = vadd.f32 %v4284_v51, %v4258_v9 }
 0x202   :  { %v4301_v18 = vmax.f32 %v4293_v21, 0.0 }
 0x203   :  { %v5033_v26 = vpack.c.bf16 %v4300_v22, %v4299_v20  ;;  %v4302_v27 = vmax.f32 %v4294_v23, 0.0 }
 0x205   :  { %4329 = vst [vmem:[%s6456_s3 + $0x10] sm:$0xff] %v5033_v26  ;;  %v5034_v19 = vpack.c.bf16 %v4302_v27, %v4301_v18 }
 0x207   :  { %4330 = vst [vmem:[%s6456_s3 + $0x18] sm:$0xff] %v5034_v19 }

// kernel: simple_cnn_forward.5
= control target key start
LH: loop header
LB: loop body
LE: loop exit
PB: predicated region body
PF: predicated region fallthrough
CT: control target
= control target key end

     0   :  { %v282_v36 = vlaneseq  ;;  %v2961_v37 = vmov 1966171168   ;;  %s3887_s0 = inlined_call_operand.vmem [shape: bf16[2,2048], index: 0, kind: input, shape index: {}]   ;;  %s3888_s1 = inlined_call_operand.vmem [shape: bf16[2048,256], index: 1, kind: input, shape index: {}]   ;;  %s3889_s2 = inlined_call_operand.vmem [shape: f32[1,256], index: 2, kind: input, shape index: {}]   ;;  %s3890_s3 = inlined_call_operand.vmem [shape: bf16[256,128], index: 3, kind: input, shape index: {}]   ;;  %s3891_s4 = inlined_call_operand.vmem [shape: f32[1,128], index: 4, kind: input, shape index: {}]   ;;  %s3892_s5 = inlined_call_operand.hbm [shape: f32[2,128], index: 5, kind: output, shape index: {}]  }
   0x1   :  { %v2535_v0 = vld [vmem:[%s3888_s1 + $0x4] ss:$8 sps:$4 sm:$0xff]   ;;  %v2539_v2 = vld [vmem:[%s3888_s1] ss:$8 sps:$4 sm:$0xff]   ;;  %v2541_v4 = vld [vmem:[%s3888_s1 + $0x14] ss:$8 sps:$4 sm:$0xff]   ;;  %v296_v38 = vunpack.c.l.s4 %v2961_v37 }
   0x2   :  { %v2537_v1 = vld [vmem:[%s3888_s1 + $0x404] ss:$8 sps:$4 sm:$0xff]   ;;  %1688 = vmatprep.subr.bf16.mxu1 %v2535_v0  ;;  %v2540_v3 = vld [vmem:[%s3888_s1 + $0x400] ss:$8 sps:$4 sm:$0xff]   ;;  %v2543_v5 = vld [vmem:[%s3888_s1 + $0x414] ss:$8 sps:$4 sm:$0xff]  }
   0x3   :  { %1852 = vmatprep.subr.bf16.mxu0 %v2537_v1  ;;  %1689 = vmatpush1.bf16.msra.mxu1 %v2539_v2  ;;  %v2545_v6 = vld [vmem:[%s3888_s1 + $0x10] ss:$8 sps:$4 sm:$0xff]   ;;  %v2547_v8 = vld [vmem:[%s3888_s1 + $0x24] ss:$8 sps:$4 sm:$0xff]   ;;  %v2551_v10 = vld [vmem:[%s3888_s1 + $0x20] ss:$8 sps:$4 sm:$0xff]   ;;  %v297_v43 = vunpack.c.0.s8 %v296_v38 }
   0x4   :  { %1853 = vmatpush1.bf16.msra.mxu0 %v2540_v3  ;;  %1690 = vmatprep.subr.bf16.mxu1 %v2541_v4  ;;  %v2546_v7 = vld [vmem:[%s3888_s1 + $0x410] ss:$8 sps:$4 sm:$0xff]   ;;  %v2549_v9 = vld [vmem:[%s3888_s1 + $0x424] ss:$8 sps:$4 sm:$0xff]   ;;  %v2552_v11 = vld [vmem:[%s3888_s1 + $0x420] ss:$8 sps:$4 sm:$0xff]  }
   0x5   :  { %1854 = vmatprep.subr.bf16.mxu0 %v2543_v5  ;;  %v2553_v12 = vld [vmem:[%s3888_s1 + $0x34] ss:$8 sps:$4 sm:$0xff]   ;;  %v2557_v14 = vld [vmem:[%s3888_s1 + $0x30] ss:$8 sps:$4 sm:$0xff]   ;;  %v2559_v16 = vld [vmem:[%s3888_s1 + $0x44] ss:$8 sps:$4 sm:$0xff]  }
   0x6   :  { %v2555_v13 = vld [vmem:[%s3888_s1 + $0x434] ss:$8 sps:$4 sm:$0xff]   ;;  %v2558_v15 = vld [vmem:[%s3888_s1 + $0x430] ss:$8 sps:$4 sm:$0xff]   ;;  %v2561_v17 = vld [vmem:[%s3888_s1 + $0x444] ss:$8 sps:$4 sm:$0xff]  }
   0x7   :  { %1691 = vmatpush1.bf16.msra.mxu1 %v2545_v6  ;;  %v2563_v18 = vld [vmem:[%s3888_s1 + $0x40] ss:$8 sps:$4 sm:$0xff]   ;;  %v2565_v20 = vld [vmem:[%s3888_s1 + $0x54] ss:$8 sps:$4 sm:$0xff]   ;;  %v2569_v22 = vld [vmem:[%s3888_s1 + $0x50] ss:$8 sps:$4 sm:$0xff]  }
   0x8   :  { %1855 = vmatpush1.bf16.msra.mxu0 %v2546_v7  ;;  %1692 = vmatprep.subr.bf16.mxu1 %v2547_v8  ;;  %v2564_v19 = vld [vmem:[%s3888_s1 + $0x440] ss:$8 sps:$4 sm:$0xff]   ;;  %v2567_v21 = vld [vmem:[%s3888_s1 + $0x454] ss:$8 sps:$4 sm:$0xff]   ;;  %v2570_v23 = vld [vmem:[%s3888_s1 + $0x450] ss:$8 sps:$4 sm:$0xff]  }
   0x9   :  { %1856 = vmatprep.subr.bf16.mxu0 %v2549_v9  ;;  %v2571_v24 = vld [vmem:[%s3888_s1 + $0x64] ss:$8 sps:$4 sm:$0xff]   ;;  %v2575_v26 = vld [vmem:[%s3888_s1 + $0x60] ss:$8 sps:$4 sm:$0xff]   ;;  %v2577_v28 = vld [vmem:[%s3888_s1 + $0x74] ss:$8 sps:$4 sm:$0xff]  }
   0xa   :  { %v2573_v25 = vld [vmem:[%s3888_s1 + $0x464] ss:$8 sps:$4 sm:$0xff]   ;;  %v2576_v27 = vld [vmem:[%s3888_s1 + $0x460] ss:$8 sps:$4 sm:$0xff]   ;;  %v2579_v29 = vld [vmem:[%s3888_s1 + $0x474] ss:$8 sps:$4 sm:$0xff]  }
   0xb   :  { %1693 = vmatpush1.bf16.msra.mxu1 %v2551_v10  ;;  %v2581_v30 = vld [vmem:[%s3888_s1 + $0x70] ss:$8 sps:$4 sm:$0xff]   ;;  %v2583_v32 = vld [vmem:[%s3888_s1 + $0x84] ss:$8 sps:$4 sm:$0xff]   ;;  %v2587_v34 = vld [vmem:[%s3888_s1 + $0x80] ss:$8 sps:$4 sm:$0xff]  }
   0xc   :  { %1857 = vmatpush1.bf16.msra.mxu0 %v2552_v11  ;;  %1694 = vmatprep.subr.bf16.mxu1 %v2553_v12  ;;  %v2582_v31 = vld [vmem:[%s3888_s1 + $0x470] ss:$8 sps:$4 sm:$0xff]   ;;  %v2585_v33 = vld [vmem:[%s3888_s1 + $0x484] ss:$8 sps:$4 sm:$0xff]   ;;  %v2588_v35 = vld [vmem:[%s3888_s1 + $0x480] ss:$8 sps:$4 sm:$0xff]  }
   0xd   :  { %1858 = vmatprep.subr.bf16.mxu0 %v2555_v13  ;;  %v2589_v39 = vld [vmem:[%s3888_s1 + $0x94] ss:$8 sps:$4 sm:$0xff]   ;;  %v2593_v41 = vld [vmem:[%s3888_s1 + $0x90] ss:$8 sps:$4 sm:$0xff]   ;;  %v3110_v42 = vshrl.u32 %v282_v36, 7  ;;  %v22_v52 = vld [vmem:[%s3887_s0] sm:$0xff] }
   0xe   :  { %v2591_v40 = vld [vmem:[%s3888_s1 + $0x494] ss:$8 sps:$4 sm:$0xff]   ;;  %v2594_v44 = vld [vmem:[%s3888_s1 + $0x490] ss:$8 sps:$4 sm:$0xff]   ;;  %v2595_v45 = vld [vmem:[%s3888_s1 + $0xa4] ss:$8 sps:$4 sm:$0xff]   ;;  %v294_v12 = vcombine.high %v22_v52, %v22_v52 }
   0xf   :  { %1695 = vmatpush1.bf16.msra.mxu1 %v2557_v14  ;;  %v2597_v46 = vld [vmem:[%s3888_s1 + $0x4a4] ss:$8 sps:$4 sm:$0xff]   ;;  %v2599_v47 = vld [vmem:[%s3888_s1 + $0xa0] ss:$8 sps:$4 sm:$0xff]   ;;  %v3128_v49 = vsub.s32 %v297_v43, %v3110_v42  ;;  %v2601_v50 = vld [vmem:[%s3888_s1 + $0xb4] ss:$8 sps:$4 sm:$0xff]  }
  0x10   :  { %1859 = vmatpush1.bf16.msra.mxu0 %v2558_v15  ;;  %1696 = vmatprep.subr.bf16.mxu1 %v2559_v16  ;;  %v2600_v48 = vld [vmem:[%s3888_s1 + $0x4a0] ss:$8 sps:$4 sm:$0xff]   ;;  %v2603_v51 = vld [vmem:[%s3888_s1 + $0x4b4] ss:$8 sps:$4 sm:$0xff]   ;;  %v2605_v53 = vld [vmem:[%s3888_s1 + $0xb0] ss:$8 sps:$4 sm:$0xff]  }
  0x11   :  { %1860 = vmatprep.subr.bf16.mxu0 %v2561_v17  ;;  %v301_v54 = vrot.slane %v22_v52, %v3128_v49  ;;  %v2606_v55 = vld [vmem:[%s3888_s1 + $0x4b0] ss:$8 sps:$4 sm:$0xff]   ;;  %v23_v56 = vld [vmem:[%s3887_s0 + $0x8] sm:$0xff]  ;;  %v2613_v1 = vld [vmem:[%s3888_s1 + $0xd4] ss:$8 sps:$4 sm:$0xff]  }
  0x12   :  { %v2607_v57 = vld [vmem:[%s3888_s1 + $0xc4] ss:$8 sps:$4 sm:$0xff]   ;;  %v350_v60 = vrot.slane %v23_v56, %v3128_v49  ;;  %v2611_v63 = vld [vmem:[%s3888_s1 + $0xc0] ss:$8 sps:$4 sm:$0xff]   ;;  %v2615_v2 = vld [vmem:[%s3888_s1 + $0x4d4] ss:$8 sps:$4 sm:$0xff]   ;;  %v343_v13 = vcombine.high %v23_v56, %v23_v56 }
  0x13   :  { %1697 = vmatpush1.bf16.msra.mxu1 %v2563_v18  ;;  %v2609_v58 = vld [vmem:[%s3888_s1 + $0x4c4] ss:$8 sps:$4 sm:$0xff]   ;;  %v309_v59 = vcombine.high %v301_v54, %v301_v54  ;;  %v2612_v0 = vld [vmem:[%s3888_s1 + $0x4c0] ss:$8 sps:$4 sm:$0xff]   ;;  %v2617_v4 = vld [vmem:[%s3888_s1 + $0xd0] ss:$8 sps:$4 sm:$0xff]   ;;  %v308_v18 = vrot.slane %v294_v12, %v3128_v49 }
  0x14   :  { %1861 = vmatpush1.bf16.msra.mxu0 %v2564_v19  ;;  %1698 = vmatprep.subr.bf16.mxu1 %v2565_v20  ;;  %v358_v62 = vcombine.high %v350_v60, %v350_v60  ;;  %v2618_v5 = vld [vmem:[%s3888_s1 + $0x4d0] ss:$8 sps:$4 sm:$0xff]   ;;  %v2619_v6 = vld [vmem:[%s3888_s1 + $0xe4] ss:$8 sps:$4 sm:$0xff]   ;;  %v2623_v8 = vld [vmem:[%s3888_s1 + $0xe0] ss:$8 sps:$4 sm:$0xff]   ;;  %v357_v19 = vrot.slane %v343_v13, %v3128_v49  ;;  %v3212_v20 = vrot.slane %v301_v54, %v3128_v49 }
  0x15   :  { %1862 = vmatprep.subr.bf16.mxu0 %v2567_v21  ;;  %v3157_v61 = vrot.slane %v309_v59, %v3128_v49  ;;  %v2621_v7 = vld [vmem:[%s3888_s1 + $0x4e4] ss:$8 sps:$4 sm:$0xff]   ;;  %v2624_v9 = vld [vmem:[%s3888_s1 + $0x4e0] ss:$8 sps:$4 sm:$0xff]   ;;  %v2625_v10 = vld [vmem:[%s3888_s1 + $0xf4] ss:$8 sps:$4 sm:$0xff]   ;;  %v3215_v21 = vrot.slane %v350_v60, %v3128_v49 }
  0x16   :  { %v380_v3 = vrot.slane %v358_v62, %v3128_v49  ;;  %v2627_v11 = vld [vmem:[%s3888_s1 + $0x4f4] ss:$8 sps:$4 sm:$0xff]   ;;  %v2629_v14 = vld [vmem:[%s3888_s1 + $0xf0] ss:$8 sps:$4 sm:$0xff]   ;;  %v2634_v16 = vld [vmem:[%s3888_s1 + $0x104] ss:$8 sps:$4 sm:$0xff]  }
  0x17   :  { %1699 = vmatpush1.bf16.msra.mxu1 %v2569_v22  ;;  %1720 = vmatprep.mubr.bf16.mxu1 %v3157_v61  ;;  %v2630_v15 = vld [vmem:[%s3888_s1 + $0x4f0] ss:$8 sps:$4 sm:$0xff]   ;;  %v2638_v17 = vld [vmem:[%s3888_s1 + $0x504] ss:$8 sps:$4 sm:$0xff]   ;;  %v310_v22 = vcombine.high %v308_v18, %v308_v18  ;;  %v2645_v38 = vld [vmem:[%s3888_s1 + $0x120] ss:$8 sps:$4 sm:$0xff]  }
  0x18   :  { %1863 = vmatpush1.bf16.msra.mxu0 %v2570_v23  ;;  %1700 = vmatprep.subr.bf16.mxu1 %v2571_v24  ;;  %v359_v23 = vcombine.high %v357_v19, %v357_v19  ;;  %v2632_v24 = vld [vmem:[%s3888_s1 + $0x100] ss:$8 sps:$4 sm:$0xff]   ;;  %v2647_v36 = vld [vmem:[%s3888_s1 + $0x124] ss:$8 sps:$4 sm:$0xff]   ;;  %v2651_v43 = vld [vmem:[%s3888_s1 + $0x130] ss:$8 sps:$4 sm:$0xff]  }
  0x19   :  { %1864 = vmatprep.subr.bf16.mxu0 %v2573_v25  ;;  %1884 = vmatprep.mubr.bf16.mxu0 %v380_v3  ;;  %v2636_v25 = vld [vmem:[%s3888_s1 + $0x500] ss:$8 sps:$4 sm:$0xff]   ;;  %v2650_v37 = vld [vmem:[%s3888_s1 + $0x524] ss:$8 sps:$4 sm:$0xff]   ;;  %v2666_v52 = vld [vmem:[%s3888_s1 + $0x550] ss:$8 sps:$4 sm:$0xff]  }
  0x1a   :  { %v2674_v54 = vld [vmem:[%s3888_s1 + $0x564] ss:$8 sps:$4 sm:$0xff]   ;;  %v2672_v56 = vld [vmem:[%s3888_s1 + $0x560] ss:$8 sps:$4 sm:$0xff]   ;;  %v2675_v59 = vld [vmem:[%s3888_s1 + $0x170] ss:$8 sps:$4 sm:$0xff]  }
  0x1b   :  { %1701 = vmatpush1.bf16.msra.mxu1 %v2575_v26  ;;  %v2641_v26 = vld [vmem:[%s3888_s1 + $0x114] ss:$8 sps:$4 sm:$0xff]   ;;  %v2678_v60 = vld [vmem:[%s3888_s1 + $0x570] ss:$8 sps:$4 sm:$0xff]   ;;  %v2686_v62 = vld [vmem:[%s3888_s1 + $0x584] ss:$8 sps:$4 sm:$0xff]  }
  0x1c   :  { %1865 = vmatpush1.bf16.msra.mxu0 %v2576_v27  ;;  %1702 = vmatprep.subr.bf16.mxu1 %v2577_v28  ;;  %v2644_v27 = vld [vmem:[%s3888_s1 + $0x514] ss:$8 sps:$4 sm:$0xff]   ;;  %v3230_v28 = vrot.slane %v310_v22, %v3128_v49  ;;  %v2702_v12 = vld [vmem:[%s3888_s1 + $0x5b0] ss:$8 sps:$4 sm:$0xff]   ;;  %v2707_v13 = vld [vmem:[%s3888_s1 + $0x1c4] ss:$8 sps:$4 sm:$0xff]  }
  0x1d   :  { %1866 = vmatprep.subr.bf16.mxu0 %v2579_v29  ;;  %v3233_v29 = vrot.slane %v359_v23, %v3128_v49  ;;  %v2714_v22 = vld [vmem:[%s3888_s1 + $0x5d0] ss:$8 sps:$4 sm:$0xff]   ;;  %v2719_v23 = vld [vmem:[%s3888_s1 + $0x1e4] ss:$8 sps:$4 sm:$0xff]  }
  0x1f   :  { %1703 = vmatpush1.bf16.msra.mxu1 %v2581_v30  ;;  %v3236_v30 = vrot.slane %v308_v18, %v3128_v49  ;;  %v2716_v18 = vld [vmem:[%s3888_s1 + $0x5d4] ss:$8 sps:$4 sm:$0xff]  }
  0x20   :  { %1867 = vmatpush1.bf16.msra.mxu0 %v2582_v31  ;;  %1704 = vmatprep.subr.bf16.mxu1 %v2583_v32  ;;  %v341_v31 = vcombine.high %v3157_v61, %v3157_v61  ;;  %v390_v32 = vcombine.high %v380_v3, %v380_v3  ;;  %v2683_v61 = vld [vmem:[%s3888_s1 + $0x184] ss:$8 sps:$4 sm:$0xff]   ;;  %v2687_v3 = vld [vmem:[%s3888_s1 + $0x190] ss:$8 sps:$4 sm:$0xff]  }
  0x21   :  { %1868 = vmatprep.subr.bf16.mxu0 %v2585_v33  ;;  %v3241_v33 = vrot.slane %v357_v19, %v3128_v49  ;;  %v2665_v49 = vld [vmem:[%s3888_s1 + $0x154] ss:$8 sps:$4 sm:$0xff]   ;;  %v2711_v19 = vld [vmem:[%s3888_s1 + $0x1d0] ss:$8 sps:$4 sm:$0xff]  }
  0x23   :  { %1705 = vmatpush1.bf16.msra.mxu1 %v2587_v34  ;;  %v2639_v34 = vld [vmem:[%s3888_s1 + $0x110] ss:$8 sps:$4 sm:$0xff]  }
  0x24   :  { %1869 = vmatpush1.bf16.msra.mxu0 %v2588_v35  ;;  %1706 = vmatprep.subr.bf16.mxu1 %v2589_v39  ;;  %v2642_v35 = vld [vmem:[%s3888_s1 + $0x510] ss:$8 sps:$4 sm:$0xff]   ;;  %v2648_v39 = vld [vmem:[%s3888_s1 + $0x520] ss:$8 sps:$4 sm:$0xff]  }
  0x25   :  { %1870 = vmatprep.subr.bf16.mxu0 %v2591_v40  ;;  %v2653_v40 = vld [vmem:[%s3888_s1 + $0x134] ss:$8 sps:$4 sm:$0xff]  }
  0x27   :  { %1707 = vmatpush1.bf16.msra.mxu1 %v2593_v41  ;;  %v2656_v41 = vld [vmem:[%s3888_s1 + $0x534] ss:$8 sps:$4 sm:$0xff]  }
  0x28   :  { %1871 = vmatpush1.bf16.msra.mxu0 %v2594_v44  ;;  %1708 = vmatprep.subr.bf16.mxu1 %v2595_v45  ;;  %v2654_v44 = vld [vmem:[%s3888_s1 + $0x530] ss:$8 sps:$4 sm:$0xff]   ;;  %v2659_v45 = vld [vmem:[%s3888_s1 + $0x144] ss:$8 sps:$4 sm:$0xff]  }
  0x29   :  { %1872 = vmatprep.subr.bf16.mxu0 %v2597_v46  ;;  %v2662_v46 = vld [vmem:[%s3888_s1 + $0x544] ss:$8 sps:$4 sm:$0xff]  }
  0x2b   :  { %1709 = vmatpush1.bf16.msra.mxu1 %v2599_v47  ;;  %v2657_v47 = vld [vmem:[%s3888_s1 + $0x140] ss:$8 sps:$4 sm:$0xff]  }
  0x2c   :  { %1873 = vmatpush1.bf16.msra.mxu0 %v2600_v48  ;;  %1710 = vmatprep.subr.bf16.mxu1 %v2601_v50  ;;  %v2660_v48 = vld [vmem:[%s3888_s1 + $0x540] ss:$8 sps:$4 sm:$0xff]   ;;  %v2668_v50 = vld [vmem:[%s3888_s1 + $0x554] ss:$8 sps:$4 sm:$0xff]  }
  0x2d   :  { %1874 = vmatprep.subr.bf16.mxu0 %v2603_v51  ;;  %v2663_v51 = vld [vmem:[%s3888_s1 + $0x150] ss:$8 sps:$4 sm:$0xff]  }
  0x2f   :  { %1711 = vmatpush1.bf16.msra.mxu1 %v2605_v53  ;;  %v2671_v53 = vld [vmem:[%s3888_s1 + $0x164] ss:$8 sps:$4 sm:$0xff]  }
  0x30   :  { %1875 = vmatpush1.bf16.msra.mxu0 %v2606_v55  ;;  %1712 = vmatprep.subr.bf16.mxu1 %v2607_v57  ;;  %v2669_v55 = vld [vmem:[%s3888_s1 + $0x160] ss:$8 sps:$4 sm:$0xff]   ;;  %v2677_v57 = vld [vmem:[%s3888_s1 + $0x174] ss:$8 sps:$4 sm:$0xff]  }
  0x31   :  { %1876 = vmatprep.subr.bf16.mxu0 %v2609_v58  ;;  %v2680_v58 = vld [vmem:[%s3888_s1 + $0x574] ss:$8 sps:$4 sm:$0xff]  }
  0x33   :  { %1713 = vmatpush1.bf16.msra.mxu1 %v2611_v63  ;;  %v2681_v63 = vld [vmem:[%s3888_s1 + $0x180] ss:$8 sps:$4 sm:$0xff]  }
  0x34   :  { %1877 = vmatpush1.bf16.msra.mxu0 %v2612_v0  ;;  %1714 = vmatprep.subr.bf16.mxu1 %v2613_v1  ;;  %v2684_v0 = vld [vmem:[%s3888_s1 + $0x580] ss:$8 sps:$4 sm:$0xff]   ;;  %v2689_v1 = vld [vmem:[%s3888_s1 + $0x194] ss:$8 sps:$4 sm:$0xff]  }
  0x35   :  { %1878 = vmatprep.subr.bf16.mxu0 %v2615_v2  ;;  %v2692_v2 = vld [vmem:[%s3888_s1 + $0x594] ss:$8 sps:$4 sm:$0xff]  }
  0x37   :  { %1715 = vmatpush1.bf16.msra.mxu1 %v2617_v4  ;;  %v2690_v4 = vld [vmem:[%s3888_s1 + $0x590] ss:$8 sps:$4 sm:$0xff]  }
  0x38   :  { %1879 = vmatpush1.bf16.msra.mxu0 %v2618_v5  ;;  %1716 = vmatprep.subr.bf16.mxu1 %v2619_v6  ;;  %v2695_v5 = vld [vmem:[%s3888_s1 + $0x1a4] ss:$8 sps:$4 sm:$0xff]  }
  0x39   :  { %1880 = vmatprep.subr.bf16.mxu0 %v2621_v7  ;;  %v2698_v6 = vld [vmem:[%s3888_s1 + $0x5a4] ss:$8 sps:$4 sm:$0xff]   ;;  %v2693_v7 = vld [vmem:[%s3888_s1 + $0x1a0] ss:$8 sps:$4 sm:$0xff]  }
  0x3b   :  { %1717 = vmatpush1.bf16.msra.mxu1 %v2623_v8  ;;  %v2696_v8 = vld [vmem:[%s3888_s1 + $0x5a0] ss:$8 sps:$4 sm:$0xff]  }
  0x3c   :  { %1881 = vmatpush1.bf16.msra.mxu0 %v2624_v9  ;;  %1718 = vmatprep.subr.bf16.mxu1 %v2625_v10  ;;  %v2701_v9 = vld [vmem:[%s3888_s1 + $0x1b4] ss:$8 sps:$4 sm:$0xff]  }
  0x3d   :  { %1882 = vmatprep.subr.bf16.mxu0 %v2627_v11  ;;  %v2704_v10 = vld [vmem:[%s3888_s1 + $0x5b4] ss:$8 sps:$4 sm:$0xff]   ;;  %v2699_v11 = vld [vmem:[%s3888_s1 + $0x1b0] ss:$8 sps:$4 sm:$0xff]  }
  0x3f   :  { %1719 = vmatpush1.bf16.msra.mxu1 %v2629_v14  ;;  %v2710_v14 = vld [vmem:[%s3888_s1 + $0x5c4] ss:$8 sps:$4 sm:$0xff]  }
  0x40   :  { %1883 = vmatpush1.bf16.msra.mxu0 %v2630_v15  ;;  %1729 = vmatprep.subr.bf16.mxu1 %v2634_v16  ;;  %v2705_v15 = vld [vmem:[%s3888_s1 + $0x1c0] ss:$8 sps:$4 sm:$0xff]  }
  0x41   :  { %1893 = vmatprep.subr.bf16.mxu0 %v2638_v17  ;;  %v2708_v16 = vld [vmem:[%s3888_s1 + $0x5c0] ss:$8 sps:$4 sm:$0xff]   ;;  %v2713_v17 = vld [vmem:[%s3888_s1 + $0x1d4] ss:$8 sps:$4 sm:$0xff]  }
  0x42   :  { %1721 = vmatmul.mubr.bf16.vlgmr.msra.gmra.mrb[0].mxu1 %v3212_v20 }
  0x43   :  { %1885 = vmatmul.mubr.bf16.vlgmr.msra.gmra.mrb[0].mxu0 %v3215_v21  ;;  %1730 = vmatpush1.bf16.msra.mxu1 %v2632_v24  ;;  %v2722_v24 = vld [vmem:[%s3888_s1 + $0x5e4] ss:$8 sps:$4 sm:$0xff]  }
  0x44   :  { %1894 = vmatpush1.bf16.msra.mxu0 %v2636_v25  ;;  %1731 = vmatprep.subr.bf16.mxu1 %v2641_v26  ;;  %v2717_v25 = vld [vmem:[%s3888_s1 + $0x1e0] ss:$8 sps:$4 sm:$0xff]  }
  0x45   :  { %1895 = vmatprep.subr.bf16.mxu0 %v2644_v27  ;;  %1761 = vmatprep.mubr.bf16.mxu1 %v341_v31  ;;  %v2720_v26 = vld [vmem:[%s3888_s1 + $0x5e0] ss:$8 sps:$4 sm:$0xff]   ;;  %v2725_v27 = vld [vmem:[%s3888_s1 + $0x1f4] ss:$8 sps:$4 sm:$0xff]  }
  0x46   :  { %1925 = vmatprep.mubr.bf16.mxu0 %v390_v32  ;;  %v2728_v31 = vld [vmem:[%s3888_s1 + $0x5f4] ss:$8 sps:$4 sm:$0xff]   ;;  %v2723_v32 = vld [vmem:[%s3888_s1 + $0x1f0] ss:$8 sps:$4 sm:$0xff]  }
  0x47   :  { %1732 = vmatpush1.bf16.msra.mxu1 %v2639_v34  ;;  %v2726_v34 = vld [vmem:[%s3888_s1 + $0x5f0] ss:$8 sps:$4 sm:$0xff]  }
  0x48   :  { %1896 = vmatpush1.bf16.msra.mxu0 %v2642_v35  ;;  %1733 = vmatprep.subr.bf16.mxu1 %v2647_v36  ;;  %v2731_v35 = vld [vmem:[%s3888_s1 + $0x204] ss:$8 sps:$4 sm:$0xff]  }
  0x49   :  { %1897 = vmatprep.subr.bf16.mxu0 %v2650_v37  ;;  %v2734_v36 = vld [vmem:[%s3888_s1 + $0x604] ss:$8 sps:$4 sm:$0xff]   ;;  %v339_v37 = vcombine.high %v3212_v20, %v3212_v20  ;;  %v2740_v20 = vld [vmem:[%s3888_s1 + $0x614] ss:$8 sps:$4 sm:$0xff]  }
  0x4b   :  { %1734 = vmatpush1.bf16.msra.mxu1 %v2645_v38  ;;  %v388_v38 = vcombine.high %v3215_v21, %v3215_v21  ;;  %v2735_v21 = vld [vmem:[%s3888_s1 + $0x210] ss:$8 sps:$4 sm:$0xff]  }
  0x4c   :  { %1898 = vmatpush1.bf16.msra.mxu0 %v2648_v39  ;;  %1735 = vmatprep.subr.bf16.mxu1 %v2653_v40  ;;  %v2729_v39 = vld [vmem:[%s3888_s1 + $0x200] ss:$8 sps:$4 sm:$0xff]  }
  0x4d   :  { %1899 = vmatprep.subr.bf16.mxu0 %v2656_v41  ;;  %v2732_v40 = vld [vmem:[%s3888_s1 + $0x600] ss:$8 sps:$4 sm:$0xff]   ;;  %v2737_v41 = vld [vmem:[%s3888_s1 + $0x214] ss:$8 sps:$4 sm:$0xff]  }
  0x4f   :  { %1736 = vmatpush1.bf16.msra.mxu1 %v2651_v43  ;;  %v2738_v43 = vld [vmem:[%s3888_s1 + $0x610] ss:$8 sps:$4 sm:$0xff]  }
  0x50   :  { %1900 = vmatpush1.bf16.msra.mxu0 %v2654_v44  ;;  %1737 = vmatprep.subr.bf16.mxu1 %v2659_v45  ;;  %v2743_v44 = vld [vmem:[%s3888_s1 + $0x224] ss:$8 sps:$4 sm:$0xff]  }
  0x51   :  { %1901 = vmatprep.subr.bf16.mxu0 %v2662_v46  ;;  %v2746_v45 = vld [vmem:[%s3888_s1 + $0x624] ss:$8 sps:$4 sm:$0xff]   ;;  %v2741_v46 = vld [vmem:[%s3888_s1 + $0x220] ss:$8 sps:$4 sm:$0xff]  }
  0x53   :  { %1738 = vmatpush1.bf16.msra.mxu1 %v2657_v47  ;;  %v2744_v47 = vld [vmem:[%s3888_s1 + $0x620] ss:$8 sps:$4 sm:$0xff]  }
  0x54   :  { %1902 = vmatpush1.bf16.msra.mxu0 %v2660_v48  ;;  %1739 = vmatprep.subr.bf16.mxu1 %v2665_v49  ;;  %v2749_v48 = vld [vmem:[%s3888_s1 + $0x234] ss:$8 sps:$4 sm:$0xff]  }
  0x55   :  { %1903 = vmatprep.subr.bf16.mxu0 %v2668_v50  ;;  %v2752_v49 = vld [vmem:[%s3888_s1 + $0x634] ss:$8 sps:$4 sm:$0xff]   ;;  %v2747_v50 = vld [vmem:[%s3888_s1 + $0x230] ss:$8 sps:$4 sm:$0xff]  }
  0x57   :  { %1740 = vmatpush1.bf16.msra.mxu1 %v2663_v51  ;;  %v2750_v51 = vld [vmem:[%s3888_s1 + $0x630] ss:$8 sps:$4 sm:$0xff]  }
  0x58   :  { %1904 = vmatpush1.bf16.msra.mxu0 %v2666_v52  ;;  %1741 = vmatprep.subr.bf16.mxu1 %v2671_v53  ;;  %v2755_v52 = vld [vmem:[%s3888_s1 + $0x244] ss:$8 sps:$4 sm:$0xff]  }
  0x59   :  { %1905 = vmatprep.subr.bf16.mxu0 %v2674_v54  ;;  %v2758_v53 = vld [vmem:[%s3888_s1 + $0x644] ss:$8 sps:$4 sm:$0xff]   ;;  %v2753_v54 = vld [vmem:[%s3888_s1 + $0x240] ss:$8 sps:$4 sm:$0xff]  }
  0x5b   :  { %1742 = vmatpush1.bf16.msra.mxu1 %v2669_v55  ;;  %v2756_v55 = vld [vmem:[%s3888_s1 + $0x640] ss:$8 sps:$4 sm:$0xff]  }
  0x5c   :  { %1906 = vmatpush1.bf16.msra.mxu0 %v2672_v56  ;;  %1743 = vmatprep.subr.bf16.mxu1 %v2677_v57  ;;  %v2761_v56 = vld [vmem:[%s3888_s1 + $0x254] ss:$8 sps:$4 sm:$0xff]  }
  0x5d   :  { %1907 = vmatprep.subr.bf16.mxu0 %v2680_v58  ;;  %v2764_v57 = vld [vmem:[%s3888_s1 + $0x654] ss:$8 sps:$4 sm:$0xff]   ;;  %v2759_v58 = vld [vmem:[%s3888_s1 + $0x250] ss:$8 sps:$4 sm:$0xff]  }
  0x5f   :  { %1744 = vmatpush1.bf16.msra.mxu1 %v2675_v59  ;;  %v2762_v59 = vld [vmem:[%s3888_s1 + $0x650] ss:$8 sps:$4 sm:$0xff]  }
  0x60   :  { %1908 = vmatpush1.bf16.msra.mxu0 %v2678_v60  ;;  %1745 = vmatprep.subr.bf16.mxu1 %v2683_v61  ;;  %v2767_v60 = vld [vmem:[%s3888_s1 + $0x264] ss:$8 sps:$4 sm:$0xff]  }
  0x61   :  { %1909 = vmatprep.subr.bf16.mxu0 %v2686_v62  ;;  %v2770_v61 = vld [vmem:[%s3888_s1 + $0x664] ss:$8 sps:$4 sm:$0xff]   ;;  %v2765_v62 = vld [vmem:[%s3888_s1 + $0x260] ss:$8 sps:$4 sm:$0xff]  }
  0x63   :  { %1746 = vmatpush1.bf16.msra.mxu1 %v2681_v63  ;;  %v2768_v63 = vld [vmem:[%s3888_s1 + $0x660] ss:$8 sps:$4 sm:$0xff]  }
  0x64   :  { %1910 = vmatpush1.bf16.msra.mxu0 %v2684_v0  ;;  %1747 = vmatprep.subr.bf16.mxu1 %v2689_v1  ;;  %v2773_v0 = vld [vmem:[%s3888_s1 + $0x274] ss:$8 sps:$4 sm:$0xff]  }
  0x65   :  { %1911 = vmatprep.subr.bf16.mxu0 %v2692_v2  ;;  %v2776_v1 = vld [vmem:[%s3888_s1 + $0x674] ss:$8 sps:$4 sm:$0xff]   ;;  %v2771_v2 = vld [vmem:[%s3888_s1 + $0x270] ss:$8 sps:$4 sm:$0xff]  }
  0x67   :  { %1748 = vmatpush1.bf16.msra.mxu1 %v2687_v3  ;;  %v2774_v3 = vld [vmem:[%s3888_s1 + $0x670] ss:$8 sps:$4 sm:$0xff]  }
  0x68   :  { %1912 = vmatpush1.bf16.msra.mxu0 %v2690_v4  ;;  %1749 = vmatprep.subr.bf16.mxu1 %v2695_v5  ;;  %v2779_v4 = vld [vmem:[%s3888_s1 + $0x284] ss:$8 sps:$4 sm:$0xff]  }
  0x69   :  { %1913 = vmatprep.subr.bf16.mxu0 %v2698_v6  ;;  %v2782_v5 = vld [vmem:[%s3888_s1 + $0x684] ss:$8 sps:$4 sm:$0xff]   ;;  %v2777_v6 = vld [vmem:[%s3888_s1 + $0x280] ss:$8 sps:$4 sm:$0xff]  }
  0x6b   :  { %1750 = vmatpush1.bf16.msra.mxu1 %v2693_v7  ;;  %v2780_v7 = vld [vmem:[%s3888_s1 + $0x680] ss:$8 sps:$4 sm:$0xff]  }
  0x6c   :  { %1914 = vmatpush1.bf16.msra.mxu0 %v2696_v8  ;;  %1751 = vmatprep.subr.bf16.mxu1 %v2701_v9  ;;  %v2785_v8 = vld [vmem:[%s3888_s1 + $0x294] ss:$8 sps:$4 sm:$0xff]  }
  0x6d   :  { %1915 = vmatprep.subr.bf16.mxu0 %v2704_v10  ;;  %v2788_v9 = vld [vmem:[%s3888_s1 + $0x694] ss:$8 sps:$4 sm:$0xff]   ;;  %v2783_v10 = vld [vmem:[%s3888_s1 + $0x290] ss:$8 sps:$4 sm:$0xff]  }
  0x6f   :  { %1752 = vmatpush1.bf16.msra.mxu1 %v2699_v11  ;;  %v2786_v11 = vld [vmem:[%s3888_s1 + $0x690] ss:$8 sps:$4 sm:$0xff]  }
  0x70   :  { %1916 = vmatpush1.bf16.msra.mxu0 %v2702_v12  ;;  %1753 = vmatprep.subr.bf16.mxu1 %v2707_v13  ;;  %v2791_v12 = vld [vmem:[%s3888_s1 + $0x2a4] ss:$8 sps:$4 sm:$0xff]  }
  0x71   :  { %1917 = vmatprep.subr.bf16.mxu0 %v2710_v14  ;;  %v2794_v13 = vld [vmem:[%s3888_s1 + $0x6a4] ss:$8 sps:$4 sm:$0xff]   ;;  %v2789_v14 = vld [vmem:[%s3888_s1 + $0x2a0] ss:$8 sps:$4 sm:$0xff]  }
  0x73   :  { %1754 = vmatpush1.bf16.msra.mxu1 %v2705_v15  ;;  %v2792_v15 = vld [vmem:[%s3888_s1 + $0x6a0] ss:$8 sps:$4 sm:$0xff]  }
  0x74   :  { %1918 = vmatpush1.bf16.msra.mxu0 %v2708_v16  ;;  %1755 = vmatprep.subr.bf16.mxu1 %v2713_v17  ;;  %v2797_v16 = vld [vmem:[%s3888_s1 + $0x2b4] ss:$8 sps:$4 sm:$0xff]  }
  0x75   :  { %1919 = vmatprep.subr.bf16.mxu0 %v2716_v18  ;;  %v2800_v17 = vld [vmem:[%s3888_s1 + $0x6b4] ss:$8 sps:$4 sm:$0xff]   ;;  %v2795_v18 = vld [vmem:[%s3888_s1 + $0x2b0] ss:$8 sps:$4 sm:$0xff]  }
  0x77   :  { %1756 = vmatpush1.bf16.msra.mxu1 %v2711_v19  ;;  %v2798_v19 = vld [vmem:[%s3888_s1 + $0x6b0] ss:$8 sps:$4 sm:$0xff]  }
  0x78   :  { %1920 = vmatpush1.bf16.msra.mxu0 %v2714_v22  ;;  %1757 = vmatprep.subr.bf16.mxu1 %v2719_v23  ;;  %v2803_v22 = vld [vmem:[%s3888_s1 + $0x2c4] ss:$8 sps:$4 sm:$0xff]  }
  0x79   :  { %1921 = vmatprep.subr.bf16.mxu0 %v2722_v24  ;;  %v2806_v23 = vld [vmem:[%s3888_s1 + $0x6c4] ss:$8 sps:$4 sm:$0xff]   ;;  %v2801_v24 = vld [vmem:[%s3888_s1 + $0x2c0] ss:$8 sps:$4 sm:$0xff]  }
  0x7b   :  { %1758 = vmatpush1.bf16.msra.mxu1 %v2717_v25  ;;  %v2804_v25 = vld [vmem:[%s3888_s1 + $0x6c0] ss:$8 sps:$4 sm:$0xff]  }
  0x7c   :  { %1922 = vmatpush1.bf16.msra.mxu0 %v2720_v26  ;;  %1759 = vmatprep.subr.bf16.mxu1 %v2725_v27  ;;  %v2809_v26 = vld [vmem:[%s3888_s1 + $0x2d4] ss:$8 sps:$4 sm:$0xff]  }
  0x7d   :  { %1923 = vmatprep.subr.bf16.mxu0 %v2728_v31  ;;  %v2812_v27 = vld [vmem:[%s3888_s1 + $0x6d4] ss:$8 sps:$4 sm:$0xff]   ;;  %v2807_v31 = vld [vmem:[%s3888_s1 + $0x2d0] ss:$8 sps:$4 sm:$0xff]  }
  0x7f   :  { %1760 = vmatpush1.bf16.msra.mxu1 %v2723_v32  ;;  %v2810_v32 = vld [vmem:[%s3888_s1 + $0x6d0] ss:$8 sps:$4 sm:$0xff]  }
  0x80   :  { %1924 = vmatpush1.bf16.msra.mxu0 %v2726_v34  ;;  %1770 = vmatprep.subr.bf16.mxu1 %v2731_v35  ;;  %v2815_v34 = vld [vmem:[%s3888_s1 + $0x2e4] ss:$8 sps:$4 sm:$0xff]  }
  0x81   :  { %1934 = vmatprep.subr.bf16.mxu0 %v2734_v36  ;;  %v2818_v35 = vld [vmem:[%s3888_s1 + $0x6e4] ss:$8 sps:$4 sm:$0xff]   ;;  %v2813_v36 = vld [vmem:[%s3888_s1 + $0x2e0] ss:$8 sps:$4 sm:$0xff]  }
  0x82   :  { %1762 = vmatmul.mubr.bf16.vlgmr.msra.gmra.mrb[0].mxu1 %v339_v37  ;;  %v2816_v37 = vld [vmem:[%s3888_s1 + $0x6e0] ss:$8 sps:$4 sm:$0xff]  }
  0x83   :  { %1926 = vmatmul.mubr.bf16.vlgmr.msra.gmra.mrb[0].mxu0 %v388_v38  ;;  %1771 = vmatpush1.bf16.msra.mxu1 %v2729_v39  ;;  %v2821_v38 = vld [vmem:[%s3888_s1 + $0x2f4] ss:$8 sps:$4 sm:$0xff]  }
  0x84   :  { %1935 = vmatpush1.bf16.msra.mxu0 %v2732_v40  ;;  %1772 = vmatprep.subr.bf16.mxu1 %v2737_v41  ;;  %v2824_v39 = vld [vmem:[%s3888_s1 + $0x6f4] ss:$8 sps:$4 sm:$0xff]  }
  0x85   :  { %1936 = vmatprep.subr.bf16.mxu0 %v2740_v20  ;;  %1802 = vmatprep.mubr.bf16.mxu1 %v3230_v28 }
  0x86   :  { %1966 = vmatprep.mubr.bf16.mxu0 %v3233_v29 }
  0x87   :  { %1773 = vmatpush1.bf16.msra.mxu1 %v2735_v21 }
  0x88   :  { %1937 = vmatpush1.bf16.msra.mxu0 %v2738_v43  ;;  %1774 = vmatprep.subr.bf16.mxu1 %v2743_v44 }
  0x89   :  { %1938 = vmatprep.subr.bf16.mxu0 %v2746_v45 }
  0x8b   :  { %1775 = vmatpush1.bf16.msra.mxu1 %v2741_v46 }
  0x8c   :  { %1939 = vmatpush1.bf16.msra.mxu0 %v2744_v47  ;;  %1776 = vmatprep.subr.bf16.mxu1 %v2749_v48 }
  0x8d   :  { %1940 = vmatprep.subr.bf16.mxu0 %v2752_v49 }
  0x8f   :  { %1777 = vmatpush1.bf16.msra.mxu1 %v2747_v50 }
  0x90   :  { %1941 = vmatpush1.bf16.msra.mxu0 %v2750_v51  ;;  %1778 = vmatprep.subr.bf16.mxu1 %v2755_v52 }
  0x91   :  { %1942 = vmatprep.subr.bf16.mxu0 %v2758_v53 }
  0x93   :  { %1779 = vmatpush1.bf16.msra.mxu1 %v2753_v54 }
  0x94   :  { %1943 = vmatpush1.bf16.msra.mxu0 %v2756_v55  ;;  %1780 = vmatprep.subr.bf16.mxu1 %v2761_v56 }
  0x95   :  { %1944 = vmatprep.subr.bf16.mxu0 %v2764_v57 }
  0x97   :  { %1781 = vmatpush1.bf16.msra.mxu1 %v2759_v58 }
  0x98   :  { %1945 = vmatpush1.bf16.msra.mxu0 %v2762_v59  ;;  %1782 = vmatprep.subr.bf16.mxu1 %v2767_v60 }
  0x99   :  { %1946 = vmatprep.subr.bf16.mxu0 %v2770_v61 }
  0x9b   :  { %1783 = vmatpush1.bf16.msra.mxu1 %v2765_v62 }
  0x9c   :  { %1947 = vmatpush1.bf16.msra.mxu0 %v2768_v63  ;;  %1784 = vmatprep.subr.bf16.mxu1 %v2773_v0 }
  0x9d   :  { %1948 = vmatprep.subr.bf16.mxu0 %v2776_v1 }
  0x9f   :  { %1785 = vmatpush1.bf16.msra.mxu1 %v2771_v2 }
  0xa0   :  { %1949 = vmatpush1.bf16.msra.mxu0 %v2774_v3  ;;  %1786 = vmatprep.subr.bf16.mxu1 %v2779_v4 }
  0xa1   :  { %1950 = vmatprep.subr.bf16.mxu0 %v2782_v5 }
  0xa3   :  { %1787 = vmatpush1.bf16.msra.mxu1 %v2777_v6 }
  0xa4   :  { %1951 = vmatpush1.bf16.msra.mxu0 %v2780_v7  ;;  %1788 = vmatprep.subr.bf16.mxu1 %v2785_v8 }
  0xa5   :  { %1952 = vmatprep.subr.bf16.mxu0 %v2788_v9 }
  0xa7   :  { %1789 = vmatpush1.bf16.msra.mxu1 %v2783_v10 }
  0xa8   :  { %1953 = vmatpush1.bf16.msra.mxu0 %v2786_v11  ;;  %1790 = vmatprep.subr.bf16.mxu1 %v2791_v12 }
  0xa9   :  { %1954 = vmatprep.subr.bf16.mxu0 %v2794_v13 }
  0xab   :  { %1791 = vmatpush1.bf16.msra.mxu1 %v2789_v14 }
  0xac   :  { %1955 = vmatpush1.bf16.msra.mxu0 %v2792_v15  ;;  %1792 = vmatprep.subr.bf16.mxu1 %v2797_v16 }
  0xad   :  { %1956 = vmatprep.subr.bf16.mxu0 %v2800_v17 }
  0xaf   :  { %1793 = vmatpush1.bf16.msra.mxu1 %v2795_v18 }
  0xb0   :  { %1957 = vmatpush1.bf16.msra.mxu0 %v2798_v19  ;;  %1794 = vmatprep.subr.bf16.mxu1 %v2803_v22 }
  0xb1   :  { %1958 = vmatprep.subr.bf16.mxu0 %v2806_v23 }
  0xb3   :  { %1795 = vmatpush1.bf16.msra.mxu1 %v2801_v24 }
  0xb4   :  { %1959 = vmatpush1.bf16.msra.mxu0 %v2804_v25  ;;  %1796 = vmatprep.subr.bf16.mxu1 %v2809_v26 }
  0xb5   :  { %1960 = vmatprep.subr.bf16.mxu0 %v2812_v27 }
  0xb7   :  { %1797 = vmatpush1.bf16.msra.mxu1 %v2807_v31 }
  0xb8   :  { %1961 = vmatpush1.bf16.msra.mxu0 %v2810_v32  ;;  %1798 = vmatprep.subr.bf16.mxu1 %v2815_v34 }
  0xb9   :  { %1962 = vmatprep.subr.bf16.mxu0 %v2818_v35 }
  0xba   :  { %10 = vsyncpa [#allocation3], 0  ;;  %v2819_v40 = vld [vmem:[%s3888_s1 + $0x2f0] ss:$8 sps:$4 sm:$0xff]   ;;  %v2827_v20 = vld [vmem:[%s3888_s1 + $0x304] ss:$8 sps:$4 sm:$0xff]   ;;  %v342_v47 = vcombine.high %v3230_v28, %v3230_v28  ;;  %v391_v48 = vcombine.high %v3233_v29, %v3233_v29 }
  0xbb   :  { %1799 = vmatpush1.bf16.msra.mxu1 %v2813_v36  ;;  %v2822_v41 = vld [vmem:[%s3888_s1 + $0x6f0] ss:$8 sps:$4 sm:$0xff]   ;;  %v2830_v21 = vld [vmem:[%s3888_s1 + $0x704] ss:$8 sps:$4 sm:$0xff]   ;;  %v2825_v43 = vld [vmem:[%s3888_s1 + $0x300] ss:$8 sps:$4 sm:$0xff]  }
  0xbc   :  { %1963 = vmatpush1.bf16.msra.mxu0 %v2816_v37  ;;  %1800 = vmatprep.subr.bf16.mxu1 %v2821_v38  ;;  %v2828_v44 = vld [vmem:[%s3888_s1 + $0x700] ss:$8 sps:$4 sm:$0xff]   ;;  %v2833_v45 = vld [vmem:[%s3888_s1 + $0x314] ss:$8 sps:$4 sm:$0xff]   ;;  %v2831_v49 = vld [vmem:[%s3888_s1 + $0x310] ss:$8 sps:$4 sm:$0xff]  }
  0xbd   :  { %1964 = vmatprep.subr.bf16.mxu0 %v2824_v39  ;;  %v2836_v46 = vld [vmem:[%s3888_s1 + $0x714] ss:$8 sps:$4 sm:$0xff]   ;;  %v2834_v50 = vld [vmem:[%s3888_s1 + $0x710] ss:$8 sps:$4 sm:$0xff]   ;;  %v2839_v28 = vld [vmem:[%s3888_s1 + $0x324] ss:$8 sps:$4 sm:$0xff]  }
  0xbe   :  { %v2842_v29 = vld [vmem:[%s3888_s1 + $0x724] ss:$8 sps:$4 sm:$0xff]   ;;  %v2837_v51 = vld [vmem:[%s3888_s1 + $0x320] ss:$8 sps:$4 sm:$0xff]   ;;  %v2845_v53 = vld [vmem:[%s3888_s1 + $0x334] ss:$8 sps:$4 sm:$0xff]  }
  0xbf   :  { %1801 = vmatpush1.bf16.msra.mxu1 %v2819_v40  ;;  %v2840_v52 = vld [vmem:[%s3888_s1 + $0x720] ss:$8 sps:$4 sm:$0xff]   ;;  %v2848_v54 = vld [vmem:[%s3888_s1 + $0x734] ss:$8 sps:$4 sm:$0xff]   ;;  %v2843_v55 = vld [vmem:[%s3888_s1 + $0x330] ss:$8 sps:$4 sm:$0xff]  }
  0xc0   :  { %1965 = vmatpush1.bf16.msra.mxu0 %v2822_v41  ;;  %1811 = vmatprep.subr.bf16.mxu1 %v2827_v20  ;;  %v2846_v56 = vld [vmem:[%s3888_s1 + $0x730] ss:$8 sps:$4 sm:$0xff]   ;;  %v2851_v57 = vld [vmem:[%s3888_s1 + $0x344] ss:$8 sps:$4 sm:$0xff]   ;;  %v2849_v59 = vld [vmem:[%s3888_s1 + $0x340] ss:$8 sps:$4 sm:$0xff]  }
  0xc1   :  { %1975 = vmatprep.subr.bf16.mxu0 %v2830_v21  ;;  %v2854_v58 = vld [vmem:[%s3888_s1 + $0x744] ss:$8 sps:$4 sm:$0xff]   ;;  %v2852_v60 = vld [vmem:[%s3888_s1 + $0x740] ss:$8 sps:$4 sm:$0xff]   ;;  %v2857_v61 = vld [vmem:[%s3888_s1 + $0x354] ss:$8 sps:$4 sm:$0xff]  }
  0xc2   :  { %1803 = vmatmul.mubr.bf16.vlgmr.msra.gmra.mrb[0].mxu1 %v3236_v30  ;;  %v2860_v62 = vld [vmem:[%s3888_s1 + $0x754] ss:$8 sps:$4 sm:$0xff]   ;;  %v2855_v63 = vld [vmem:[%s3888_s1 + $0x350] ss:$8 sps:$4 sm:$0xff]   ;;  %v2863_v1 = vld [vmem:[%s3888_s1 + $0x364] ss:$8 sps:$4 sm:$0xff]  }
  0xc3   :  { %1967 = vmatmul.mubr.bf16.vlgmr.msra.gmra.mrb[0].mxu0 %v3241_v33  ;;  %1812 = vmatpush1.bf16.msra.mxu1 %v2825_v43  ;;  %v2858_v0 = vld [vmem:[%s3888_s1 + $0x750] ss:$8 sps:$4 sm:$0xff]   ;;  %v2866_v2 = vld [vmem:[%s3888_s1 + $0x764] ss:$8 sps:$4 sm:$0xff]   ;;  %v2861_v3 = vld [vmem:[%s3888_s1 + $0x360] ss:$8 sps:$4 sm:$0xff]  }
  0xc4   :  { %1976 = vmatpush1.bf16.msra.mxu0 %v2828_v44  ;;  %1813 = vmatprep.subr.bf16.mxu1 %v2833_v45  ;;  %v2864_v4 = vld [vmem:[%s3888_s1 + $0x760] ss:$8 sps:$4 sm:$0xff]   ;;  %v2869_v5 = vld [vmem:[%s3888_s1 + $0x374] ss:$8 sps:$4 sm:$0xff]   ;;  %v2867_v7 = vld [vmem:[%s3888_s1 + $0x370] ss:$8 sps:$4 sm:$0xff]  }
  0xc5   :  { %1977 = vmatprep.subr.bf16.mxu0 %v2836_v46  ;;  %1843 = vmatprep.mubr.bf16.mxu1 %v342_v47  ;;  %v2872_v6 = vld [vmem:[%s3888_s1 + $0x774] ss:$8 sps:$4 sm:$0xff]   ;;  %v2870_v8 = vld [vmem:[%s3888_s1 + $0x770] ss:$8 sps:$4 sm:$0xff]   ;;  %v2875_v9 = vld [vmem:[%s3888_s1 + $0x384] ss:$8 sps:$4 sm:$0xff]   ;;  %v340_v47 = vcombine.high %v3236_v30, %v3236_v30 }
  0xc6   :  { %2007 = vmatprep.mubr.bf16.mxu0 %v391_v48  ;;  %v2878_v10 = vld [vmem:[%s3888_s1 + $0x784] ss:$8 sps:$4 sm:$0xff]   ;;  %v2873_v11 = vld [vmem:[%s3888_s1 + $0x380] ss:$8 sps:$4 sm:$0xff]   ;;  %v2881_v13 = vld [vmem:[%s3888_s1 + $0x394] ss:$8 sps:$4 sm:$0xff]   ;;  %v389_v48 = vcombine.high %v3241_v33, %v3241_v33 }
  0xc7   :  { %1814 = vmatpush1.bf16.msra.mxu1 %v2831_v49  ;;  %v2876_v12 = vld [vmem:[%s3888_s1 + $0x780] ss:$8 sps:$4 sm:$0xff]   ;;  %v2884_v14 = vld [vmem:[%s3888_s1 + $0x794] ss:$8 sps:$4 sm:$0xff]   ;;  %v2879_v15 = vld [vmem:[%s3888_s1 + $0x390] ss:$8 sps:$4 sm:$0xff]  }
  0xc8   :  { %1978 = vmatpush1.bf16.msra.mxu0 %v2834_v50  ;;  %1815 = vmatprep.subr.bf16.mxu1 %v2839_v28  ;;  %v2882_v16 = vld [vmem:[%s3888_s1 + $0x790] ss:$8 sps:$4 sm:$0xff]   ;;  %v2887_v17 = vld [vmem:[%s3888_s1 + $0x3a4] ss:$8 sps:$4 sm:$0xff]   ;;  %v2885_v19 = vld [vmem:[%s3888_s1 + $0x3a0] ss:$8 sps:$4 sm:$0xff]  }
  0xc9   :  { %1979 = vmatprep.subr.bf16.mxu0 %v2842_v29  ;;  %v2890_v18 = vld [vmem:[%s3888_s1 + $0x7a4] ss:$8 sps:$4 sm:$0xff]   ;;  %v2888_v22 = vld [vmem:[%s3888_s1 + $0x7a0] ss:$8 sps:$4 sm:$0xff]   ;;  %v2893_v23 = vld [vmem:[%s3888_s1 + $0x3b4] ss:$8 sps:$4 sm:$0xff]  }
  0xca   :  { %v2896_v24 = vld [vmem:[%s3888_s1 + $0x7b4] ss:$8 sps:$4 sm:$0xff]   ;;  %v2891_v25 = vld [vmem:[%s3888_s1 + $0x3b0] ss:$8 sps:$4 sm:$0xff]   ;;  %v2899_v27 = vld [vmem:[%s3888_s1 + $0x3c4] ss:$8 sps:$4 sm:$0xff]  }
  0xcb   :  { %1816 = vmatpush1.bf16.msra.mxu1 %v2837_v51  ;;  %v2894_v26 = vld [vmem:[%s3888_s1 + $0x7b0] ss:$8 sps:$4 sm:$0xff]   ;;  %v2902_v31 = vld [vmem:[%s3888_s1 + $0x7c4] ss:$8 sps:$4 sm:$0xff]   ;;  %v2897_v32 = vld [vmem:[%s3888_s1 + $0x3c0] ss:$8 sps:$4 sm:$0xff]  }
  0xcc   :  { %1980 = vmatpush1.bf16.msra.mxu0 %v2840_v52  ;;  %1817 = vmatprep.subr.bf16.mxu1 %v2845_v53  ;;  %v2900_v34 = vld [vmem:[%s3888_s1 + $0x7c0] ss:$8 sps:$4 sm:$0xff]   ;;  %v2905_v35 = vld [vmem:[%s3888_s1 + $0x3d4] ss:$8 sps:$4 sm:$0xff]   ;;  %v2903_v37 = vld [vmem:[%s3888_s1 + $0x3d0] ss:$8 sps:$4 sm:$0xff]  }
  0xcd   :  { %1981 = vmatprep.subr.bf16.mxu0 %v2848_v54  ;;  %v2908_v36 = vld [vmem:[%s3888_s1 + $0x7d4] ss:$8 sps:$4 sm:$0xff]   ;;  %v2906_v38 = vld [vmem:[%s3888_s1 + $0x7d0] ss:$8 sps:$4 sm:$0xff]   ;;  %v2911_v39 = vld [vmem:[%s3888_s1 + $0x3e4] ss:$8 sps:$4 sm:$0xff]  }
  0xce   :  { %v2914_v40 = vld [vmem:[%s3888_s1 + $0x7e4] ss:$8 sps:$4 sm:$0xff]   ;;  %v2909_v41 = vld [vmem:[%s3888_s1 + $0x3e0] ss:$8 sps:$4 sm:$0xff]   ;;  %v2917_v21 = vld [vmem:[%s3888_s1 + $0x3f4] ss:$8 sps:$4 sm:$0xff]  }
  0xcf   :  { %1818 = vmatpush1.bf16.msra.mxu1 %v2843_v55  ;;  %v2912_v20 = vld [vmem:[%s3888_s1 + $0x7e0] ss:$8 sps:$4 sm:$0xff]   ;;  %v2920_v43 = vld [vmem:[%s3888_s1 + $0x7f4] ss:$8 sps:$4 sm:$0xff]   ;;  %v2915_v44 = vld [vmem:[%s3888_s1 + $0x3f0] ss:$8 sps:$4 sm:$0xff]  }
  0xd0   :  { %1982 = vmatpush1.bf16.msra.mxu0 %v2846_v56  ;;  %1819 = vmatprep.subr.bf16.mxu1 %v2851_v57  ;;  %v2918_v45 = vld [vmem:[%s3888_s1 + $0x7f0] ss:$8 sps:$4 sm:$0xff]   ;;  %v2921_v46 = vld [vmem:[%s3890_s3 + $0x40] sm:$0xff]   ;;  %v2923_v50 = vld [vmem:[%s3890_s3 + $0x48] sm:$0xff]   ;;  %s2962_s23 = smov [#allocation2]  }
  0xd1   :  { %1983 = vmatprep.subr.bf16.mxu0 %v2854_v58  ;;  %v2922_v49 = vld [vmem:[%s3890_s3] sm:$0xff]   ;;  %v2924_v30 = vld [vmem:[%s3890_s3 + $0x8] sm:$0xff]   ;;  %v2925_v33 = vld [vmem:[%s3890_s3 + $0x50] sm:$0xff]   ;;  %s2202_s24 = sshll.u32 %s2962_s23, 4  ;;  %s2203_s24 = int_to_ptr.vmem [resolvable:$true] %s2202_s24 }
  0xd2   :  { %v2926_v28 = vld [vmem:[%s3890_s3 + $0x10] sm:$0xff]   ;;  %v2927_v29 = vld [vmem:[%s3890_s3 + $0x58] sm:$0xff]   ;;  %v2929_v52 = vld [vmem:[%s3890_s3 + $0x60] sm:$0xff]   ;;  %s2937_s25 = scalar_lea.vmem %s2203_s24, 32  ;;  %p2942_p1 = scmp.lt.s32.totalorder %s2203_s24, %s2203_s24 }
  0xd3   :  { %1820 = vmatpush1.bf16.msra.mxu1 %v2849_v59  ;;  %v2928_v51 = vld [vmem:[%s3890_s3 + $0x18] sm:$0xff]   ;;  %v2930_v53 = vld [vmem:[%s3890_s3 + $0x20] sm:$0xff]   ;;  %v2931_v54 = vld [vmem:[%s3890_s3 + $0x68] sm:$0xff]   ;;  %p2938_p0 = scmp.ne.s32.totalorder %s2203_s24, %s2937_s25  ;;  %p2943_p2 = scmp.lt.s32.totalorder %s2937_s25, %s2937_s25 }
  0xd4   :  { %1984 = vmatpush1.bf16.msra.mxu0 %v2852_v60  ;;  %1821 = vmatprep.subr.bf16.mxu1 %v2857_v61  ;;  %v2932_v55 = vld [vmem:[%s3890_s3 + $0x28] sm:$0xff]   ;;  %v2933_v56 = vld [vmem:[%s3890_s3 + $0x70] sm:$0xff]   ;;  %v2935_v58 = vld [vmem:[%s3890_s3 + $0x78] sm:$0xff]   ;;  %v284_v60 = vsub.s32 0, %v3110_v42 }
  0xd5   :  { %1985 = vmatprep.subr.bf16.mxu0 %v2860_v62  ;;  %v2934_v57 = vld [vmem:[%s3890_s3 + $0x30] sm:$0xff]   ;;  %v2936_v59 = vld [vmem:[%s3890_s3 + $0x38] sm:$0xff]   ;;  %v280_v61 = vld [vmem:[%s3889_s2] sm:$0x3]  ;;  %v288_v62 = vsub.s32 1, %v3110_v42  ;;  %p2944_p3 = por %p2943_p2, %p2942_p1 }
  0xd7   :  { %1822 = vmatpush1.bf16.msra.mxu1 %v2855_v63  ;;  %v285_v63 = vrot.slane %v280_v61, %v284_v60  ;;  %p2945_p4 = pnand %p2944_p3, %p2938_p0 }
  0xd8   :  { %1986 = vmatpush1.bf16.msra.mxu0 %v2858_v0  ;;  %1823 = vmatprep.subr.bf16.mxu1 %v2863_v1  ;;  %v289_v0 = vrot.slane %v280_v61, %v288_v62 }
  0xd9   :  { %1987 = vmatprep.subr.bf16.mxu0 %v2866_v2 }
  0xdb   :  { %1824 = vmatpush1.bf16.msra.mxu1 %v2861_v3 }
  0xdc   :  { %1988 = vmatpush1.bf16.msra.mxu0 %v2864_v4  ;;  %1825 = vmatprep.subr.bf16.mxu1 %v2869_v5 }
  0xdd   :  { %1989 = vmatprep.subr.bf16.mxu0 %v2872_v6 }
  0xdf   :  { %1826 = vmatpush1.bf16.msra.mxu1 %v2867_v7 }
  0xe0   :  { %1990 = vmatpush1.bf16.msra.mxu0 %v2870_v8  ;;  %1827 = vmatprep.subr.bf16.mxu1 %v2875_v9 }
  0xe1   :  { %1991 = vmatprep.subr.bf16.mxu0 %v2878_v10 }
  0xe3   :  { %1828 = vmatpush1.bf16.msra.mxu1 %v2873_v11 }
  0xe4   :  { %1992 = vmatpush1.bf16.msra.mxu0 %v2876_v12  ;;  %1829 = vmatprep.subr.bf16.mxu1 %v2881_v13 }
  0xe5   :  { %1993 = vmatprep.subr.bf16.mxu0 %v2884_v14 }
  0xe7   :  { %1830 = vmatpush1.bf16.msra.mxu1 %v2879_v15 }
  0xe8   :  { %1994 = vmatpush1.bf16.msra.mxu0 %v2882_v16  ;;  %1831 = vmatprep.subr.bf16.mxu1 %v2887_v17 }
  0xe9   :  { %1995 = vmatprep.subr.bf16.mxu0 %v2890_v18  ;;  %v2466_v18 = vld [vmem:[%s3891_s4] ss:$0 sm:$0xff] }
  0xeb   :  { %1832 = vmatpush1.bf16.msra.mxu1 %v2885_v19 }
  0xec   :  { %1996 = vmatpush1.bf16.msra.mxu0 %v2888_v22  ;;  %1833 = vmatprep.subr.bf16.mxu1 %v2893_v23 }
  0xed   :  { %1997 = vmatprep.subr.bf16.mxu0 %v2896_v24 }
  0xef   :  { %1834 = vmatpush1.bf16.msra.mxu1 %v2891_v25 }
  0xf0   :  { %1998 = vmatpush1.bf16.msra.mxu0 %v2894_v26  ;;  %1835 = vmatprep.subr.bf16.mxu1 %v2899_v27 }
  0xf1   :  { %1999 = vmatprep.subr.bf16.mxu0 %v2902_v31 }
  0xf3   :  { %1836 = vmatpush1.bf16.msra.mxu1 %v2897_v32 }
  0xf4   :  { %2000 = vmatpush1.bf16.msra.mxu0 %v2900_v34  ;;  %1837 = vmatprep.subr.bf16.mxu1 %v2905_v35 }
  0xf5   :  { %2001 = vmatprep.subr.bf16.mxu0 %v2908_v36 }
  0xf7   :  { %1838 = vmatpush1.bf16.msra.mxu1 %v2903_v37 }
  0xf8   :  { %2002 = vmatpush1.bf16.msra.mxu0 %v2906_v38  ;;  %1839 = vmatprep.subr.bf16.mxu1 %v2911_v39 }
  0xf9   :  { %2003 = vmatprep.subr.bf16.mxu0 %v2914_v40 }
  0xfb   :  { %1840 = vmatpush1.bf16.msra.mxu1 %v2909_v41 }
  0xfc   :  { %2004 = vmatpush1.bf16.msra.mxu0 %v2912_v20  ;;  %1841 = vmatprep.subr.bf16.mxu1 %v2917_v21 }
  0xfd   :  { %2005 = vmatprep.subr.bf16.mxu0 %v2920_v43 }
  0xff   :  { %1842 = vmatpush1.bf16.msra.mxu1 %v2915_v44 }
 0x100   :  { %2006 = vmatpush1.bf16.msra.mxu0 %v2918_v45  ;;  %2483 = vmatprep.subr.bf16.mxu1 %v2921_v46 }
 0x102   :  { %1844 = vmatmul.mubr.bf16.vlgmr.msra.gmra.mrb[0].mxu1 %v340_v47 }
 0x103   :  { %2008 = vmatmul.mubr.bf16.vlgmr.msra.gmra.mrb[0].mxu0 %v389_v48  ;;  %2484 = vmatpush3.bf16.msra.mxu1 %v2922_v49 }
 0x104   :  { %2485 = vmatprep.subr.bf16.mxu1 %v2923_v50 }
 0x107   :  { %2486 = vmatpush3.bf16.msra.mxu1 %v2924_v30 }
 0x108   :  { %2487 = vmatprep.subr.bf16.mxu1 %v2925_v33 }
 0x10b   :  { %2488 = vmatpush3.bf16.msra.mxu1 %v2926_v28 }
 0x10c   :  { %2489 = vmatprep.subr.bf16.mxu1 %v2927_v29 }
 0x10f   :  { %2490 = vmatpush3.bf16.msra.mxu1 %v2928_v51 }
 0x110   :  { %2491 = vmatprep.subr.bf16.mxu1 %v2929_v52 }
 0x113   :  { %2492 = vmatpush3.bf16.msra.mxu1 %v2930_v53 }
 0x114   :  { %2493 = vmatprep.subr.bf16.mxu1 %v2931_v54 }
 0x117   :  { %2494 = vmatpush3.bf16.msra.mxu1 %v2932_v55 }
 0x118   :  { %2495 = vmatprep.subr.bf16.mxu1 %v2933_v56 }
 0x11b   :  { %2496 = vmatpush3.bf16.msra.mxu1 %v2934_v57 }
 0x11c   :  { %2497 = vmatprep.subr.bf16.mxu1 %v2935_v58 }
 0x11f   :  { %2498 = vmatpush3.bf16.msra.mxu1 %v2936_v59 }
 0x1d5   :  { %v1845_v1 = vpop.f32.mrb[0].mxu1 }
 0x1d6   :  { %v2009_v2 = vpop.f32.mrb[0].mxu0  ;;  %v2505_v3 = vadd.f32 %v1845_v1, %v285_v63  ;;  %v1847_v4 = vpop.f32.mrb[1].mxu1 }
 0x1d7   :  { %v2011_v5 = vpop.f32.mrb[1].mxu0  ;;  %v2507_v6 = vadd.f32 %v1847_v4, %v289_v0  ;;  %v1849_v7 = vpop.f32.mrb[2].mxu1 }
 0x1d8   :  { %v2013_v8 = vpop.f32.mrb[2].mxu0  ;;  %v2506_v9 = vadd.f32 %v2505_v3, %v2009_v2  ;;  %v1850_v10 = vpop.f32.mrb[3].mxu1 }
 0x1d9   :  { %v2014_v11 = vpop.f32.mrb[3].mxu0  ;;  %v2508_v12 = vadd.f32 %v2507_v6, %v2011_v5 }
 0x1da   :  { %v2016_v13 = vmax.f32 %v2506_v9, 0.0 }
 0x1db   :  { %v2017_v14 = vmax.f32 %v2508_v12, 0.0 }
 0x1dc   :  { %v2018_v16 = vpack.c.bf16 %v2016_v13, %v2016_v13 }
 0x1dd   :  { %v2019_v15 = vpack.c.bf16 %v2017_v14, %v2017_v14 }
 0x1df   :  { %2187 = vmatprep.mubr.bf16.mxu1 %v2019_v15 }
 0x1e0   :  { %2188 = vmatmul.mubr.bf16.vlgmr.msra.gmra.mrb[4].mxu1 %v2018_v16 }
 0x2b3   :  { %v2499_v42 = vpop.f32.mrb[4].mxu1 }
 0x2b4   :  { %v2500_v17 = vpop.f32.mrb[5].mxu1 }
 0x2b5   :  { %v2501_v19 = vadd.f32 %v2500_v17, %v2499_v42  ;;  %v2502_v22 = vpop.f32.mrb[6].mxu1 }
 0x2b6   :  { %v2503_v23 = vpop.f32.mrb[7].mxu1 }
 0x2b7   :  { %v2190_v24 = vadd.f32 %v2501_v19, %v2466_v18 }
 0x2b9   :  { %2195 = vst [vmem:[#allocation2] sm:$0x3] %v2190_v24 }
 0x2ba   :  { %2948 = shalt.err (!%p2945_p4)
}
 0x2bb   :  { %s2949_s28 = scalar_lea.hbm %s3892_s5, 32 }
 0x2bc   :  { %p2950_p5 = scmp.ne.s32.totalorder %s3892_s5, %s2949_s28  ;;  %p2953_p6 = scmp.lt.u32.totalorder %s2949_s28, %s3892_s5 }
 0x2be   :  { %p2955_p7 = pnand %p2953_p6, %p2950_p5 }
 0x2c0   :  { %2958 = shalt.err (!%p2955_p7)
}
 0x2c1   :  { %2205 = dma.vmem_to_hbm [thread:$0]  %s2203_s24, 32, %s3892_s5, [#allocation3]  }
 0x2c2   :  { %2959 = dma.done.wait [#allocation3], 32  }
 0x2c3   :  { %2960 = vsyncadd [#allocation3], 4294967264 }
 0x2c4   :  { %2209 = vsyncpa [#allocation3], 1 }

// kernel: simple_cnn_forward.4
= control target key start
LH: loop header
LB: loop body
LE: loop exit
PB: predicated region body
PF: predicated region fallthrough
CT: control target
= control target key end

     0   :  { %v7319_v1 = vmov 0   ;;  %s8393_s1 = inlined_call_operand.vmem [shape: bf16[9,128,256], index: 1, kind: input, shape index: {}]   ;;  %s8394_s0 = inlined_call_operand.vmem [shape: bf16[1,16,16,128], index: 0, kind: input, shape index: {}]   ;;  %s8395_s2 = inlined_call_operand.vmem [shape: f32[1,256], index: 2, kind: input, shape index: {}]   ;;  %s8396_s3 = inlined_call_operand.vmem [shape: bf16[1,16,256], index: 3, kind: output, shape index: {}]  }
   0x1   :  { %v6851_v0 = vld [vmem:[%s8393_s1 + $0x84] ss:$8 sps:$4 sm:$0xff]   ;;  %171 = vmatprep.mubr.bf16.mxu0 %v7319_v1  ;;  %1540 = vmatprep.mubr.bf16.mxu1 %v7319_v1  ;;  %v6853_v2 = vld [vmem:[%s8393_s1 + $0x80] ss:$8 sps:$4 sm:$0xff]   ;;  %v6854_v3 = vld [vmem:[%s8393_s1 + $0x94] ss:$8 sps:$4 sm:$0xff]  }
   0x2   :  { %139 = vmatprep.subr.bf16.mxu0 %v6851_v0  ;;  %1508 = vmatprep.subr.bf16.mxu1 %v6851_v0  ;;  %v6856_v4 = vld [vmem:[%s8393_s1 + $0x90] ss:$8 sps:$4 sm:$0xff]   ;;  %v6857_v5 = vld [vmem:[%s8393_s1 + $0xa4] ss:$8 sps:$4 sm:$0xff]   ;;  %v6859_v6 = vld [vmem:[%s8393_s1 + $0xa0] ss:$8 sps:$4 sm:$0xff]  }
   0x3   :  { %140 = vmatpush1.bf16.msra.mxu0 %v6853_v2  ;;  %1509 = vmatpush1.bf16.msra.mxu1 %v6853_v2  ;;  %v6860_v7 = vld [vmem:[%s8393_s1 + $0xb4] ss:$8 sps:$4 sm:$0xff]   ;;  %v6862_v8 = vld [vmem:[%s8393_s1 + $0xb0] ss:$8 sps:$4 sm:$0xff]   ;;  %v6863_v9 = vld [vmem:[%s8393_s1 + $0xc4] ss:$8 sps:$4 sm:$0xff]  }
   0x4   :  { %141 = vmatprep.subr.bf16.mxu0 %v6854_v3  ;;  %1510 = vmatprep.subr.bf16.mxu1 %v6854_v3  ;;  %v6865_v10 = vld [vmem:[%s8393_s1 + $0xc0] ss:$8 sps:$4 sm:$0xff]   ;;  %v6866_v11 = vld [vmem:[%s8393_s1 + $0xd4] ss:$8 sps:$4 sm:$0xff]   ;;  %v6868_v12 = vld [vmem:[%s8393_s1 + $0xd0] ss:$8 sps:$4 sm:$0xff]  }
   0x5   :  { %v6869_v13 = vld [vmem:[%s8393_s1 + $0xe4] ss:$8 sps:$4 sm:$0xff]   ;;  %v6871_v14 = vld [vmem:[%s8393_s1 + $0xe0] ss:$8 sps:$4 sm:$0xff]   ;;  %v6872_v15 = vld [vmem:[%s8393_s1 + $0xf4] ss:$8 sps:$4 sm:$0xff]  }
   0x6   :  { %v6874_v16 = vld [vmem:[%s8393_s1 + $0xf0] ss:$8 sps:$4 sm:$0xff]   ;;  %v6877_v17 = vld [vmem:[%s8393_s1 + $0x4] ss:$8 sps:$4 sm:$0xff]   ;;  %v6875_v20 = vld [vmem:[%s8393_s1] ss:$8 sps:$4 sm:$0xff]  }
   0x7   :  { %142 = vmatpush1.bf16.msra.mxu0 %v6856_v4  ;;  %1511 = vmatpush1.bf16.msra.mxu1 %v6856_v4  ;;  %v6878_v18 = vld [vmem:[%s8394_s0 + $0x20] sm:$0xff]   ;;  %v6879_v19 = vld [vmem:[%s8394_s0 + $0x8] sm:$0xff]   ;;  %v6882_v21 = vld [vmem:[%s8393_s1 + $0x14] ss:$8 sps:$4 sm:$0xff]  }
   0x8   :  { %143 = vmatprep.subr.bf16.mxu0 %v6857_v5  ;;  %1512 = vmatprep.subr.bf16.mxu1 %v6857_v5  ;;  %v6880_v22 = vld [vmem:[%s8393_s1 + $0x10] ss:$8 sps:$4 sm:$0xff]   ;;  %v6885_v23 = vld [vmem:[%s8393_s1 + $0x24] ss:$8 sps:$4 sm:$0xff]   ;;  %v6883_v24 = vld [vmem:[%s8393_s1 + $0x20] ss:$8 sps:$4 sm:$0xff]  }
   0x9   :  { %v6888_v25 = vld [vmem:[%s8393_s1 + $0x34] ss:$8 sps:$4 sm:$0xff]   ;;  %v6886_v26 = vld [vmem:[%s8393_s1 + $0x30] ss:$8 sps:$4 sm:$0xff]   ;;  %v6891_v27 = vld [vmem:[%s8393_s1 + $0x44] ss:$8 sps:$4 sm:$0xff]  }
   0xa   :  { %v6889_v28 = vld [vmem:[%s8393_s1 + $0x40] ss:$8 sps:$4 sm:$0xff]   ;;  %v6894_v29 = vld [vmem:[%s8393_s1 + $0x54] ss:$8 sps:$4 sm:$0xff]   ;;  %v6892_v30 = vld [vmem:[%s8393_s1 + $0x50] ss:$8 sps:$4 sm:$0xff]  }
   0xb   :  { %144 = vmatpush1.bf16.msra.mxu0 %v6859_v6  ;;  %1513 = vmatpush1.bf16.msra.mxu1 %v6859_v6  ;;  %v6897_v31 = vld [vmem:[%s8393_s1 + $0x64] ss:$8 sps:$4 sm:$0xff]   ;;  %v6895_v32 = vld [vmem:[%s8393_s1 + $0x60] ss:$8 sps:$4 sm:$0xff]   ;;  %v6900_v33 = vld [vmem:[%s8393_s1 + $0x74] ss:$8 sps:$4 sm:$0xff]  }
   0xc   :  { %145 = vmatprep.subr.bf16.mxu0 %v6860_v7  ;;  %1514 = vmatprep.subr.bf16.mxu1 %v6860_v7  ;;  %v6898_v34 = vld [vmem:[%s8393_s1 + $0x70] ss:$8 sps:$4 sm:$0xff]   ;;  %v6903_v35 = vld [vmem:[%s8393_s1 + $0x104] ss:$8 sps:$4 sm:$0xff]   ;;  %v6901_v38 = vld [vmem:[%s8393_s1 + $0x100] ss:$8 sps:$4 sm:$0xff]  }
   0xd   :  { %v6904_v36 = vld [vmem:[%s8394_s0] sm:$0xff]   ;;  %v6908_v39 = vld [vmem:[%s8393_s1 + $0x114] ss:$8 sps:$4 sm:$0xff]   ;;  %v6906_v40 = vld [vmem:[%s8393_s1 + $0x110] ss:$8 sps:$4 sm:$0xff]  }
   0xe   :  { %v6905_v37 = vld [vmem:[%s8394_s0 + $0x20] sm:$0xff]   ;;  %v6914_v43 = vld [vmem:[%s8393_s1 + $0x134] ss:$8 sps:$4 sm:$0xff]   ;;  %v6912_v44 = vld [vmem:[%s8393_s1 + $0x130] ss:$8 sps:$4 sm:$0xff]  }
   0xf   :  { %146 = vmatpush1.bf16.msra.mxu0 %v6862_v8  ;;  %1515 = vmatpush1.bf16.msra.mxu1 %v6862_v8  ;;  %v6911_v41 = vld [vmem:[%s8393_s1 + $0x124] ss:$8 sps:$4 sm:$0xff]   ;;  %v6909_v42 = vld [vmem:[%s8393_s1 + $0x120] ss:$8 sps:$4 sm:$0xff]   ;;  %v6920_v47 = vld [vmem:[%s8393_s1 + $0x154] ss:$8 sps:$4 sm:$0xff]  }
  0x10   :  { %147 = vmatprep.subr.bf16.mxu0 %v6863_v9  ;;  %1516 = vmatprep.subr.bf16.mxu1 %v6863_v9  ;;  %v6917_v45 = vld [vmem:[%s8393_s1 + $0x144] ss:$8 sps:$4 sm:$0xff]   ;;  %v6915_v46 = vld [vmem:[%s8393_s1 + $0x140] ss:$8 sps:$4 sm:$0xff]   ;;  %v6918_v48 = vld [vmem:[%s8393_s1 + $0x150] ss:$8 sps:$4 sm:$0xff]  }
  0x11   :  { %v6923_v49 = vld [vmem:[%s8393_s1 + $0x164] ss:$8 sps:$4 sm:$0xff]   ;;  %v6921_v50 = vld [vmem:[%s8393_s1 + $0x160] ss:$8 sps:$4 sm:$0xff]   ;;  %v6926_v51 = vld [vmem:[%s8393_s1 + $0x174] ss:$8 sps:$4 sm:$0xff]  }
  0x12   :  { %v6924_v52 = vld [vmem:[%s8393_s1 + $0x170] ss:$8 sps:$4 sm:$0xff]   ;;  %v6929_v53 = vld [vmem:[%s8393_s1 + $0x184] ss:$8 sps:$4 sm:$0xff]   ;;  %v6927_v56 = vld [vmem:[%s8393_s1 + $0x180] ss:$8 sps:$4 sm:$0xff]  }
  0x13   :  { %148 = vmatpush1.bf16.msra.mxu0 %v6865_v10  ;;  %1517 = vmatpush1.bf16.msra.mxu1 %v6865_v10  ;;  %v6930_v54 = vld [vmem:[%s8394_s0 + $0x8] sm:$0xff]   ;;  %v6934_v57 = vld [vmem:[%s8393_s1 + $0x194] ss:$8 sps:$4 sm:$0xff]   ;;  %v6932_v58 = vld [vmem:[%s8393_s1 + $0x190] ss:$8 sps:$4 sm:$0xff]  }
  0x14   :  { %149 = vmatprep.subr.bf16.mxu0 %v6866_v11  ;;  %1518 = vmatprep.subr.bf16.mxu1 %v6866_v11  ;;  %v6931_v55 = vld [vmem:[%s8394_s0 + $0x28] sm:$0xff]   ;;  %v6940_v61 = vld [vmem:[%s8393_s1 + $0x1b4] ss:$8 sps:$4 sm:$0xff]   ;;  %v6938_v62 = vld [vmem:[%s8393_s1 + $0x1b0] ss:$8 sps:$4 sm:$0xff]  }
  0x15   :  { %v6937_v59 = vld [vmem:[%s8393_s1 + $0x1a4] ss:$8 sps:$4 sm:$0xff]   ;;  %v6935_v60 = vld [vmem:[%s8393_s1 + $0x1a0] ss:$8 sps:$4 sm:$0xff]   ;;  %v6946_v2 = vld [vmem:[%s8393_s1 + $0x1d4] ss:$8 sps:$4 sm:$0xff]  }
  0x16   :  { %v6943_v63 = vld [vmem:[%s8393_s1 + $0x1c4] ss:$8 sps:$4 sm:$0xff]   ;;  %v6941_v0 = vld [vmem:[%s8393_s1 + $0x1c0] ss:$8 sps:$4 sm:$0xff]   ;;  %v6944_v3 = vld [vmem:[%s8393_s1 + $0x1d0] ss:$8 sps:$4 sm:$0xff]  }
  0x17   :  { %150 = vmatpush1.bf16.msra.mxu0 %v6868_v12  ;;  %1519 = vmatpush1.bf16.msra.mxu1 %v6868_v12  ;;  %v6949_v4 = vld [vmem:[%s8393_s1 + $0x1e4] ss:$8 sps:$4 sm:$0xff]   ;;  %v6947_v5 = vld [vmem:[%s8393_s1 + $0x1e0] ss:$8 sps:$4 sm:$0xff]   ;;  %v6952_v6 = vld [vmem:[%s8393_s1 + $0x1f4] ss:$8 sps:$4 sm:$0xff]  }
  0x18   :  { %151 = vmatprep.subr.bf16.mxu0 %v6869_v13  ;;  %1520 = vmatprep.subr.bf16.mxu1 %v6869_v13  ;;  %v6950_v7 = vld [vmem:[%s8393_s1 + $0x1f0] ss:$8 sps:$4 sm:$0xff]   ;;  %v6955_v8 = vld [vmem:[%s8393_s1 + $0x204] ss:$8 sps:$4 sm:$0xff]   ;;  %v6953_v11 = vld [vmem:[%s8393_s1 + $0x200] ss:$8 sps:$4 sm:$0xff]  }
  0x19   :  { %v6956_v9 = vld [vmem:[%s8394_s0 + $0x40] sm:$0xff]   ;;  %v6960_v12 = vld [vmem:[%s8393_s1 + $0x214] ss:$8 sps:$4 sm:$0xff]   ;;  %v6958_v13 = vld [vmem:[%s8393_s1 + $0x210] ss:$8 sps:$4 sm:$0xff]  }
  0x1a   :  { %v6957_v10 = vld [vmem:[%s8394_s0 + $0x60] sm:$0xff]  }
  0x1b   :  { %152 = vmatpush1.bf16.msra.mxu0 %v6871_v14  ;;  %1521 = vmatpush1.bf16.msra.mxu1 %v6871_v14  ;;  %v6963_v14 = vld [vmem:[%s8393_s1 + $0x224] ss:$8 sps:$4 sm:$0xff]  }
  0x1c   :  { %153 = vmatprep.subr.bf16.mxu0 %v6872_v15  ;;  %1522 = vmatprep.subr.bf16.mxu1 %v6872_v15  ;;  %v6961_v15 = vld [vmem:[%s8393_s1 + $0x220] ss:$8 sps:$4 sm:$0xff]  }
  0x1f   :  { %154 = vmatpush1.bf16.msra.mxu0 %v6874_v16  ;;  %1523 = vmatpush1.bf16.msra.mxu1 %v6874_v16  ;;  %v6966_v16 = vld [vmem:[%s8393_s1 + $0x234] ss:$8 sps:$4 sm:$0xff]  }
  0x20   :  { %268 = vmatprep.subr.bf16.mxu0 %v6877_v17  ;;  %1637 = vmatprep.subr.bf16.mxu1 %v6877_v17  ;;  %v6964_v17 = vld [vmem:[%s8393_s1 + $0x230] ss:$8 sps:$4 sm:$0xff]  }
  0x22   :  { %172 = vmatmul.mubr.bf16.vlgmr.msra.gmra.mrb[0].mxu0 %v6878_v18  ;;  %1541 = vmatmul.mubr.bf16.vlgmr.msra.gmra.mrb[0].mxu1 %v6879_v19  ;;  %v6969_v18 = vld [vmem:[%s8393_s1 + $0x244] ss:$8 sps:$4 sm:$0xff]   ;;  %v6967_v19 = vld [vmem:[%s8393_s1 + $0x240] ss:$8 sps:$4 sm:$0xff]  }
  0x23   :  { %269 = vmatpush1.bf16.msra.mxu0 %v6875_v20  ;;  %1638 = vmatpush1.bf16.msra.mxu1 %v6875_v20  ;;  %v6972_v20 = vld [vmem:[%s8393_s1 + $0x254] ss:$8 sps:$4 sm:$0xff]  }
  0x24   :  { %270 = vmatprep.subr.bf16.mxu0 %v6882_v21  ;;  %1639 = vmatprep.subr.bf16.mxu1 %v6882_v21  ;;  %v6970_v21 = vld [vmem:[%s8393_s1 + $0x250] ss:$8 sps:$4 sm:$0xff]  }
  0x25   :  { %300 = vmatprep.mubr.bf16.mxu0 %v7319_v1  ;;  %1669 = vmatprep.mubr.bf16.mxu1 %v7319_v1 }
  0x27   :  { %271 = vmatpush1.bf16.msra.mxu0 %v6880_v22  ;;  %1640 = vmatpush1.bf16.msra.mxu1 %v6880_v22  ;;  %v6975_v22 = vld [vmem:[%s8393_s1 + $0x264] ss:$8 sps:$4 sm:$0xff]  }
  0x28   :  { %272 = vmatprep.subr.bf16.mxu0 %v6885_v23  ;;  %1641 = vmatprep.subr.bf16.mxu1 %v6885_v23  ;;  %v6973_v23 = vld [vmem:[%s8393_s1 + $0x260] ss:$8 sps:$4 sm:$0xff]  }
  0x2b   :  { %273 = vmatpush1.bf16.msra.mxu0 %v6883_v24  ;;  %1642 = vmatpush1.bf16.msra.mxu1 %v6883_v24  ;;  %v6978_v24 = vld [vmem:[%s8393_s1 + $0x274] ss:$8 sps:$4 sm:$0xff]  }
  0x2c   :  { %274 = vmatprep.subr.bf16.mxu0 %v6888_v25  ;;  %1643 = vmatprep.subr.bf16.mxu1 %v6888_v25  ;;  %v6976_v25 = vld [vmem:[%s8393_s1 + $0x270] ss:$8 sps:$4 sm:$0xff]  }
  0x2f   :  { %275 = vmatpush1.bf16.msra.mxu0 %v6886_v26  ;;  %1644 = vmatpush1.bf16.msra.mxu1 %v6886_v26  ;;  %v6981_v26 = vld [vmem:[%s8393_s1 + $0x284] ss:$8 sps:$4 sm:$0xff]  }
  0x30   :  { %276 = vmatprep.subr.bf16.mxu0 %v6891_v27  ;;  %1645 = vmatprep.subr.bf16.mxu1 %v6891_v27  ;;  %v6982_v27 = vld [vmem:[%s8394_s0 + $0x60] sm:$0xff]  }
  0x33   :  { %277 = vmatpush1.bf16.msra.mxu0 %v6889_v28  ;;  %1646 = vmatpush1.bf16.msra.mxu1 %v6889_v28  ;;  %v6983_v28 = vld [vmem:[%s8394_s0 + $0x48] sm:$0xff]  }
  0x34   :  { %278 = vmatprep.subr.bf16.mxu0 %v6894_v29  ;;  %1647 = vmatprep.subr.bf16.mxu1 %v6894_v29  ;;  %v6979_v29 = vld [vmem:[%s8393_s1 + $0x280] ss:$8 sps:$4 sm:$0xff]  }
  0x37   :  { %279 = vmatpush1.bf16.msra.mxu0 %v6892_v30  ;;  %1648 = vmatpush1.bf16.msra.mxu1 %v6892_v30  ;;  %v6986_v30 = vld [vmem:[%s8393_s1 + $0x294] ss:$8 sps:$4 sm:$0xff]  }
  0x38   :  { %280 = vmatprep.subr.bf16.mxu0 %v6897_v31  ;;  %1649 = vmatprep.subr.bf16.mxu1 %v6897_v31  ;;  %v6984_v31 = vld [vmem:[%s8393_s1 + $0x290] ss:$8 sps:$4 sm:$0xff]  }
  0x3b   :  { %281 = vmatpush1.bf16.msra.mxu0 %v6895_v32  ;;  %1650 = vmatpush1.bf16.msra.mxu1 %v6895_v32  ;;  %v6989_v32 = vld [vmem:[%s8393_s1 + $0x2a4] ss:$8 sps:$4 sm:$0xff]  }
  0x3c   :  { %282 = vmatprep.subr.bf16.mxu0 %v6900_v33  ;;  %1651 = vmatprep.subr.bf16.mxu1 %v6900_v33  ;;  %v6987_v33 = vld [vmem:[%s8393_s1 + $0x2a0] ss:$8 sps:$4 sm:$0xff]  }
  0x3f   :  { %283 = vmatpush1.bf16.msra.mxu0 %v6898_v34  ;;  %1652 = vmatpush1.bf16.msra.mxu1 %v6898_v34  ;;  %v6992_v34 = vld [vmem:[%s8393_s1 + $0x2b4] ss:$8 sps:$4 sm:$0xff]  }
  0x40   :  { %417 = vmatprep.subr.bf16.mxu0 %v6903_v35  ;;  %1785 = vmatprep.subr.bf16.mxu1 %v6903_v35  ;;  %v6990_v35 = vld [vmem:[%s8393_s1 + $0x2b0] ss:$8 sps:$4 sm:$0xff]  }
  0x42   :  { %301 = vmatmul.mubr.bf16.vlgmr.msra.gmra.mrb[0].mxu0 %v6904_v36  ;;  %1670 = vmatmul.mubr.bf16.vlgmr.msra.gmra.mrb[0].mxu1 %v6905_v37  ;;  %v6995_v36 = vld [vmem:[%s8393_s1 + $0x2c4] ss:$8 sps:$4 sm:$0xff]   ;;  %v6993_v37 = vld [vmem:[%s8393_s1 + $0x2c0] ss:$8 sps:$4 sm:$0xff]  }
  0x43   :  { %418 = vmatpush1.bf16.msra.mxu0 %v6901_v38  ;;  %1786 = vmatpush1.bf16.msra.mxu1 %v6901_v38  ;;  %v6998_v38 = vld [vmem:[%s8393_s1 + $0x2d4] ss:$8 sps:$4 sm:$0xff]  }
  0x44   :  { %419 = vmatprep.subr.bf16.mxu0 %v6908_v39  ;;  %1787 = vmatprep.subr.bf16.mxu1 %v6908_v39  ;;  %v6996_v39 = vld [vmem:[%s8393_s1 + $0x2d0] ss:$8 sps:$4 sm:$0xff]  }
  0x45   :  { %449 = vmatprep.mubr.bf16.mxu0 %v7319_v1  ;;  %1817 = vmatprep.mubr.bf16.mxu1 %v7319_v1 }
  0x47   :  { %420 = vmatpush1.bf16.msra.mxu0 %v6906_v40  ;;  %1788 = vmatpush1.bf16.msra.mxu1 %v6906_v40  ;;  %v7001_v40 = vld [vmem:[%s8393_s1 + $0x2e4] ss:$8 sps:$4 sm:$0xff]  }
  0x48   :  { %421 = vmatprep.subr.bf16.mxu0 %v6911_v41  ;;  %1789 = vmatprep.subr.bf16.mxu1 %v6911_v41  ;;  %v6999_v41 = vld [vmem:[%s8393_s1 + $0x2e0] ss:$8 sps:$4 sm:$0xff]  }
  0x4b   :  { %422 = vmatpush1.bf16.msra.mxu0 %v6909_v42  ;;  %1790 = vmatpush1.bf16.msra.mxu1 %v6909_v42  ;;  %v7004_v42 = vld [vmem:[%s8393_s1 + $0x2f4] ss:$8 sps:$4 sm:$0xff]  }
  0x4c   :  { %423 = vmatprep.subr.bf16.mxu0 %v6914_v43  ;;  %1791 = vmatprep.subr.bf16.mxu1 %v6914_v43  ;;  %v7002_v43 = vld [vmem:[%s8393_s1 + $0x2f0] ss:$8 sps:$4 sm:$0xff]  }
  0x4f   :  { %424 = vmatpush1.bf16.msra.mxu0 %v6912_v44  ;;  %1792 = vmatpush1.bf16.msra.mxu1 %v6912_v44  ;;  %v7007_v44 = vld [vmem:[%s8393_s1 + $0x304] ss:$8 sps:$4 sm:$0xff]  }
  0x50   :  { %425 = vmatprep.subr.bf16.mxu0 %v6917_v45  ;;  %1793 = vmatprep.subr.bf16.mxu1 %v6917_v45  ;;  %v7008_v45 = vld [vmem:[%s8394_s0 + $0x48] sm:$0xff]  }
  0x53   :  { %426 = vmatpush1.bf16.msra.mxu0 %v6915_v46  ;;  %1794 = vmatpush1.bf16.msra.mxu1 %v6915_v46  ;;  %v7009_v46 = vld [vmem:[%s8394_s0 + $0x68] sm:$0xff]  }
  0x54   :  { %427 = vmatprep.subr.bf16.mxu0 %v6920_v47  ;;  %1795 = vmatprep.subr.bf16.mxu1 %v6920_v47  ;;  %v7005_v47 = vld [vmem:[%s8393_s1 + $0x300] ss:$8 sps:$4 sm:$0xff]  }
  0x57   :  { %428 = vmatpush1.bf16.msra.mxu0 %v6918_v48  ;;  %1796 = vmatpush1.bf16.msra.mxu1 %v6918_v48  ;;  %v7012_v48 = vld [vmem:[%s8393_s1 + $0x314] ss:$8 sps:$4 sm:$0xff]  }
  0x58   :  { %429 = vmatprep.subr.bf16.mxu0 %v6923_v49  ;;  %1797 = vmatprep.subr.bf16.mxu1 %v6923_v49  ;;  %v7010_v49 = vld [vmem:[%s8393_s1 + $0x310] ss:$8 sps:$4 sm:$0xff]  }
  0x5b   :  { %430 = vmatpush1.bf16.msra.mxu0 %v6921_v50  ;;  %1798 = vmatpush1.bf16.msra.mxu1 %v6921_v50  ;;  %v7015_v50 = vld [vmem:[%s8393_s1 + $0x324] ss:$8 sps:$4 sm:$0xff]  }
  0x5c   :  { %431 = vmatprep.subr.bf16.mxu0 %v6926_v51  ;;  %1799 = vmatprep.subr.bf16.mxu1 %v6926_v51  ;;  %v7013_v51 = vld [vmem:[%s8393_s1 + $0x320] ss:$8 sps:$4 sm:$0xff]  }
  0x5f   :  { %432 = vmatpush1.bf16.msra.mxu0 %v6924_v52  ;;  %1800 = vmatpush1.bf16.msra.mxu1 %v6924_v52  ;;  %v7018_v52 = vld [vmem:[%s8393_s1 + $0x334] ss:$8 sps:$4 sm:$0xff]  }
  0x60   :  { %570 = vmatprep.subr.bf16.mxu0 %v6929_v53  ;;  %1936 = vmatprep.subr.bf16.mxu1 %v6929_v53  ;;  %v7016_v53 = vld [vmem:[%s8393_s1 + $0x330] ss:$8 sps:$4 sm:$0xff]  }
  0x62   :  { %450 = vmatmul.mubr.bf16.vlgmr.msra.gmra.mrb[0].mxu0 %v6930_v54  ;;  %1818 = vmatmul.mubr.bf16.vlgmr.msra.gmra.mrb[0].mxu1 %v6931_v55  ;;  %v7021_v54 = vld [vmem:[%s8393_s1 + $0x344] ss:$8 sps:$4 sm:$0xff]   ;;  %v7019_v55 = vld [vmem:[%s8393_s1 + $0x340] ss:$8 sps:$4 sm:$0xff]  }
  0x63   :  { %571 = vmatpush1.bf16.msra.mxu0 %v6927_v56  ;;  %1937 = vmatpush1.bf16.msra.mxu1 %v6927_v56  ;;  %v7024_v56 = vld [vmem:[%s8393_s1 + $0x354] ss:$8 sps:$4 sm:$0xff]  }
  0x64   :  { %572 = vmatprep.subr.bf16.mxu0 %v6934_v57  ;;  %1938 = vmatprep.subr.bf16.mxu1 %v6934_v57  ;;  %v7022_v57 = vld [vmem:[%s8393_s1 + $0x350] ss:$8 sps:$4 sm:$0xff]  }
  0x65   :  { %602 = vmatprep.mubr.bf16.mxu0 %v7319_v1  ;;  %1968 = vmatprep.mubr.bf16.mxu1 %v7319_v1 }
  0x67   :  { %573 = vmatpush1.bf16.msra.mxu0 %v6932_v58  ;;  %1939 = vmatpush1.bf16.msra.mxu1 %v6932_v58  ;;  %v7027_v58 = vld [vmem:[%s8393_s1 + $0x364] ss:$8 sps:$4 sm:$0xff]  }
  0x68   :  { %574 = vmatprep.subr.bf16.mxu0 %v6937_v59  ;;  %1940 = vmatprep.subr.bf16.mxu1 %v6937_v59  ;;  %v7025_v59 = vld [vmem:[%s8393_s1 + $0x360] ss:$8 sps:$4 sm:$0xff]  }
  0x6b   :  { %575 = vmatpush1.bf16.msra.mxu0 %v6935_v60  ;;  %1941 = vmatpush1.bf16.msra.mxu1 %v6935_v60  ;;  %v7030_v60 = vld [vmem:[%s8393_s1 + $0x374] ss:$8 sps:$4 sm:$0xff]  }
  0x6c   :  { %576 = vmatprep.subr.bf16.mxu0 %v6940_v61  ;;  %1942 = vmatprep.subr.bf16.mxu1 %v6940_v61  ;;  %v7028_v61 = vld [vmem:[%s8393_s1 + $0x370] ss:$8 sps:$4 sm:$0xff]  }
  0x6f   :  { %577 = vmatpush1.bf16.msra.mxu0 %v6938_v62  ;;  %1943 = vmatpush1.bf16.msra.mxu1 %v6938_v62  ;;  %v7033_v62 = vld [vmem:[%s8393_s1 + $0x384] ss:$8 sps:$4 sm:$0xff]  }
  0x70   :  { %578 = vmatprep.subr.bf16.mxu0 %v6943_v63  ;;  %1944 = vmatprep.subr.bf16.mxu1 %v6943_v63  ;;  %v7034_v63 = vld [vmem:[%s8394_s0 + $0x10] sm:$0xff]  }
  0x73   :  { %579 = vmatpush1.bf16.msra.mxu0 %v6941_v0  ;;  %1945 = vmatpush1.bf16.msra.mxu1 %v6941_v0  ;;  %v7035_v0 = vld [vmem:[%s8394_s0 + $0x30] sm:$0xff]  }
  0x74   :  { %580 = vmatprep.subr.bf16.mxu0 %v6946_v2  ;;  %1946 = vmatprep.subr.bf16.mxu1 %v6946_v2  ;;  %v7031_v2 = vld [vmem:[%s8393_s1 + $0x380] ss:$8 sps:$4 sm:$0xff]  }
  0x77   :  { %581 = vmatpush1.bf16.msra.mxu0 %v6944_v3  ;;  %1947 = vmatpush1.bf16.msra.mxu1 %v6944_v3  ;;  %v7038_v3 = vld [vmem:[%s8393_s1 + $0x394] ss:$8 sps:$4 sm:$0xff]  }
  0x78   :  { %582 = vmatprep.subr.bf16.mxu0 %v6949_v4  ;;  %1948 = vmatprep.subr.bf16.mxu1 %v6949_v4  ;;  %v7036_v4 = vld [vmem:[%s8393_s1 + $0x390] ss:$8 sps:$4 sm:$0xff]  }
  0x7b   :  { %583 = vmatpush1.bf16.msra.mxu0 %v6947_v5  ;;  %1949 = vmatpush1.bf16.msra.mxu1 %v6947_v5  ;;  %v7041_v5 = vld [vmem:[%s8393_s1 + $0x3a4] ss:$8 sps:$4 sm:$0xff]  }
  0x7c   :  { %584 = vmatprep.subr.bf16.mxu0 %v6952_v6  ;;  %1950 = vmatprep.subr.bf16.mxu1 %v6952_v6  ;;  %v7039_v6 = vld [vmem:[%s8393_s1 + $0x3a0] ss:$8 sps:$4 sm:$0xff]  }
  0x7f   :  { %585 = vmatpush1.bf16.msra.mxu0 %v6950_v7  ;;  %1951 = vmatpush1.bf16.msra.mxu1 %v6950_v7  ;;  %v7044_v7 = vld [vmem:[%s8393_s1 + $0x3b4] ss:$8 sps:$4 sm:$0xff]  }
  0x80   :  { %723 = vmatprep.subr.bf16.mxu0 %v6955_v8  ;;  %2087 = vmatprep.subr.bf16.mxu1 %v6955_v8  ;;  %v7042_v8 = vld [vmem:[%s8393_s1 + $0x3b0] ss:$8 sps:$4 sm:$0xff]  }
  0x82   :  { %603 = vmatmul.mubr.bf16.vlgmr.msra.gmra.mrb[0].mxu0 %v6956_v9  ;;  %1969 = vmatmul.mubr.bf16.vlgmr.msra.gmra.mrb[0].mxu1 %v6957_v10  ;;  %v7047_v9 = vld [vmem:[%s8393_s1 + $0x3c4] ss:$8 sps:$4 sm:$0xff]   ;;  %v7045_v10 = vld [vmem:[%s8393_s1 + $0x3c0] ss:$8 sps:$4 sm:$0xff]  }
  0x83   :  { %724 = vmatpush1.bf16.msra.mxu0 %v6953_v11  ;;  %2088 = vmatpush1.bf16.msra.mxu1 %v6953_v11  ;;  %v7050_v11 = vld [vmem:[%s8393_s1 + $0x3d4] ss:$8 sps:$4 sm:$0xff]  }
  0x84   :  { %725 = vmatprep.subr.bf16.mxu0 %v6960_v12  ;;  %2089 = vmatprep.subr.bf16.mxu1 %v6960_v12  ;;  %v7048_v12 = vld [vmem:[%s8393_s1 + $0x3d0] ss:$8 sps:$4 sm:$0xff]  }
  0x85   :  { %755 = vmatprep.mubr.bf16.mxu0 %v7319_v1  ;;  %2119 = vmatprep.mubr.bf16.mxu1 %v7319_v1 }
  0x87   :  { %726 = vmatpush1.bf16.msra.mxu0 %v6958_v13  ;;  %2090 = vmatpush1.bf16.msra.mxu1 %v6958_v13  ;;  %v7053_v13 = vld [vmem:[%s8393_s1 + $0x3e4] ss:$8 sps:$4 sm:$0xff]  }
  0x88   :  { %727 = vmatprep.subr.bf16.mxu0 %v6963_v14  ;;  %2091 = vmatprep.subr.bf16.mxu1 %v6963_v14  ;;  %v7051_v14 = vld [vmem:[%s8393_s1 + $0x3e0] ss:$8 sps:$4 sm:$0xff]  }
  0x8b   :  { %728 = vmatpush1.bf16.msra.mxu0 %v6961_v15  ;;  %2092 = vmatpush1.bf16.msra.mxu1 %v6961_v15  ;;  %v7056_v15 = vld [vmem:[%s8393_s1 + $0x3f4] ss:$8 sps:$4 sm:$0xff]  }
  0x8c   :  { %729 = vmatprep.subr.bf16.mxu0 %v6966_v16  ;;  %2093 = vmatprep.subr.bf16.mxu1 %v6966_v16  ;;  %v7054_v16 = vld [vmem:[%s8393_s1 + $0x3f0] ss:$8 sps:$4 sm:$0xff]  }
  0x8f   :  { %730 = vmatpush1.bf16.msra.mxu0 %v6964_v17  ;;  %2094 = vmatpush1.bf16.msra.mxu1 %v6964_v17  ;;  %v7059_v17 = vld [vmem:[%s8393_s1 + $0x404] ss:$8 sps:$4 sm:$0xff]  }
  0x90   :  { %731 = vmatprep.subr.bf16.mxu0 %v6969_v18  ;;  %2095 = vmatprep.subr.bf16.mxu1 %v6969_v18  ;;  %v7060_v18 = vld [vmem:[%s8394_s0 + $0x30] sm:$0xff]  }
  0x93   :  { %732 = vmatpush1.bf16.msra.mxu0 %v6967_v19  ;;  %2096 = vmatpush1.bf16.msra.mxu1 %v6967_v19  ;;  %v7061_v19 = vld [vmem:[%s8394_s0 + $0x18] sm:$0xff]  }
  0x94   :  { %733 = vmatprep.subr.bf16.mxu0 %v6972_v20  ;;  %2097 = vmatprep.subr.bf16.mxu1 %v6972_v20  ;;  %v7057_v20 = vld [vmem:[%s8393_s1 + $0x400] ss:$8 sps:$4 sm:$0xff]  }
  0x97   :  { %734 = vmatpush1.bf16.msra.mxu0 %v6970_v21  ;;  %2098 = vmatpush1.bf16.msra.mxu1 %v6970_v21  ;;  %v7064_v21 = vld [vmem:[%s8393_s1 + $0x414] ss:$8 sps:$4 sm:$0xff]  }
  0x98   :  { %735 = vmatprep.subr.bf16.mxu0 %v6975_v22  ;;  %2099 = vmatprep.subr.bf16.mxu1 %v6975_v22  ;;  %v7062_v22 = vld [vmem:[%s8393_s1 + $0x410] ss:$8 sps:$4 sm:$0xff]  }
  0x9b   :  { %736 = vmatpush1.bf16.msra.mxu0 %v6973_v23  ;;  %2100 = vmatpush1.bf16.msra.mxu1 %v6973_v23  ;;  %v7067_v23 = vld [vmem:[%s8393_s1 + $0x424] ss:$8 sps:$4 sm:$0xff]  }
  0x9c   :  { %737 = vmatprep.subr.bf16.mxu0 %v6978_v24  ;;  %2101 = vmatprep.subr.bf16.mxu1 %v6978_v24  ;;  %v7065_v24 = vld [vmem:[%s8393_s1 + $0x420] ss:$8 sps:$4 sm:$0xff]  }
  0x9f   :  { %738 = vmatpush1.bf16.msra.mxu0 %v6976_v25  ;;  %2102 = vmatpush1.bf16.msra.mxu1 %v6976_v25  ;;  %v7070_v25 = vld [vmem:[%s8393_s1 + $0x434] ss:$8 sps:$4 sm:$0xff]  }
  0xa0   :  { %876 = vmatprep.subr.bf16.mxu0 %v6981_v26  ;;  %2239 = vmatprep.subr.bf16.mxu1 %v6981_v26  ;;  %v7068_v26 = vld [vmem:[%s8393_s1 + $0x430] ss:$8 sps:$4 sm:$0xff]  }
  0xa2   :  { %756 = vmatmul.mubr.bf16.vlgmr.msra.gmra.mrb[0].mxu0 %v6982_v27  ;;  %2120 = vmatmul.mubr.bf16.vlgmr.msra.gmra.mrb[0].mxu1 %v6983_v28  ;;  %v7073_v27 = vld [vmem:[%s8393_s1 + $0x444] ss:$8 sps:$4 sm:$0xff]   ;;  %v7071_v28 = vld [vmem:[%s8393_s1 + $0x440] ss:$8 sps:$4 sm:$0xff]  }
  0xa3   :  { %877 = vmatpush1.bf16.msra.mxu0 %v6979_v29  ;;  %2240 = vmatpush1.bf16.msra.mxu1 %v6979_v29  ;;  %v7076_v29 = vld [vmem:[%s8393_s1 + $0x454] ss:$8 sps:$4 sm:$0xff]  }
  0xa4   :  { %878 = vmatprep.subr.bf16.mxu0 %v6986_v30  ;;  %2241 = vmatprep.subr.bf16.mxu1 %v6986_v30  ;;  %v7074_v30 = vld [vmem:[%s8393_s1 + $0x450] ss:$8 sps:$4 sm:$0xff]  }
  0xa5   :  { %908 = vmatprep.mubr.bf16.mxu0 %v7319_v1  ;;  %2271 = vmatprep.mubr.bf16.mxu1 %v7319_v1 }
  0xa7   :  { %879 = vmatpush1.bf16.msra.mxu0 %v6984_v31  ;;  %2242 = vmatpush1.bf16.msra.mxu1 %v6984_v31  ;;  %v7079_v31 = vld [vmem:[%s8393_s1 + $0x464] ss:$8 sps:$4 sm:$0xff]  }
  0xa8   :  { %880 = vmatprep.subr.bf16.mxu0 %v6989_v32  ;;  %2243 = vmatprep.subr.bf16.mxu1 %v6989_v32  ;;  %v7077_v32 = vld [vmem:[%s8393_s1 + $0x460] ss:$8 sps:$4 sm:$0xff]  }
  0xab   :  { %881 = vmatpush1.bf16.msra.mxu0 %v6987_v33  ;;  %2244 = vmatpush1.bf16.msra.mxu1 %v6987_v33  ;;  %v7082_v33 = vld [vmem:[%s8393_s1 + $0x474] ss:$8 sps:$4 sm:$0xff]  }
  0xac   :  { %882 = vmatprep.subr.bf16.mxu0 %v6992_v34  ;;  %2245 = vmatprep.subr.bf16.mxu1 %v6992_v34  ;;  %v7080_v34 = vld [vmem:[%s8393_s1 + $0x470] ss:$8 sps:$4 sm:$0xff]  }
  0xaf   :  { %883 = vmatpush1.bf16.msra.mxu0 %v6990_v35  ;;  %2246 = vmatpush1.bf16.msra.mxu1 %v6990_v35  ;;  %v7087_v35 = vld [vmem:[%s8393_s1 + $0x84] ss:$8 sps:$4 sm:$0xff]  }
  0xb0   :  { %884 = vmatprep.subr.bf16.mxu0 %v6995_v36  ;;  %2247 = vmatprep.subr.bf16.mxu1 %v6995_v36  ;;  %v7083_v36 = vld [vmem:[%s8394_s0 + $0x18] sm:$0xff]  }
  0xb3   :  { %885 = vmatpush1.bf16.msra.mxu0 %v6993_v37  ;;  %2248 = vmatpush1.bf16.msra.mxu1 %v6993_v37  ;;  %v7084_v37 = vld [vmem:[%s8394_s0 + $0x38] sm:$0xff]  }
  0xb4   :  { %886 = vmatprep.subr.bf16.mxu0 %v6998_v38  ;;  %2249 = vmatprep.subr.bf16.mxu1 %v6998_v38  ;;  %v7085_v38 = vld [vmem:[%s8393_s1 + $0x80] ss:$8 sps:$4 sm:$0xff]  }
  0xb7   :  { %887 = vmatpush1.bf16.msra.mxu0 %v6996_v39  ;;  %2250 = vmatpush1.bf16.msra.mxu1 %v6996_v39  ;;  %v7090_v39 = vld [vmem:[%s8393_s1 + $0x94] ss:$8 sps:$4 sm:$0xff]  }
  0xb8   :  { %888 = vmatprep.subr.bf16.mxu0 %v7001_v40  ;;  %2251 = vmatprep.subr.bf16.mxu1 %v7001_v40  ;;  %v7088_v40 = vld [vmem:[%s8393_s1 + $0x90] ss:$8 sps:$4 sm:$0xff]  }
  0xbb   :  { %889 = vmatpush1.bf16.msra.mxu0 %v6999_v41  ;;  %2252 = vmatpush1.bf16.msra.mxu1 %v6999_v41  ;;  %v7093_v41 = vld [vmem:[%s8393_s1 + $0xa4] ss:$8 sps:$4 sm:$0xff]  }
  0xbc   :  { %890 = vmatprep.subr.bf16.mxu0 %v7004_v42  ;;  %2253 = vmatprep.subr.bf16.mxu1 %v7004_v42  ;;  %v7091_v42 = vld [vmem:[%s8393_s1 + $0xa0] ss:$8 sps:$4 sm:$0xff]  }
  0xbf   :  { %891 = vmatpush1.bf16.msra.mxu0 %v7002_v43  ;;  %2254 = vmatpush1.bf16.msra.mxu1 %v7002_v43  ;;  %v7096_v43 = vld [vmem:[%s8393_s1 + $0xb4] ss:$8 sps:$4 sm:$0xff]  }
  0xc0   :  { %1029 = vmatprep.subr.bf16.mxu0 %v7007_v44  ;;  %2390 = vmatprep.subr.bf16.mxu1 %v7007_v44  ;;  %v7094_v44 = vld [vmem:[%s8393_s1 + $0xb0] ss:$8 sps:$4 sm:$0xff]  }
  0xc2   :  { %909 = vmatmul.mubr.bf16.vlgmr.msra.gmra.mrb[0].mxu0 %v7008_v45  ;;  %2272 = vmatmul.mubr.bf16.vlgmr.msra.gmra.mrb[0].mxu1 %v7009_v46  ;;  %v7099_v45 = vld [vmem:[%s8393_s1 + $0xc4] ss:$8 sps:$4 sm:$0xff]   ;;  %v7097_v46 = vld [vmem:[%s8393_s1 + $0xc0] ss:$8 sps:$4 sm:$0xff]  }
  0xc3   :  { %1030 = vmatpush1.bf16.msra.mxu0 %v7005_v47  ;;  %2391 = vmatpush1.bf16.msra.mxu1 %v7005_v47  ;;  %v7102_v47 = vld [vmem:[%s8393_s1 + $0xd4] ss:$8 sps:$4 sm:$0xff]  }
  0xc4   :  { %1031 = vmatprep.subr.bf16.mxu0 %v7012_v48  ;;  %2392 = vmatprep.subr.bf16.mxu1 %v7012_v48  ;;  %v7100_v48 = vld [vmem:[%s8393_s1 + $0xd0] ss:$8 sps:$4 sm:$0xff]  }
  0xc5   :  { %1061 = vmatprep.mubr.bf16.mxu0 %v7319_v1  ;;  %2422 = vmatprep.mubr.bf16.mxu1 %v7319_v1 }
  0xc7   :  { %1032 = vmatpush1.bf16.msra.mxu0 %v7010_v49  ;;  %2393 = vmatpush1.bf16.msra.mxu1 %v7010_v49  ;;  %v7105_v49 = vld [vmem:[%s8393_s1 + $0xe4] ss:$8 sps:$4 sm:$0xff]  }
  0xc8   :  { %1033 = vmatprep.subr.bf16.mxu0 %v7015_v50  ;;  %2394 = vmatprep.subr.bf16.mxu1 %v7015_v50  ;;  %v7103_v50 = vld [vmem:[%s8393_s1 + $0xe0] ss:$8 sps:$4 sm:$0xff]  }
  0xcb   :  { %1034 = vmatpush1.bf16.msra.mxu0 %v7013_v51  ;;  %2395 = vmatpush1.bf16.msra.mxu1 %v7013_v51  ;;  %v7108_v51 = vld [vmem:[%s8393_s1 + $0xf4] ss:$8 sps:$4 sm:$0xff]  }
  0xcc   :  { %1035 = vmatprep.subr.bf16.mxu0 %v7018_v52  ;;  %2396 = vmatprep.subr.bf16.mxu1 %v7018_v52  ;;  %v7106_v52 = vld [vmem:[%s8393_s1 + $0xf0] ss:$8 sps:$4 sm:$0xff]  }
  0xcf   :  { %1036 = vmatpush1.bf16.msra.mxu0 %v7016_v53  ;;  %2397 = vmatpush1.bf16.msra.mxu1 %v7016_v53  ;;  %v7111_v53 = vld [vmem:[%s8393_s1 + $0x4] ss:$8 sps:$4 sm:$0xff]  }
  0xd0   :  { %1037 = vmatprep.subr.bf16.mxu0 %v7021_v54  ;;  %2398 = vmatprep.subr.bf16.mxu1 %v7021_v54  ;;  %v7112_v54 = vld [vmem:[%s8394_s0 + $0x60] sm:$0xff]  }
  0xd3   :  { %1038 = vmatpush1.bf16.msra.mxu0 %v7019_v55  ;;  %2399 = vmatpush1.bf16.msra.mxu1 %v7019_v55  ;;  %v7113_v55 = vld [vmem:[%s8394_s0 + $0x48] sm:$0xff]  }
  0xd4   :  { %1039 = vmatprep.subr.bf16.mxu0 %v7024_v56  ;;  %2400 = vmatprep.subr.bf16.mxu1 %v7024_v56  ;;  %v7109_v56 = vld [vmem:[%s8393_s1] ss:$8 sps:$4 sm:$0xff]  }
  0xd7   :  { %1040 = vmatpush1.bf16.msra.mxu0 %v7022_v57  ;;  %2401 = vmatpush1.bf16.msra.mxu1 %v7022_v57  ;;  %v7116_v57 = vld [vmem:[%s8393_s1 + $0x14] ss:$8 sps:$4 sm:$0xff]  }
  0xd8   :  { %1041 = vmatprep.subr.bf16.mxu0 %v7027_v58  ;;  %2402 = vmatprep.subr.bf16.mxu1 %v7027_v58  ;;  %v7114_v58 = vld [vmem:[%s8393_s1 + $0x10] ss:$8 sps:$4 sm:$0xff]  }
  0xdb   :  { %1042 = vmatpush1.bf16.msra.mxu0 %v7025_v59  ;;  %2403 = vmatpush1.bf16.msra.mxu1 %v7025_v59  ;;  %v7119_v59 = vld [vmem:[%s8393_s1 + $0x24] ss:$8 sps:$4 sm:$0xff]  }
  0xdc   :  { %1043 = vmatprep.subr.bf16.mxu0 %v7030_v60  ;;  %2404 = vmatprep.subr.bf16.mxu1 %v7030_v60  ;;  %v7117_v60 = vld [vmem:[%s8393_s1 + $0x20] ss:$8 sps:$4 sm:$0xff]  }
  0xdf   :  { %1044 = vmatpush1.bf16.msra.mxu0 %v7028_v61  ;;  %2405 = vmatpush1.bf16.msra.mxu1 %v7028_v61  ;;  %v7122_v61 = vld [vmem:[%s8393_s1 + $0x34] ss:$8 sps:$4 sm:$0xff]  }
  0xe0   :  { %1182 = vmatprep.subr.bf16.mxu0 %v7033_v62  ;;  %2541 = vmatprep.subr.bf16.mxu1 %v7033_v62  ;;  %v7120_v62 = vld [vmem:[%s8393_s1 + $0x30] ss:$8 sps:$4 sm:$0xff]  }
  0xe2   :  { %1062 = vmatmul.mubr.bf16.vlgmr.msra.gmra.mrb[0].mxu0 %v7034_v63  ;;  %2423 = vmatmul.mubr.bf16.vlgmr.msra.gmra.mrb[0].mxu1 %v7035_v0  ;;  %v7125_v63 = vld [vmem:[%s8393_s1 + $0x44] ss:$8 sps:$4 sm:$0xff]   ;;  %v7123_v0 = vld [vmem:[%s8393_s1 + $0x40] ss:$8 sps:$4 sm:$0xff]  }
  0xe3   :  { %1183 = vmatpush1.bf16.msra.mxu0 %v7031_v2  ;;  %2542 = vmatpush1.bf16.msra.mxu1 %v7031_v2  ;;  %v7128_v2 = vld [vmem:[%s8393_s1 + $0x54] ss:$8 sps:$4 sm:$0xff]  }
  0xe4   :  { %1184 = vmatprep.subr.bf16.mxu0 %v7038_v3  ;;  %2543 = vmatprep.subr.bf16.mxu1 %v7038_v3  ;;  %v7126_v3 = vld [vmem:[%s8393_s1 + $0x50] ss:$8 sps:$4 sm:$0xff]  }
  0xe5   :  { %1214 = vmatprep.mubr.bf16.mxu0 %v7319_v1  ;;  %2573 = vmatprep.mubr.bf16.mxu1 %v7319_v1 }
  0xe7   :  { %1185 = vmatpush1.bf16.msra.mxu0 %v7036_v4  ;;  %2544 = vmatpush1.bf16.msra.mxu1 %v7036_v4  ;;  %v7131_v4 = vld [vmem:[%s8393_s1 + $0x64] ss:$8 sps:$4 sm:$0xff]  }
  0xe8   :  { %1186 = vmatprep.subr.bf16.mxu0 %v7041_v5  ;;  %2545 = vmatprep.subr.bf16.mxu1 %v7041_v5  ;;  %v7129_v5 = vld [vmem:[%s8393_s1 + $0x60] ss:$8 sps:$4 sm:$0xff]  }
  0xeb   :  { %1187 = vmatpush1.bf16.msra.mxu0 %v7039_v6  ;;  %2546 = vmatpush1.bf16.msra.mxu1 %v7039_v6  ;;  %v7134_v6 = vld [vmem:[%s8393_s1 + $0x74] ss:$8 sps:$4 sm:$0xff]  }
  0xec   :  { %1188 = vmatprep.subr.bf16.mxu0 %v7044_v7  ;;  %2547 = vmatprep.subr.bf16.mxu1 %v7044_v7  ;;  %v7132_v7 = vld [vmem:[%s8393_s1 + $0x70] ss:$8 sps:$4 sm:$0xff]  }
  0xef   :  { %1189 = vmatpush1.bf16.msra.mxu0 %v7042_v8  ;;  %2548 = vmatpush1.bf16.msra.mxu1 %v7042_v8  ;;  %v7137_v8 = vld [vmem:[%s8393_s1 + $0x104] ss:$8 sps:$4 sm:$0xff]  }
  0xf0   :  { %1190 = vmatprep.subr.bf16.mxu0 %v7047_v9  ;;  %2549 = vmatprep.subr.bf16.mxu1 %v7047_v9  ;;  %v7138_v9 = vld [vmem:[%s8394_s0 + $0x40] sm:$0xff]  }
  0xf3   :  { %1191 = vmatpush1.bf16.msra.mxu0 %v7045_v10  ;;  %2550 = vmatpush1.bf16.msra.mxu1 %v7045_v10  ;;  %v7139_v10 = vld [vmem:[%s8394_s0 + $0x60] sm:$0xff]  }
  0xf4   :  { %1192 = vmatprep.subr.bf16.mxu0 %v7050_v11  ;;  %2551 = vmatprep.subr.bf16.mxu1 %v7050_v11  ;;  %v7135_v11 = vld [vmem:[%s8393_s1 + $0x100] ss:$8 sps:$4 sm:$0xff]  }
  0xf7   :  { %1193 = vmatpush1.bf16.msra.mxu0 %v7048_v12  ;;  %2552 = vmatpush1.bf16.msra.mxu1 %v7048_v12  ;;  %v7142_v12 = vld [vmem:[%s8393_s1 + $0x114] ss:$8 sps:$4 sm:$0xff]  }
  0xf8   :  { %1194 = vmatprep.subr.bf16.mxu0 %v7053_v13  ;;  %2553 = vmatprep.subr.bf16.mxu1 %v7053_v13  ;;  %v7140_v13 = vld [vmem:[%s8393_s1 + $0x110] ss:$8 sps:$4 sm:$0xff]  }
  0xfb   :  { %1195 = vmatpush1.bf16.msra.mxu0 %v7051_v14  ;;  %2554 = vmatpush1.bf16.msra.mxu1 %v7051_v14  ;;  %v7145_v14 = vld [vmem:[%s8393_s1 + $0x124] ss:$8 sps:$4 sm:$0xff]  }
  0xfc   :  { %1196 = vmatprep.subr.bf16.mxu0 %v7056_v15  ;;  %2555 = vmatprep.subr.bf16.mxu1 %v7056_v15  ;;  %v7143_v15 = vld [vmem:[%s8393_s1 + $0x120] ss:$8 sps:$4 sm:$0xff]  }
  0xff   :  { %1197 = vmatpush1.bf16.msra.mxu0 %v7054_v16  ;;  %2556 = vmatpush1.bf16.msra.mxu1 %v7054_v16  ;;  %v7148_v16 = vld [vmem:[%s8393_s1 + $0x134] ss:$8 sps:$4 sm:$0xff]  }
 0x100   :  { %1335 = vmatprep.subr.bf16.mxu0 %v7059_v17  ;;  %2693 = vmatprep.subr.bf16.mxu1 %v7059_v17  ;;  %v7146_v17 = vld [vmem:[%s8393_s1 + $0x130] ss:$8 sps:$4 sm:$0xff]  }
 0x102   :  { %1215 = vmatmul.mubr.bf16.vlgmr.msra.gmra.mrb[0].mxu0 %v7060_v18  ;;  %2574 = vmatmul.mubr.bf16.vlgmr.msra.gmra.mrb[0].mxu1 %v7061_v19  ;;  %v7151_v18 = vld [vmem:[%s8393_s1 + $0x144] ss:$8 sps:$4 sm:$0xff]   ;;  %v7149_v19 = vld [vmem:[%s8393_s1 + $0x140] ss:$8 sps:$4 sm:$0xff]  }
 0x103   :  { %1336 = vmatpush1.bf16.msra.mxu0 %v7057_v20  ;;  %2694 = vmatpush1.bf16.msra.mxu1 %v7057_v20  ;;  %v7154_v20 = vld [vmem:[%s8393_s1 + $0x154] ss:$8 sps:$4 sm:$0xff]  }
 0x104   :  { %1337 = vmatprep.subr.bf16.mxu0 %v7064_v21  ;;  %2695 = vmatprep.subr.bf16.mxu1 %v7064_v21  ;;  %v7152_v21 = vld [vmem:[%s8393_s1 + $0x150] ss:$8 sps:$4 sm:$0xff]  }
 0x105   :  { %1367 = vmatprep.mubr.bf16.mxu0 %v7319_v1  ;;  %2725 = vmatprep.mubr.bf16.mxu1 %v7319_v1 }
 0x107   :  { %1338 = vmatpush1.bf16.msra.mxu0 %v7062_v22  ;;  %2696 = vmatpush1.bf16.msra.mxu1 %v7062_v22  ;;  %v7157_v22 = vld [vmem:[%s8393_s1 + $0x164] ss:$8 sps:$4 sm:$0xff]  }
 0x108   :  { %1339 = vmatprep.subr.bf16.mxu0 %v7067_v23  ;;  %2697 = vmatprep.subr.bf16.mxu1 %v7067_v23  ;;  %v7155_v23 = vld [vmem:[%s8393_s1 + $0x160] ss:$8 sps:$4 sm:$0xff]  }
 0x10b   :  { %1340 = vmatpush1.bf16.msra.mxu0 %v7065_v24  ;;  %2698 = vmatpush1.bf16.msra.mxu1 %v7065_v24  ;;  %v7160_v24 = vld [vmem:[%s8393_s1 + $0x174] ss:$8 sps:$4 sm:$0xff]  }
 0x10c   :  { %1341 = vmatprep.subr.bf16.mxu0 %v7070_v25  ;;  %2699 = vmatprep.subr.bf16.mxu1 %v7070_v25  ;;  %v7158_v25 = vld [vmem:[%s8393_s1 + $0x170] ss:$8 sps:$4 sm:$0xff]  }
 0x10f   :  { %1342 = vmatpush1.bf16.msra.mxu0 %v7068_v26  ;;  %2700 = vmatpush1.bf16.msra.mxu1 %v7068_v26  ;;  %v7163_v26 = vld [vmem:[%s8393_s1 + $0x184] ss:$8 sps:$4 sm:$0xff]  }
 0x110   :  { %1343 = vmatprep.subr.bf16.mxu0 %v7073_v27  ;;  %2701 = vmatprep.subr.bf16.mxu1 %v7073_v27  ;;  %v7164_v27 = vld [vmem:[%s8394_s0 + $0x48] sm:$0xff]  }
 0x113   :  { %1344 = vmatpush1.bf16.msra.mxu0 %v7071_v28  ;;  %2702 = vmatpush1.bf16.msra.mxu1 %v7071_v28  ;;  %v7165_v28 = vld [vmem:[%s8394_s0 + $0x68] sm:$0xff]  }
 0x114   :  { %1345 = vmatprep.subr.bf16.mxu0 %v7076_v29  ;;  %2703 = vmatprep.subr.bf16.mxu1 %v7076_v29  ;;  %v7161_v29 = vld [vmem:[%s8393_s1 + $0x180] ss:$8 sps:$4 sm:$0xff]  }
 0x117   :  { %1346 = vmatpush1.bf16.msra.mxu0 %v7074_v30  ;;  %2704 = vmatpush1.bf16.msra.mxu1 %v7074_v30  ;;  %v7168_v30 = vld [vmem:[%s8393_s1 + $0x194] ss:$8 sps:$4 sm:$0xff]  }
 0x118   :  { %1347 = vmatprep.subr.bf16.mxu0 %v7079_v31  ;;  %2705 = vmatprep.subr.bf16.mxu1 %v7079_v31  ;;  %v7166_v31 = vld [vmem:[%s8393_s1 + $0x190] ss:$8 sps:$4 sm:$0xff]  }
 0x11b   :  { %1348 = vmatpush1.bf16.msra.mxu0 %v7077_v32  ;;  %2706 = vmatpush1.bf16.msra.mxu1 %v7077_v32  ;;  %v7171_v32 = vld [vmem:[%s8393_s1 + $0x1a4] ss:$8 sps:$4 sm:$0xff]  }
 0x11c   :  { %1349 = vmatprep.subr.bf16.mxu0 %v7082_v33  ;;  %2707 = vmatprep.subr.bf16.mxu1 %v7082_v33  ;;  %v7169_v33 = vld [vmem:[%s8393_s1 + $0x1a0] ss:$8 sps:$4 sm:$0xff]  }
 0x11f   :  { %1350 = vmatpush1.bf16.msra.mxu0 %v7080_v34  ;;  %2708 = vmatpush1.bf16.msra.mxu1 %v7080_v34  ;;  %v7174_v34 = vld [vmem:[%s8393_s1 + $0x1b4] ss:$8 sps:$4 sm:$0xff]  }
 0x120   :  { %2874 = vmatprep.subr.bf16.mxu0 %v7087_v35  ;;  %4240 = vmatprep.subr.bf16.mxu1 %v7087_v35  ;;  %v7172_v35 = vld [vmem:[%s8393_s1 + $0x1b0] ss:$8 sps:$4 sm:$0xff]  }
 0x122   :  { %1368 = vmatmul.mubr.bf16.vlgmr.msra.gmra.mrb[0].mxu0 %v7083_v36  ;;  %2726 = vmatmul.mubr.bf16.vlgmr.msra.gmra.mrb[0].mxu1 %v7084_v37  ;;  %v7177_v36 = vld [vmem:[%s8393_s1 + $0x1c4] ss:$8 sps:$4 sm:$0xff]   ;;  %v7175_v37 = vld [vmem:[%s8393_s1 + $0x1c0] ss:$8 sps:$4 sm:$0xff]  }
 0x123   :  { %2875 = vmatpush1.bf16.msra.mxu0 %v7085_v38  ;;  %4241 = vmatpush1.bf16.msra.mxu1 %v7085_v38  ;;  %v7180_v38 = vld [vmem:[%s8393_s1 + $0x1d4] ss:$8 sps:$4 sm:$0xff]  }
 0x124   :  { %2876 = vmatprep.subr.bf16.mxu0 %v7090_v39  ;;  %4242 = vmatprep.subr.bf16.mxu1 %v7090_v39  ;;  %v7178_v39 = vld [vmem:[%s8393_s1 + $0x1d0] ss:$8 sps:$4 sm:$0xff]  }
 0x125   :  { %2906 = vmatprep.mubr.bf16.mxu0 %v7319_v1  ;;  %4272 = vmatprep.mubr.bf16.mxu1 %v7319_v1 }
 0x127   :  { %2877 = vmatpush1.bf16.msra.mxu0 %v7088_v40  ;;  %4243 = vmatpush1.bf16.msra.mxu1 %v7088_v40  ;;  %v7183_v40 = vld [vmem:[%s8393_s1 + $0x1e4] ss:$8 sps:$4 sm:$0xff]  }
 0x128   :  { %2878 = vmatprep.subr.bf16.mxu0 %v7093_v41  ;;  %4244 = vmatprep.subr.bf16.mxu1 %v7093_v41  ;;  %v7181_v41 = vld [vmem:[%s8393_s1 + $0x1e0] ss:$8 sps:$4 sm:$0xff]  }
 0x12b   :  { %2879 = vmatpush1.bf16.msra.mxu0 %v7091_v42  ;;  %4245 = vmatpush1.bf16.msra.mxu1 %v7091_v42  ;;  %v7186_v42 = vld [vmem:[%s8393_s1 + $0x1f4] ss:$8 sps:$4 sm:$0xff]  }
 0x12c   :  { %2880 = vmatprep.subr.bf16.mxu0 %v7096_v43  ;;  %4246 = vmatprep.subr.bf16.mxu1 %v7096_v43  ;;  %v7184_v43 = vld [vmem:[%s8393_s1 + $0x1f0] ss:$8 sps:$4 sm:$0xff]  }
 0x12f   :  { %2881 = vmatpush1.bf16.msra.mxu0 %v7094_v44  ;;  %4247 = vmatpush1.bf16.msra.mxu1 %v7094_v44  ;;  %v7189_v44 = vld [vmem:[%s8393_s1 + $0x204] ss:$8 sps:$4 sm:$0xff]  }
 0x130   :  { %2882 = vmatprep.subr.bf16.mxu0 %v7099_v45  ;;  %4248 = vmatprep.subr.bf16.mxu1 %v7099_v45  ;;  %v7190_v45 = vld [vmem:[%s8394_s0 + $0x10] sm:$0xff]  }
 0x133   :  { %2883 = vmatpush1.bf16.msra.mxu0 %v7097_v46  ;;  %4249 = vmatpush1.bf16.msra.mxu1 %v7097_v46  ;;  %v7191_v46 = vld [vmem:[%s8394_s0 + $0x30] sm:$0xff]  }
 0x134   :  { %2884 = vmatprep.subr.bf16.mxu0 %v7102_v47  ;;  %4250 = vmatprep.subr.bf16.mxu1 %v7102_v47  ;;  %v7187_v47 = vld [vmem:[%s8393_s1 + $0x200] ss:$8 sps:$4 sm:$0xff]  }
 0x137   :  { %2885 = vmatpush1.bf16.msra.mxu0 %v7100_v48  ;;  %4251 = vmatpush1.bf16.msra.mxu1 %v7100_v48  ;;  %v7194_v48 = vld [vmem:[%s8393_s1 + $0x214] ss:$8 sps:$4 sm:$0xff]  }
 0x138   :  { %2886 = vmatprep.subr.bf16.mxu0 %v7105_v49  ;;  %4252 = vmatprep.subr.bf16.mxu1 %v7105_v49  ;;  %v7192_v49 = vld [vmem:[%s8393_s1 + $0x210] ss:$8 sps:$4 sm:$0xff]  }
 0x13b   :  { %2887 = vmatpush1.bf16.msra.mxu0 %v7103_v50  ;;  %4253 = vmatpush1.bf16.msra.mxu1 %v7103_v50  ;;  %v7197_v50 = vld [vmem:[%s8393_s1 + $0x224] ss:$8 sps:$4 sm:$0xff]  }
 0x13c   :  { %2888 = vmatprep.subr.bf16.mxu0 %v7108_v51  ;;  %4254 = vmatprep.subr.bf16.mxu1 %v7108_v51  ;;  %v7195_v51 = vld [vmem:[%s8393_s1 + $0x220] ss:$8 sps:$4 sm:$0xff]  }
 0x13f   :  { %2889 = vmatpush1.bf16.msra.mxu0 %v7106_v52  ;;  %4255 = vmatpush1.bf16.msra.mxu1 %v7106_v52  ;;  %v7200_v52 = vld [vmem:[%s8393_s1 + $0x234] ss:$8 sps:$4 sm:$0xff]  }
 0x140   :  { %3003 = vmatprep.subr.bf16.mxu0 %v7111_v53  ;;  %4369 = vmatprep.subr.bf16.mxu1 %v7111_v53  ;;  %v7198_v53 = vld [vmem:[%s8393_s1 + $0x230] ss:$8 sps:$4 sm:$0xff]  }
 0x142   :  { %2907 = vmatmul.mubr.bf16.vlgmr.msra.gmra.mrb[4].mxu0 %v7112_v54  ;;  %4273 = vmatmul.mubr.bf16.vlgmr.msra.gmra.mrb[4].mxu1 %v7113_v55  ;;  %v7203_v54 = vld [vmem:[%s8393_s1 + $0x244] ss:$8 sps:$4 sm:$0xff]   ;;  %v7201_v55 = vld [vmem:[%s8393_s1 + $0x240] ss:$8 sps:$4 sm:$0xff]  }
 0x143   :  { %3004 = vmatpush1.bf16.msra.mxu0 %v7109_v56  ;;  %4370 = vmatpush1.bf16.msra.mxu1 %v7109_v56  ;;  %v7206_v56 = vld [vmem:[%s8393_s1 + $0x254] ss:$8 sps:$4 sm:$0xff]  }
 0x144   :  { %3005 = vmatprep.subr.bf16.mxu0 %v7116_v57  ;;  %4371 = vmatprep.subr.bf16.mxu1 %v7116_v57  ;;  %v7204_v57 = vld [vmem:[%s8393_s1 + $0x250] ss:$8 sps:$4 sm:$0xff]  }
 0x145   :  { %3035 = vmatprep.mubr.bf16.mxu0 %v7319_v1  ;;  %4401 = vmatprep.mubr.bf16.mxu1 %v7319_v1 }
 0x147   :  { %3006 = vmatpush1.bf16.msra.mxu0 %v7114_v58  ;;  %4372 = vmatpush1.bf16.msra.mxu1 %v7114_v58  ;;  %v7209_v58 = vld [vmem:[%s8393_s1 + $0x264] ss:$8 sps:$4 sm:$0xff]  }
 0x148   :  { %3007 = vmatprep.subr.bf16.mxu0 %v7119_v59  ;;  %4373 = vmatprep.subr.bf16.mxu1 %v7119_v59  ;;  %v7207_v59 = vld [vmem:[%s8393_s1 + $0x260] ss:$8 sps:$4 sm:$0xff]  }
 0x14b   :  { %3008 = vmatpush1.bf16.msra.mxu0 %v7117_v60  ;;  %4374 = vmatpush1.bf16.msra.mxu1 %v7117_v60  ;;  %v7212_v60 = vld [vmem:[%s8393_s1 + $0x274] ss:$8 sps:$4 sm:$0xff]  }
 0x14c   :  { %3009 = vmatprep.subr.bf16.mxu0 %v7122_v61  ;;  %4375 = vmatprep.subr.bf16.mxu1 %v7122_v61  ;;  %v7210_v61 = vld [vmem:[%s8393_s1 + $0x270] ss:$8 sps:$4 sm:$0xff]  }
 0x14f   :  { %3010 = vmatpush1.bf16.msra.mxu0 %v7120_v62  ;;  %4376 = vmatpush1.bf16.msra.mxu1 %v7120_v62  ;;  %v7215_v62 = vld [vmem:[%s8393_s1 + $0x284] ss:$8 sps:$4 sm:$0xff]  }
 0x150   :  { %3011 = vmatprep.subr.bf16.mxu0 %v7125_v63  ;;  %4377 = vmatprep.subr.bf16.mxu1 %v7125_v63  ;;  %v7216_v63 = vld [vmem:[%s8394_s0 + $0x30] sm:$0xff]  }
 0x153   :  { %3012 = vmatpush1.bf16.msra.mxu0 %v7123_v0  ;;  %4378 = vmatpush1.bf16.msra.mxu1 %v7123_v0  ;;  %v7217_v0 = vld [vmem:[%s8394_s0 + $0x18] sm:$0xff]  }
 0x154   :  { %3013 = vmatprep.subr.bf16.mxu0 %v7128_v2  ;;  %4379 = vmatprep.subr.bf16.mxu1 %v7128_v2  ;;  %v7213_v2 = vld [vmem:[%s8393_s1 + $0x280] ss:$8 sps:$4 sm:$0xff]  }
 0x157   :  { %3014 = vmatpush1.bf16.msra.mxu0 %v7126_v3  ;;  %4380 = vmatpush1.bf16.msra.mxu1 %v7126_v3  ;;  %v7220_v3 = vld [vmem:[%s8393_s1 + $0x294] ss:$8 sps:$4 sm:$0xff]  }
 0x158   :  { %3015 = vmatprep.subr.bf16.mxu0 %v7131_v4  ;;  %4381 = vmatprep.subr.bf16.mxu1 %v7131_v4  ;;  %v7218_v4 = vld [vmem:[%s8393_s1 + $0x290] ss:$8 sps:$4 sm:$0xff]  }
 0x15b   :  { %3016 = vmatpush1.bf16.msra.mxu0 %v7129_v5  ;;  %4382 = vmatpush1.bf16.msra.mxu1 %v7129_v5  ;;  %v7223_v5 = vld [vmem:[%s8393_s1 + $0x2a4] ss:$8 sps:$4 sm:$0xff]  }
 0x15c   :  { %3017 = vmatprep.subr.bf16.mxu0 %v7134_v6  ;;  %4383 = vmatprep.subr.bf16.mxu1 %v7134_v6  ;;  %v7221_v6 = vld [vmem:[%s8393_s1 + $0x2a0] ss:$8 sps:$4 sm:$0xff]  }
 0x15f   :  { %3018 = vmatpush1.bf16.msra.mxu0 %v7132_v7  ;;  %4384 = vmatpush1.bf16.msra.mxu1 %v7132_v7  ;;  %v7226_v7 = vld [vmem:[%s8393_s1 + $0x2b4] ss:$8 sps:$4 sm:$0xff]  }
 0x160   :  { %3150 = vmatprep.subr.bf16.mxu0 %v7137_v8  ;;  %4516 = vmatprep.subr.bf16.mxu1 %v7137_v8  ;;  %v7224_v8 = vld [vmem:[%s8393_s1 + $0x2b0] ss:$8 sps:$4 sm:$0xff]  }
 0x162   :  { %3036 = vmatmul.mubr.bf16.vlgmr.msra.gmra.mrb[4].mxu0 %v7138_v9  ;;  %4402 = vmatmul.mubr.bf16.vlgmr.msra.gmra.mrb[4].mxu1 %v7139_v10  ;;  %v7229_v9 = vld [vmem:[%s8393_s1 + $0x2c4] ss:$8 sps:$4 sm:$0xff]   ;;  %v7227_v10 = vld [vmem:[%s8393_s1 + $0x2c0] ss:$8 sps:$4 sm:$0xff]  }
 0x163   :  { %3151 = vmatpush1.bf16.msra.mxu0 %v7135_v11  ;;  %4517 = vmatpush1.bf16.msra.mxu1 %v7135_v11  ;;  %v7232_v11 = vld [vmem:[%s8393_s1 + $0x2d4] ss:$8 sps:$4 sm:$0xff]  }
 0x164   :  { %3152 = vmatprep.subr.bf16.mxu0 %v7142_v12  ;;  %4518 = vmatprep.subr.bf16.mxu1 %v7142_v12  ;;  %v7230_v12 = vld [vmem:[%s8393_s1 + $0x2d0] ss:$8 sps:$4 sm:$0xff]  }
 0x165   :  { %3182 = vmatprep.mubr.bf16.mxu0 %v7319_v1  ;;  %4548 = vmatprep.mubr.bf16.mxu1 %v7319_v1 }
 0x167   :  { %3153 = vmatpush1.bf16.msra.mxu0 %v7140_v13  ;;  %4519 = vmatpush1.bf16.msra.mxu1 %v7140_v13  ;;  %v7235_v13 = vld [vmem:[%s8393_s1 + $0x2e4] ss:$8 sps:$4 sm:$0xff]  }
 0x168   :  { %3154 = vmatprep.subr.bf16.mxu0 %v7145_v14  ;;  %4520 = vmatprep.subr.bf16.mxu1 %v7145_v14  ;;  %v7233_v14 = vld [vmem:[%s8393_s1 + $0x2e0] ss:$8 sps:$4 sm:$0xff]  }
 0x16b   :  { %3155 = vmatpush1.bf16.msra.mxu0 %v7143_v15  ;;  %4521 = vmatpush1.bf16.msra.mxu1 %v7143_v15  ;;  %v7238_v15 = vld [vmem:[%s8393_s1 + $0x2f4] ss:$8 sps:$4 sm:$0xff]  }
 0x16c   :  { %3156 = vmatprep.subr.bf16.mxu0 %v7148_v16  ;;  %4522 = vmatprep.subr.bf16.mxu1 %v7148_v16  ;;  %v7236_v16 = vld [vmem:[%s8393_s1 + $0x2f0] ss:$8 sps:$4 sm:$0xff]  }
 0x16f   :  { %3157 = vmatpush1.bf16.msra.mxu0 %v7146_v17  ;;  %4523 = vmatpush1.bf16.msra.mxu1 %v7146_v17  ;;  %v7241_v17 = vld [vmem:[%s8393_s1 + $0x304] ss:$8 sps:$4 sm:$0xff]  }
 0x170   :  { %3158 = vmatprep.subr.bf16.mxu0 %v7151_v18  ;;  %4524 = vmatprep.subr.bf16.mxu1 %v7151_v18  ;;  %v7242_v18 = vld [vmem:[%s8394_s0 + $0x18] sm:$0xff]  }
 0x173   :  { %3159 = vmatpush1.bf16.msra.mxu0 %v7149_v19  ;;  %4525 = vmatpush1.bf16.msra.mxu1 %v7149_v19  ;;  %v7243_v19 = vld [vmem:[%s8394_s0 + $0x38] sm:$0xff]  }
 0x174   :  { %3160 = vmatprep.subr.bf16.mxu0 %v7154_v20  ;;  %4526 = vmatprep.subr.bf16.mxu1 %v7154_v20  ;;  %v7239_v20 = vld [vmem:[%s8393_s1 + $0x300] ss:$8 sps:$4 sm:$0xff]  }
 0x177   :  { %3161 = vmatpush1.bf16.msra.mxu0 %v7152_v21  ;;  %4527 = vmatpush1.bf16.msra.mxu1 %v7152_v21  ;;  %v7246_v21 = vld [vmem:[%s8393_s1 + $0x314] ss:$8 sps:$4 sm:$0xff]  }
 0x178   :  { %3162 = vmatprep.subr.bf16.mxu0 %v7157_v22  ;;  %4528 = vmatprep.subr.bf16.mxu1 %v7157_v22  ;;  %v7244_v22 = vld [vmem:[%s8393_s1 + $0x310] ss:$8 sps:$4 sm:$0xff]  }
 0x17b   :  { %3163 = vmatpush1.bf16.msra.mxu0 %v7155_v23  ;;  %4529 = vmatpush1.bf16.msra.mxu1 %v7155_v23  ;;  %v7249_v23 = vld [vmem:[%s8393_s1 + $0x324] ss:$8 sps:$4 sm:$0xff]  }
 0x17c   :  { %3164 = vmatprep.subr.bf16.mxu0 %v7160_v24  ;;  %4530 = vmatprep.subr.bf16.mxu1 %v7160_v24  ;;  %v7247_v24 = vld [vmem:[%s8393_s1 + $0x320] ss:$8 sps:$4 sm:$0xff]  }
 0x17f   :  { %3165 = vmatpush1.bf16.msra.mxu0 %v7158_v25  ;;  %4531 = vmatpush1.bf16.msra.mxu1 %v7158_v25  ;;  %v7252_v25 = vld [vmem:[%s8393_s1 + $0x334] ss:$8 sps:$4 sm:$0xff]  }
 0x180   :  { %3301 = vmatprep.subr.bf16.mxu0 %v7163_v26  ;;  %4667 = vmatprep.subr.bf16.mxu1 %v7163_v26  ;;  %v7250_v26 = vld [vmem:[%s8393_s1 + $0x330] ss:$8 sps:$4 sm:$0xff]  }
 0x182   :  { %3183 = vmatmul.mubr.bf16.vlgmr.msra.gmra.mrb[4].mxu0 %v7164_v27  ;;  %4549 = vmatmul.mubr.bf16.vlgmr.msra.gmra.mrb[4].mxu1 %v7165_v28  ;;  %v7255_v27 = vld [vmem:[%s8393_s1 + $0x344] ss:$8 sps:$4 sm:$0xff]   ;;  %v7253_v28 = vld [vmem:[%s8393_s1 + $0x340] ss:$8 sps:$4 sm:$0xff]  }
 0x183   :  { %3302 = vmatpush1.bf16.msra.mxu0 %v7161_v29  ;;  %4668 = vmatpush1.bf16.msra.mxu1 %v7161_v29  ;;  %v7258_v29 = vld [vmem:[%s8393_s1 + $0x354] ss:$8 sps:$4 sm:$0xff]  }
 0x184   :  { %3303 = vmatprep.subr.bf16.mxu0 %v7168_v30  ;;  %4669 = vmatprep.subr.bf16.mxu1 %v7168_v30  ;;  %v7256_v30 = vld [vmem:[%s8393_s1 + $0x350] ss:$8 sps:$4 sm:$0xff]  }
 0x185   :  { %3333 = vmatprep.mubr.bf16.mxu0 %v7319_v1  ;;  %4699 = vmatprep.mubr.bf16.mxu1 %v7319_v1 }
 0x187   :  { %3304 = vmatpush1.bf16.msra.mxu0 %v7166_v31  ;;  %4670 = vmatpush1.bf16.msra.mxu1 %v7166_v31  ;;  %v7261_v31 = vld [vmem:[%s8393_s1 + $0x364] ss:$8 sps:$4 sm:$0xff]  }
 0x188   :  { %3305 = vmatprep.subr.bf16.mxu0 %v7171_v32  ;;  %4671 = vmatprep.subr.bf16.mxu1 %v7171_v32 }
 0x18b   :  { %3306 = vmatpush1.bf16.msra.mxu0 %v7169_v33  ;;  %4672 = vmatpush1.bf16.msra.mxu1 %v7169_v33 }
 0x18c   :  { %3307 = vmatprep.subr.bf16.mxu0 %v7174_v34  ;;  %4673 = vmatprep.subr.bf16.mxu1 %v7174_v34 }
 0x18f   :  { %3308 = vmatpush1.bf16.msra.mxu0 %v7172_v35  ;;  %4674 = vmatpush1.bf16.msra.mxu1 %v7172_v35 }
 0x190   :  { %3309 = vmatprep.subr.bf16.mxu0 %v7177_v36  ;;  %4675 = vmatprep.subr.bf16.mxu1 %v7177_v36 }
 0x193   :  { %3310 = vmatpush1.bf16.msra.mxu0 %v7175_v37  ;;  %4676 = vmatpush1.bf16.msra.mxu1 %v7175_v37 }
 0x194   :  { %3311 = vmatprep.subr.bf16.mxu0 %v7180_v38  ;;  %4677 = vmatprep.subr.bf16.mxu1 %v7180_v38 }
 0x197   :  { %3312 = vmatpush1.bf16.msra.mxu0 %v7178_v39  ;;  %4678 = vmatpush1.bf16.msra.mxu1 %v7178_v39 }
 0x198   :  { %3313 = vmatprep.subr.bf16.mxu0 %v7183_v40  ;;  %4679 = vmatprep.subr.bf16.mxu1 %v7183_v40  ;;  %v7259_v40 = vld [vmem:[%s8393_s1 + $0x360] ss:$8 sps:$4 sm:$0xff]  }
 0x19b   :  { %3314 = vmatpush1.bf16.msra.mxu0 %v7181_v41  ;;  %4680 = vmatpush1.bf16.msra.mxu1 %v7181_v41 }
 0x19c   :  { %3315 = vmatprep.subr.bf16.mxu0 %v7186_v42  ;;  %4681 = vmatprep.subr.bf16.mxu1 %v7186_v42 }
 0x19f   :  { %3316 = vmatpush1.bf16.msra.mxu0 %v7184_v43  ;;  %4682 = vmatpush1.bf16.msra.mxu1 %v7184_v43 }
 0x1a0   :  { %3452 = vmatprep.subr.bf16.mxu0 %v7189_v44  ;;  %4818 = vmatprep.subr.bf16.mxu1 %v7189_v44  ;;  %v7264_v44 = vld [vmem:[%s8393_s1 + $0x374] ss:$8 sps:$4 sm:$0xff]  }
 0x1a2   :  { %3334 = vmatmul.mubr.bf16.vlgmr.msra.gmra.mrb[4].mxu0 %v7190_v45  ;;  %4700 = vmatmul.mubr.bf16.vlgmr.msra.gmra.mrb[4].mxu1 %v7191_v46  ;;  %v7262_v46 = vld [vmem:[%s8393_s1 + $0x370] ss:$8 sps:$4 sm:$0xff]  }
 0x1a3   :  { %3453 = vmatpush1.bf16.msra.mxu0 %v7187_v47  ;;  %4819 = vmatpush1.bf16.msra.mxu1 %v7187_v47  ;;  %v7267_v47 = vld [vmem:[%s8393_s1 + $0x384] ss:$8 sps:$4 sm:$0xff]  }
 0x1a4   :  { %3454 = vmatprep.subr.bf16.mxu0 %v7194_v48  ;;  %4820 = vmatprep.subr.bf16.mxu1 %v7194_v48  ;;  %v7268_v48 = vld [vmem:[%s8394_s0 + $0x50] sm:$0xff]  }
 0x1a5   :  { %3484 = vmatprep.mubr.bf16.mxu0 %v7319_v1  ;;  %4850 = vmatprep.mubr.bf16.mxu1 %v7319_v1 }
 0x1a7   :  { %3455 = vmatpush1.bf16.msra.mxu0 %v7192_v49  ;;  %4821 = vmatpush1.bf16.msra.mxu1 %v7192_v49  ;;  %v7269_v49 = vld [vmem:[%s8394_s0 + $0x70] sm:$0xff]  }
 0x1a8   :  { %3456 = vmatprep.subr.bf16.mxu0 %v7197_v50  ;;  %4822 = vmatprep.subr.bf16.mxu1 %v7197_v50  ;;  %v7265_v50 = vld [vmem:[%s8393_s1 + $0x380] ss:$8 sps:$4 sm:$0xff]  }
 0x1ab   :  { %3457 = vmatpush1.bf16.msra.mxu0 %v7195_v51  ;;  %4823 = vmatpush1.bf16.msra.mxu1 %v7195_v51  ;;  %v7272_v51 = vld [vmem:[%s8393_s1 + $0x394] ss:$8 sps:$4 sm:$0xff]  }
 0x1ac   :  { %3458 = vmatprep.subr.bf16.mxu0 %v7200_v52  ;;  %4824 = vmatprep.subr.bf16.mxu1 %v7200_v52  ;;  %v7270_v52 = vld [vmem:[%s8393_s1 + $0x390] ss:$8 sps:$4 sm:$0xff]  }
 0x1af   :  { %3459 = vmatpush1.bf16.msra.mxu0 %v7198_v53  ;;  %4825 = vmatpush1.bf16.msra.mxu1 %v7198_v53  ;;  %v7275_v53 = vld [vmem:[%s8393_s1 + $0x3a4] ss:$8 sps:$4 sm:$0xff]  }
 0x1b0   :  { %3460 = vmatprep.subr.bf16.mxu0 %v7203_v54  ;;  %4826 = vmatprep.subr.bf16.mxu1 %v7203_v54  ;;  %v7273_v54 = vld [vmem:[%s8393_s1 + $0x3a0] ss:$8 sps:$4 sm:$0xff]  }
 0x1b3   :  { %3461 = vmatpush1.bf16.msra.mxu0 %v7201_v55  ;;  %4827 = vmatpush1.bf16.msra.mxu1 %v7201_v55  ;;  %v7278_v55 = vld [vmem:[%s8393_s1 + $0x3b4] ss:$8 sps:$4 sm:$0xff]  }
 0x1b4   :  { %3462 = vmatprep.subr.bf16.mxu0 %v7206_v56  ;;  %4828 = vmatprep.subr.bf16.mxu1 %v7206_v56  ;;  %v7276_v56 = vld [vmem:[%s8393_s1 + $0x3b0] ss:$8 sps:$4 sm:$0xff]  }
 0x1b7   :  { %3463 = vmatpush1.bf16.msra.mxu0 %v7204_v57  ;;  %4829 = vmatpush1.bf16.msra.mxu1 %v7204_v57  ;;  %v7281_v57 = vld [vmem:[%s8393_s1 + $0x3c4] ss:$8 sps:$4 sm:$0xff]  }
 0x1b8   :  { %3464 = vmatprep.subr.bf16.mxu0 %v7209_v58  ;;  %4830 = vmatprep.subr.bf16.mxu1 %v7209_v58  ;;  %v7279_v58 = vld [vmem:[%s8393_s1 + $0x3c0] ss:$8 sps:$4 sm:$0xff]  }
 0x1bb   :  { %3465 = vmatpush1.bf16.msra.mxu0 %v7207_v59  ;;  %4831 = vmatpush1.bf16.msra.mxu1 %v7207_v59  ;;  %v7284_v59 = vld [vmem:[%s8393_s1 + $0x3d4] ss:$8 sps:$4 sm:$0xff]  }
 0x1bc   :  { %3466 = vmatprep.subr.bf16.mxu0 %v7212_v60  ;;  %4832 = vmatprep.subr.bf16.mxu1 %v7212_v60  ;;  %v7282_v60 = vld [vmem:[%s8393_s1 + $0x3d0] ss:$8 sps:$4 sm:$0xff]  }
 0x1bf   :  { %3467 = vmatpush1.bf16.msra.mxu0 %v7210_v61  ;;  %4833 = vmatpush1.bf16.msra.mxu1 %v7210_v61  ;;  %v7287_v61 = vld [vmem:[%s8393_s1 + $0x3e4] ss:$8 sps:$4 sm:$0xff]  }
 0x1c0   :  { %3603 = vmatprep.subr.bf16.mxu0 %v7215_v62  ;;  %4969 = vmatprep.subr.bf16.mxu1 %v7215_v62  ;;  %v7285_v62 = vld [vmem:[%s8393_s1 + $0x3e0] ss:$8 sps:$4 sm:$0xff]  }
 0x1c2   :  { %3485 = vmatmul.mubr.bf16.vlgmr.msra.gmra.mrb[4].mxu0 %v7216_v63  ;;  %4851 = vmatmul.mubr.bf16.vlgmr.msra.gmra.mrb[4].mxu1 %v7217_v0  ;;  %v7290_v63 = vld [vmem:[%s8393_s1 + $0x3f4] ss:$8 sps:$4 sm:$0xff]   ;;  %v7288_v0 = vld [vmem:[%s8393_s1 + $0x3f0] ss:$8 sps:$4 sm:$0xff]  }
 0x1c3   :  { %3604 = vmatpush1.bf16.msra.mxu0 %v7213_v2  ;;  %4970 = vmatpush1.bf16.msra.mxu1 %v7213_v2  ;;  %v7293_v2 = vld [vmem:[%s8393_s1 + $0x404] ss:$8 sps:$4 sm:$0xff]  }
 0x1c4   :  { %3605 = vmatprep.subr.bf16.mxu0 %v7220_v3  ;;  %4971 = vmatprep.subr.bf16.mxu1 %v7220_v3  ;;  %v7294_v3 = vld [vmem:[%s8394_s0 + $0x70] sm:$0xff]  }
 0x1c5   :  { %3635 = vmatprep.mubr.bf16.mxu0 %v7319_v1  ;;  %5001 = vmatprep.mubr.bf16.mxu1 %v7319_v1 }
 0x1c7   :  { %3606 = vmatpush1.bf16.msra.mxu0 %v7218_v4  ;;  %4972 = vmatpush1.bf16.msra.mxu1 %v7218_v4  ;;  %v7295_v4 = vld [vmem:[%s8394_s0 + $0x58] sm:$0xff]  }
 0x1c8   :  { %3607 = vmatprep.subr.bf16.mxu0 %v7223_v5  ;;  %4973 = vmatprep.subr.bf16.mxu1 %v7223_v5  ;;  %v7291_v5 = vld [vmem:[%s8393_s1 + $0x400] ss:$8 sps:$4 sm:$0xff]  }
 0x1cb   :  { %3608 = vmatpush1.bf16.msra.mxu0 %v7221_v6  ;;  %4974 = vmatpush1.bf16.msra.mxu1 %v7221_v6  ;;  %v7298_v6 = vld [vmem:[%s8393_s1 + $0x414] ss:$8 sps:$4 sm:$0xff]  }
 0x1cc   :  { %3609 = vmatprep.subr.bf16.mxu0 %v7226_v7  ;;  %4975 = vmatprep.subr.bf16.mxu1 %v7226_v7  ;;  %v7296_v7 = vld [vmem:[%s8393_s1 + $0x410] ss:$8 sps:$4 sm:$0xff]  }
 0x1cf   :  { %3610 = vmatpush1.bf16.msra.mxu0 %v7224_v8  ;;  %4976 = vmatpush1.bf16.msra.mxu1 %v7224_v8  ;;  %v7301_v8 = vld [vmem:[%s8393_s1 + $0x424] ss:$8 sps:$4 sm:$0xff]  }
 0x1d0   :  { %3611 = vmatprep.subr.bf16.mxu0 %v7229_v9  ;;  %4977 = vmatprep.subr.bf16.mxu1 %v7229_v9  ;;  %v7299_v9 = vld [vmem:[%s8393_s1 + $0x420] ss:$8 sps:$4 sm:$0xff]  }
 0x1d3   :  { %3612 = vmatpush1.bf16.msra.mxu0 %v7227_v10  ;;  %4978 = vmatpush1.bf16.msra.mxu1 %v7227_v10  ;;  %v7304_v10 = vld [vmem:[%s8393_s1 + $0x434] ss:$8 sps:$4 sm:$0xff]  }
 0x1d4   :  { %3613 = vmatprep.subr.bf16.mxu0 %v7232_v11  ;;  %4979 = vmatprep.subr.bf16.mxu1 %v7232_v11  ;;  %v7302_v11 = vld [vmem:[%s8393_s1 + $0x430] ss:$8 sps:$4 sm:$0xff]  }
 0x1d7   :  { %3614 = vmatpush1.bf16.msra.mxu0 %v7230_v12  ;;  %4980 = vmatpush1.bf16.msra.mxu1 %v7230_v12  ;;  %v7305_v12 = vld [vmem:[%s8393_s1 + $0x440] ss:$8 sps:$4 sm:$0xff]  }
 0x1d8   :  { %3615 = vmatprep.subr.bf16.mxu0 %v7235_v13  ;;  %4981 = vmatprep.subr.bf16.mxu1 %v7235_v13  ;;  %v7310_v13 = vld [vmem:[%s8393_s1 + $0x454] ss:$8 sps:$4 sm:$0xff]  }
 0x1db   :  { %3616 = vmatpush1.bf16.msra.mxu0 %v7233_v14  ;;  %4982 = vmatpush1.bf16.msra.mxu1 %v7233_v14  ;;  %v7308_v14 = vld [vmem:[%s8393_s1 + $0x450] ss:$8 sps:$4 sm:$0xff]  }
 0x1dc   :  { %3617 = vmatprep.subr.bf16.mxu0 %v7238_v15  ;;  %4983 = vmatprep.subr.bf16.mxu1 %v7238_v15  ;;  %v7313_v15 = vld [vmem:[%s8393_s1 + $0x464] ss:$8 sps:$4 sm:$0xff]  }
 0x1df   :  { %3618 = vmatpush1.bf16.msra.mxu0 %v7236_v16  ;;  %4984 = vmatpush1.bf16.msra.mxu1 %v7236_v16  ;;  %v7311_v16 = vld [vmem:[%s8393_s1 + $0x460] ss:$8 sps:$4 sm:$0xff]  }
 0x1e0   :  { %3755 = vmatprep.subr.bf16.mxu0 %v7241_v17  ;;  %5120 = vmatprep.subr.bf16.mxu1 %v7241_v17  ;;  %v7316_v17 = vld [vmem:[%s8393_s1 + $0x474] ss:$8 sps:$4 sm:$0xff]  }
 0x1e2   :  { %3636 = vmatmul.mubr.bf16.vlgmr.msra.gmra.mrb[4].mxu0 %v7242_v18  ;;  %5002 = vmatmul.mubr.bf16.vlgmr.msra.gmra.mrb[4].mxu1 %v7243_v19  ;;  %v7314_v18 = vld [vmem:[%s8393_s1 + $0x470] ss:$8 sps:$4 sm:$0xff]  }
 0x1e3   :  { %3756 = vmatpush1.bf16.msra.mxu0 %v7239_v20  ;;  %5121 = vmatpush1.bf16.msra.mxu1 %v7239_v20  ;;  %v7317_v19 = vld [vmem:[%s8394_s0 + $0x58] sm:$0xff]  }
 0x1e4   :  { %3757 = vmatprep.subr.bf16.mxu0 %v7246_v21  ;;  %5122 = vmatprep.subr.bf16.mxu1 %v7246_v21  ;;  %v7318_v20 = vld [vmem:[%s8394_s0 + $0x78] sm:$0xff]   ;;  %v5488_v21 = vlaneseq }
 0x1e5   :  { %3787 = vmatprep.mubr.bf16.mxu0 %v7319_v1  ;;  %5152 = vmatprep.mubr.bf16.mxu1 %v7319_v1 }
 0x1e7   :  { %3758 = vmatpush1.bf16.msra.mxu0 %v7244_v22  ;;  %5123 = vmatpush1.bf16.msra.mxu1 %v7244_v22  ;;  %v5489_v22 = vshrl.u32 %v5488_v21, 7 }
 0x1e8   :  { %3759 = vmatprep.subr.bf16.mxu0 %v7249_v23  ;;  %5124 = vmatprep.subr.bf16.mxu1 %v7249_v23 }
 0x1e9   :  { %v5490_v23 = vsub.s32 0, %v5489_v22 }
 0x1eb   :  { %3760 = vmatpush1.bf16.msra.mxu0 %v7247_v24  ;;  %5125 = vmatpush1.bf16.msra.mxu1 %v7247_v24  ;;  %v5486_v24 = vld [vmem:[%s8395_s2] sm:$0x3] }
 0x1ec   :  { %3761 = vmatprep.subr.bf16.mxu0 %v7252_v25  ;;  %5126 = vmatprep.subr.bf16.mxu1 %v7252_v25  ;;  %v5494_v25 = vsub.s32 1, %v5489_v22 }
 0x1ef   :  { %3762 = vmatpush1.bf16.msra.mxu0 %v7250_v26  ;;  %5127 = vmatpush1.bf16.msra.mxu1 %v7250_v26 }
 0x1f0   :  { %3763 = vmatprep.subr.bf16.mxu0 %v7255_v27  ;;  %5128 = vmatprep.subr.bf16.mxu1 %v7255_v27 }
 0x1f3   :  { %3764 = vmatpush1.bf16.msra.mxu0 %v7253_v28  ;;  %5129 = vmatpush1.bf16.msra.mxu1 %v7253_v28 }
 0x1f4   :  { %3765 = vmatprep.subr.bf16.mxu0 %v7258_v29  ;;  %5130 = vmatprep.subr.bf16.mxu1 %v7258_v29  ;;  %v5491_v29 = vrot.slane %v5486_v24, %v5490_v23 }
 0x1f5   :  { %v8221_v32 = vpop.f32.mrb[0].mxu0  ;;  %v8223_v33 = vpop.f32.mrb[0].mxu1 }
 0x1f6   :  { %v2744_v34 = vmax.f32 %v8221_v32, %v8223_v33  ;;  %v8227_v35 = vpop.f32.mrb[1].mxu0  ;;  %v8229_v36 = vpop.f32.mrb[1].mxu1 }
 0x1f7   :  { %v2745_v37 = vmax.f32 %v8227_v35, %v8229_v36  ;;  %v8233_v38 = vpop.f32.mrb[2].mxu0  ;;  %v8235_v39 = vpop.f32.mrb[2].mxu1  ;;  %3766 = vmatpush1.bf16.msra.mxu0 %v7256_v30  ;;  %5131 = vmatpush1.bf16.msra.mxu1 %v7256_v30 }
 0x1f8   :  { %v2746_v41 = vmax.f32 %v8233_v38, %v8235_v39  ;;  %v8242_v42 = vpop.f32.mrb[3].mxu0  ;;  %v8244_v43 = vpop.f32.mrb[3].mxu1  ;;  %3767 = vmatprep.subr.bf16.mxu0 %v7261_v31  ;;  %5132 = vmatprep.subr.bf16.mxu1 %v7261_v31 }
 0x1f9   :  { %v2747_v45 = vmax.f32 %v8242_v42, %v8244_v43 }
 0x1fb   :  { %3768 = vmatpush1.bf16.msra.mxu0 %v7259_v40  ;;  %5133 = vmatpush1.bf16.msra.mxu1 %v7259_v40 }
 0x1fc   :  { %3769 = vmatprep.subr.bf16.mxu0 %v7264_v44  ;;  %5134 = vmatprep.subr.bf16.mxu1 %v7264_v44  ;;  %v5495_v44 = vrot.slane %v5486_v24, %v5494_v25 }
 0x1ff   :  { %3770 = vmatpush1.bf16.msra.mxu0 %v7262_v46  ;;  %5135 = vmatpush1.bf16.msra.mxu1 %v7262_v46 }
 0x200   :  { %3907 = vmatprep.subr.bf16.mxu0 %v7267_v47  ;;  %5271 = vmatprep.subr.bf16.mxu1 %v7267_v47 }
 0x202   :  { %3788 = vmatmul.mubr.bf16.vlgmr.msra.gmra.mrb[4].mxu0 %v7268_v48  ;;  %5153 = vmatmul.mubr.bf16.vlgmr.msra.gmra.mrb[4].mxu1 %v7269_v49 }
 0x203   :  { %3908 = vmatpush1.bf16.msra.mxu0 %v7265_v50  ;;  %5272 = vmatpush1.bf16.msra.mxu1 %v7265_v50 }
 0x204   :  { %3909 = vmatprep.subr.bf16.mxu0 %v7272_v51  ;;  %5273 = vmatprep.subr.bf16.mxu1 %v7272_v51 }
 0x205   :  { %3939 = vmatprep.mubr.bf16.mxu0 %v7319_v1  ;;  %5303 = vmatprep.mubr.bf16.mxu1 %v7319_v1 }
 0x207   :  { %3910 = vmatpush1.bf16.msra.mxu0 %v7270_v52  ;;  %5274 = vmatpush1.bf16.msra.mxu1 %v7270_v52 }
 0x208   :  { %3911 = vmatprep.subr.bf16.mxu0 %v7275_v53  ;;  %5275 = vmatprep.subr.bf16.mxu1 %v7275_v53 }
 0x20b   :  { %3912 = vmatpush1.bf16.msra.mxu0 %v7273_v54  ;;  %5276 = vmatpush1.bf16.msra.mxu1 %v7273_v54 }
 0x20c   :  { %3913 = vmatprep.subr.bf16.mxu0 %v7278_v55  ;;  %5277 = vmatprep.subr.bf16.mxu1 %v7278_v55 }
 0x20f   :  { %3914 = vmatpush1.bf16.msra.mxu0 %v7276_v56  ;;  %5278 = vmatpush1.bf16.msra.mxu1 %v7276_v56 }
 0x210   :  { %3915 = vmatprep.subr.bf16.mxu0 %v7281_v57  ;;  %5279 = vmatprep.subr.bf16.mxu1 %v7281_v57 }
 0x213   :  { %3916 = vmatpush1.bf16.msra.mxu0 %v7279_v58  ;;  %5280 = vmatpush1.bf16.msra.mxu1 %v7279_v58 }
 0x214   :  { %3917 = vmatprep.subr.bf16.mxu0 %v7284_v59  ;;  %5281 = vmatprep.subr.bf16.mxu1 %v7284_v59 }
 0x217   :  { %3918 = vmatpush1.bf16.msra.mxu0 %v7282_v60  ;;  %5282 = vmatpush1.bf16.msra.mxu1 %v7282_v60 }
 0x218   :  { %3919 = vmatprep.subr.bf16.mxu0 %v7287_v61  ;;  %5283 = vmatprep.subr.bf16.mxu1 %v7287_v61 }
 0x21b   :  { %3920 = vmatpush1.bf16.msra.mxu0 %v7285_v62  ;;  %5284 = vmatpush1.bf16.msra.mxu1 %v7285_v62 }
 0x21c   :  { %3921 = vmatprep.subr.bf16.mxu0 %v7290_v63  ;;  %5285 = vmatprep.subr.bf16.mxu1 %v7290_v63 }
 0x21f   :  { %3922 = vmatpush1.bf16.msra.mxu0 %v7288_v0  ;;  %5286 = vmatpush1.bf16.msra.mxu1 %v7288_v0 }
 0x220   :  { %4059 = vmatprep.subr.bf16.mxu0 %v7293_v2  ;;  %5423 = vmatprep.subr.bf16.mxu1 %v7293_v2 }
 0x222   :  { %3940 = vmatmul.mubr.bf16.vlgmr.msra.gmra.mrb[4].mxu0 %v7294_v3  ;;  %5304 = vmatmul.mubr.bf16.vlgmr.msra.gmra.mrb[4].mxu1 %v7295_v4 }
 0x223   :  { %4060 = vmatpush1.bf16.msra.mxu0 %v7291_v5  ;;  %5424 = vmatpush1.bf16.msra.mxu1 %v7291_v5 }
 0x224   :  { %4061 = vmatprep.subr.bf16.mxu0 %v7298_v6  ;;  %5425 = vmatprep.subr.bf16.mxu1 %v7298_v6 }
 0x225   :  { %4091 = vmatprep.mubr.bf16.mxu0 %v7319_v1  ;;  %5455 = vmatprep.mubr.bf16.mxu1 %v7319_v1  ;;  %v7307_v1 = vld [vmem:[%s8393_s1 + $0x444] ss:$8 sps:$4 sm:$0xff]  }
 0x227   :  { %4062 = vmatpush1.bf16.msra.mxu0 %v7296_v7  ;;  %5426 = vmatpush1.bf16.msra.mxu1 %v7296_v7 }
 0x228   :  { %4063 = vmatprep.subr.bf16.mxu0 %v7301_v8  ;;  %5427 = vmatprep.subr.bf16.mxu1 %v7301_v8 }
 0x22b   :  { %4064 = vmatpush1.bf16.msra.mxu0 %v7299_v9  ;;  %5428 = vmatpush1.bf16.msra.mxu1 %v7299_v9 }
 0x22c   :  { %4065 = vmatprep.subr.bf16.mxu0 %v7304_v10  ;;  %5429 = vmatprep.subr.bf16.mxu1 %v7304_v10 }
 0x22f   :  { %4066 = vmatpush1.bf16.msra.mxu0 %v7302_v11  ;;  %5430 = vmatpush1.bf16.msra.mxu1 %v7302_v11 }
 0x230   :  { %4067 = vmatprep.subr.bf16.mxu0 %v7307_v1  ;;  %5431 = vmatprep.subr.bf16.mxu1 %v7307_v1 }
 0x233   :  { %4068 = vmatpush1.bf16.msra.mxu0 %v7305_v12  ;;  %5432 = vmatpush1.bf16.msra.mxu1 %v7305_v12 }
 0x234   :  { %4069 = vmatprep.subr.bf16.mxu0 %v7310_v13  ;;  %5433 = vmatprep.subr.bf16.mxu1 %v7310_v13 }
 0x237   :  { %4070 = vmatpush1.bf16.msra.mxu0 %v7308_v14  ;;  %5434 = vmatpush1.bf16.msra.mxu1 %v7308_v14 }
 0x238   :  { %4071 = vmatprep.subr.bf16.mxu0 %v7313_v15  ;;  %5435 = vmatprep.subr.bf16.mxu1 %v7313_v15 }
 0x23b   :  { %4072 = vmatpush1.bf16.msra.mxu0 %v7311_v16  ;;  %5436 = vmatpush1.bf16.msra.mxu1 %v7311_v16 }
 0x23c   :  { %4073 = vmatprep.subr.bf16.mxu0 %v7316_v17  ;;  %5437 = vmatprep.subr.bf16.mxu1 %v7316_v17 }
 0x23f   :  { %4074 = vmatpush1.bf16.msra.mxu0 %v7314_v18  ;;  %5438 = vmatpush1.bf16.msra.mxu1 %v7314_v18 }
 0x242   :  { %4092 = vmatmul.mubr.bf16.vlgmr.msra.gmra.mrb[4].mxu0 %v7317_v19  ;;  %5456 = vmatmul.mubr.bf16.vlgmr.msra.gmra.mrb[4].mxu1 %v7318_v20 }
 0x315   :  { %v4093_v26 = vpop.f32.mrb[4].mxu0  ;;  %v5457_v27 = vpop.f32.mrb[4].mxu1 }
 0x316   :  { %v4110_v28 = vmax.f32 %v2744_v34, %v4093_v26  ;;  %v4095_v30 = vpop.f32.mrb[5].mxu0  ;;  %v5459_v31 = vpop.f32.mrb[5].mxu1 }
 0x317   :  { %v4111_v40 = vmax.f32 %v2745_v37, %v4095_v30  ;;  %v4097_v46 = vpop.f32.mrb[6].mxu0  ;;  %v5461_v47 = vpop.f32.mrb[6].mxu1 }
 0x318   :  { %v5474_v48 = vmax.f32 %v4110_v28, %v5457_v27  ;;  %v4112_v49 = vmax.f32 %v2746_v41, %v4097_v46  ;;  %v4099_v50 = vpop.f32.mrb[7].mxu0  ;;  %v5463_v51 = vpop.f32.mrb[7].mxu1 }
 0x319   :  { %v5475_v52 = vmax.f32 %v4111_v40, %v5459_v31  ;;  %v4113_v32 = vmax.f32 %v2747_v45, %v4099_v50 }
 0x31a   :  { %v5498_v33 = vadd.f32 %v5491_v29, %v5474_v48  ;;  %v5476_v34 = vmax.f32 %v4112_v49, %v5461_v47 }
 0x31b   :  { %v5499_v53 = vadd.f32 %v5495_v44, %v5475_v52  ;;  %v5477_v35 = vmax.f32 %v4113_v32, %v5463_v51 }
 0x31c   :  { %v5502_v36 = vmax.f32 %v5498_v33, 0.0  ;;  %v5500_v37 = vadd.f32 %v5491_v29, %v5476_v34 }
 0x31d   :  { %v5503_v54 = vmax.f32 %v5499_v53, 0.0  ;;  %v5501_v55 = vadd.f32 %v5495_v44, %v5477_v35 }
 0x31e   :  { %v5504_v56 = vmax.f32 %v5500_v37, 0.0 }
 0x31f   :  { %v6720_v57 = vpack.c.bf16 %v5503_v54, %v5502_v36  ;;  %v5505_v58 = vmax.f32 %v5501_v55, 0.0 }
 0x321   :  { %5518 = vst [vmem:[%s8396_s3] sm:$0xff] %v6720_v57  ;;  %v6721_v38 = vpack.c.bf16 %v5505_v58, %v5504_v56 }
 0x323   :  { %5519 = vst [vmem:[%s8396_s3 + $0x8] sm:$0xff] %v6721_v38 }

</bundles_post_ra>
